<compile_context>
chip_gen: v5e
topology: v5e:2x2
jax: 0.10.0
libtpu: 0.0.40
codegen_flags: <defaults>
</compile_context>

<pallas_src>
import numpy as np
import jax
import jax.numpy as jnp
from jax import lax
from jax.experimental import pallas as pl
from jax.experimental.pallas import tpu as pltpu


# -----------------------------------------------------------------------------
# Fused kernel (nb batch elements per grid step)
# -----------------------------------------------------------------------------
def bottleneck_fused_kernel(x_ref, w1_ref, w2_ref, w3_ref, b_ref, o_ref, hpad_ref):
    """Fused Bottleneck forward.

    x_ref    : (nb, D, H*W*Cin)        rows=(n,d), lanes=(h,w,ci)     (1024 lanes)
    w1_ref   : (H*W*Cin, L1)           1x1x1 conv, BN1 scale folded, output in the
                                       halo-lane layout (halo/pad columns are 0)
    w2_ref   : (3, L1, H*W*planes)     3x3x3 conv banded over (kh,kw); one band per kd
    w3_ref   : (H*W*planes, H*W*Cout)  1x1x1 conv, BN3 scale folded
    b_ref    : (3, LB)                 packed biases (rows: bn1, bn2, bn3)
    o_ref    : (nb, D, H*W*Cout)
    hpad_ref : (nb, D+2, L1)           VMEM scratch, stage-1 output + D halo
    L1 = (H+2)*(W+2)*planes rounded up to a multiple of 128.
    """
    nb, D, LX = x_ref.shape
    L1 = w1_ref.shape[1]
    L2 = w2_ref.shape[2]
    LO = w3_ref.shape[1]
    Dp2 = hpad_ref.shape[1]

    x = x_ref[...].reshape(nb * D, LX)

    # ---- stage 1: 1x1x1 conv + BN1 + ReLU (scale folded into w1) -----------
    # Output lands directly in the halo-lane layout; halo/pad lanes are zero.
    b1 = b_ref[pl.ds(0, 1), pl.ds(0, L1)]
    h1 = jnp.dot(x, w1_ref[...], preferred_element_type=jnp.float32)
    h1 = jnp.maximum(h1 + b1, 0.0)                       # (nb*D, L1)

    # ---- halo scratch: zero only the two D-halo faces, then dense interior --
    zrow = jnp.zeros((nb, 1, L1), jnp.float32)
    hpad_ref[:, pl.ds(0, 1), :] = zrow
    hpad_ref[:, pl.ds(Dp2 - 1, 1), :] = zrow
    hpad_ref[:, pl.ds(1, D), :] = h1.reshape(nb, D, L1)

    # ---- stage 2: 3x3x3 conv + BN2 + ReLU as 3 banded matmuls over kd -------
    # kh/kw taps + H/W shifts live in the banded weight; K = L1, N = H*W*planes.
    acc = jnp.zeros((nb * D, L2), jnp.float32)
    for kd in range(3):                                  # unrolled (3 MXU launches)
        slab = hpad_ref[:, pl.ds(kd, D), :].reshape(nb * D, L1)
        acc = acc + jnp.dot(slab, w2_ref[kd], preferred_element_type=jnp.float32)
    b2 = b_ref[pl.ds(1, 1), pl.ds(0, L2)]
    h2 = jnp.maximum(acc + b2, 0.0)                      # (nb*D, L2)

    # ---- stage 3: 1x1x1 conv + BN3 + identity residual + ReLU ---------------
    b3 = b_ref[pl.ds(2, 1), pl.ds(0, LO)]
    res = x_ref[...].reshape(nb * D, LX)                 # residual (same lane layout)
    y = jnp.dot(h2, w3_ref[...], preferred_element_type=jnp.float32) + b3 + res
    o_ref[...] = jnp.maximum(y, 0.0).reshape(nb, D, LO).astype(o_ref.dtype)


# -----------------------------------------------------------------------------
# Wrapper
# -----------------------------------------------------------------------------
def bottleneck_forward(x_ncdhw, folded, nb=None):
    w1f, w2f, w3f, bpack = folded
    N, Cin, D, H, W = x_ncdhw.shape
    LX = w1f.shape[0]
    L1 = w1f.shape[1]
    L2 = w2f.shape[2]
    LO = w3f.shape[1]
    Cout = LO // (H * W)
    assert LX == H * W * Cin
    assert Cout == Cin, "identity residual requires in_planes == planes * expansion"

    if nb is None:
        nb = N if N <= 8 else 8          # batch elements per grid step (M = nb*D rows)
    assert N % nb == 0
    steps = N // nb

    # NCDHW -> NDHWC -> fold H,W into the lane axis: (N, D, H*W*Cin)
    x = jnp.transpose(x_ncdhw, (0, 2, 3, 4, 1)).reshape(N, D, H * W * Cin)

    flops = int(2 * N * D * (LX * L1 + 3 * L1 * L2 + L2 * LO))
    bytes_accessed = int(4 * (N * D * (LX + LO)
                              + w1f.size + w2f.size + w3f.size + bpack.size))

    out = pl.pallas_call(
        bottleneck_fused_kernel,
        out_shape=jax.ShapeDtypeStruct((N, D, LO), jnp.float32),
        grid=(steps,),
        in_specs=[
            pl.BlockSpec((nb, D, LX), lambda i: (i, 0, 0)),       # x (folded)
            pl.BlockSpec((LX, L1), lambda i: (0, 0)),             # w1 (scale folded)
            pl.BlockSpec((3, L1, L2), lambda i: (0, 0, 0)),       # w2 banded (per kd)
            pl.BlockSpec((L2, LO), lambda i: (0, 0)),             # w3 (scale folded)
            pl.BlockSpec(bpack.shape, lambda i: (0, 0)),          # packed biases
        ],
        out_specs=pl.BlockSpec((nb, D, LO), lambda i: (i, 0, 0)),
        scratch_shapes=[pltpu.VMEM((nb, D + 2, L1), jnp.float32)],
        compiler_params=pltpu.CompilerParams(
            dimension_semantics=("parallel",)),
        cost_estimate=pl.CostEstimate(flops=flops, transcendentals=0,
                                      bytes_accessed=bytes_accessed),
    )(x, w1f, w2f, w3f, bpack)

    y = out.reshape(N, D, H, W, Cout)
    return jnp.transpose(y, (0, 4, 1, 2, 3))              # back to NCDHW


# -----------------------------------------------------------------------------
# Host-side weight folding (done once, outside jit)
# -----------------------------------------------------------------------------
def fold_params(params, H, W):
    (w1, s1, b1, w2, s2, b2, w3, s3, b3) = [np.asarray(p, np.float32) for p in params]
    Cin, P = w1.shape
    Cout = w3.shape[1]
    Hp, Wp = H + 2, W + 2
    LX = H * W * Cin                                  # x / residual / output lanes
    L1 = ((Hp * Wp * P + 127) // 128) * 128           # halo-padded intermediate lanes
    L2 = H * W * P                                    # stage-2 output lanes
    LO = H * W * Cout                                 # stage-3 output lanes

    # fold BN scales into the conv weights (exact in eval mode)
    w1s = w1 * s1[None, :]
    w2s = w2 * s2[None, None, None, None, :]          # (3,3,3,P,P)
    w3s = w3 * s3[None, :]

    w1f = np.zeros((LX, L1), np.float32)
    b1f = np.zeros((L1,), np.float32)
    w2f = np.zeros((3, L1, L2), np.float32)
    b2f = np.zeros((L2,), np.float32)
    w3f = np.zeros((L2, LO), np.float32)
    b3f = np.zeros((LO,), np.float32)

    for h in range(H):
        for w in range(W):
            xin = (h * W + w) * Cin                   # (h, w, ci) in x layout
            hal = ((h + 1) * Wp + (w + 1)) * P        # (h+1, w+1, c) in halo layout
            mid = (h * W + w) * P                     # (h, w, c)  in stage-2 layout
            out = (h * W + w) * Cout                  # (h, w, co) in output layout

            w1f[xin:xin + Cin, hal:hal + P] = w1s     # halo/pad columns stay zero
            b1f[hal:hal + P] = b1
            b2f[mid:mid + P] = b2
            w3f[mid:mid + P, out:out + Cout] = w3s
            b3f[out:out + Cout] = b3
            for kh in range(3):
                for kw in range(3):
                    src = ((h + kh) * Wp + (w + kw)) * P
                    w2f[:, src:src + P, mid:mid + P] = w2s[:, kh, kw]

    LB = max(L1, L2, LO)
    bpack = np.zeros((3, LB), np.float32)
    bpack[0, :L1] = b1f
    bpack[1, :L2] = b2f
    bpack[2, :LO] = b3f

    return tuple(jnp.asarray(a) for a in (w1f, w2f, w3f, bpack))


# -----------------------------------------------------------------------------
# Pure-JAX reference (correctness check, uses the unfolded params)
# -----------------------------------------------------------------------------
def reference_forward(x_ncdhw, params):
    (w1, s1, b1, w2, s2, b2, w3, s3, b3) = params
    x = jnp.transpose(x_ncdhw, (0, 2, 3, 4, 1))
    Cin, P = w1.shape
    Cout = w3.shape[1]
    dn = ("NDHWC", "DHWIO", "NDHWC")

    def conv(a, w, pad):
        return lax.conv_general_dilated(a, w, (1, 1, 1), pad, dimension_numbers=dn)

    o = conv(x, w1.reshape(1, 1, 1, Cin, P), [(0, 0)] * 3)
    o = jnp.maximum(o * s1 + b1, 0.0)
    o = conv(o, w2, [(1, 1)] * 3)
    o = jnp.maximum(o * s2 + b2, 0.0)
    o = conv(o, w3.reshape(1, 1, 1, P, Cout), [(0, 0)] * 3)
    o = jnp.maximum(o * s3 + b3 + x, 0.0)
    return jnp.transpose(o, (0, 4, 1, 2, 3))


# -----------------------------------------------------------------------------
# Parameter construction (deterministic, eval-mode BN folded to scale/bias)
# -----------------------------------------------------------------------------
def make_params(key, in_planes, planes, expansion=4, eps=1e-5):
    Cout = planes * expansion
    ks = jax.random.split(key, 12)

    def bn_fold(kg, kb, km, kv, c):
        gamma = 1.0 + 0.1 * jax.random.normal(kg, (c,), jnp.float32)
        beta = 0.1 * jax.random.normal(kb, (c,), jnp.float32)
        mean = 0.1 * jax.random.normal(km, (c,), jnp.float32)
        var = 1.0 + 0.1 * jnp.abs(jax.random.normal(kv, (c,), jnp.float32))
        scale = gamma / jnp.sqrt(var + eps)
        bias = beta - mean * scale
        return scale, bias

    # conv1: torch (planes, in_planes, 1,1,1) -> (in_planes, planes)
    w1 = jax.random.normal(ks[0], (in_planes, planes), jnp.float32) / np.sqrt(in_planes)
    # conv2: torch (planes, planes, 3,3,3) -> DHWIO (3,3,3,planes,planes)
    w2 = jax.random.normal(ks[1], (3, 3, 3, planes, planes), jnp.float32) / np.sqrt(27 * planes)
    # conv3: torch (Cout, planes, 1,1,1) -> (planes, Cout)
    w3 = jax.random.normal(ks[2], (planes, Cout), jnp.float32) / np.sqrt(planes)

    s1, b1 = bn_fold(ks[3], ks[4], ks[5], ks[6], planes)
    s2, b2 = bn_fold(ks[7], ks[8], ks[9], ks[10], planes)
    s3, b3 = bn_fold(ks[11], ks[3], ks[7], ks[0], Cout)
    return (w1, s1, b1, w2, s2, b2, w3, s3, b3)


if __name__ == "__main__":
    # Bottleneck(in_planes=16, planes=4, stride=1, downsample=None)
    # identity residual requires in_planes == planes * expansion (4 * 4 = 16).
    N, in_planes, planes, D, H, W = 2, 16, 4, 8, 8, 8
    key = jax.random.PRNGKey(0)
    kx, kp = jax.random.split(key)

    x = jax.random.normal(kx, (N, in_planes, D, H, W), jnp.float32)  # NCDHW like torch
    params = make_params(kp, in_planes, planes)
    folded = fold_params(params, H, W)

    out = jax.jit(bottleneck_forward)(x, folded)
    out = jax.block_until_ready(out)

    ref = jax.block_until_ready(reference_forward(x, params))
    assert out.shape == (N, planes * 4, D, H, W)
    np.testing.assert_allclose(np.asarray(out), np.asarray(ref), atol=2e-3, rtol=2e-3)

    print("KERNEL_OK")
</pallas_src>

<mosaic_0001>
module attributes {stable_mosaic.version = 11 : i64} {
  func.func @bottleneck_fused_kernel(%arg0: i32, %arg1: memref<2x8x1024xf32, #tpu.memory_space<vmem>>, %arg2: memref<1024x512xf32, #tpu.memory_space<vmem>>, %arg3: memref<3x512x256xf32, #tpu.memory_space<vmem>>, %arg4: memref<256x1024xf32, #tpu.memory_space<vmem>>, %arg5: memref<3x1024xf32, #tpu.memory_space<vmem>>, %arg6: memref<2x8x1024xf32, #tpu.memory_space<vmem>>, %arg7: memref<2x10x512xf32, #tpu.memory_space<vmem>>) attributes {dimension_semantics = [#tpu.dimension_semantics<parallel>], iteration_bounds = array<i64: 1>, scalar_prefetch = 0 : i64, scratch_operands = 1 : i64, tpu.core_type = #tpu.core_type<tc>, window_params = [{transform_indices = @transform_0, window_bounds = array<i64: 2, 8, 1024>}, {pipeline_mode = #tpu.pipeline_mode<synchronous>, transform_indices = @transform_1, window_bounds = array<i64: 1024, 512>}, {pipeline_mode = #tpu.pipeline_mode<synchronous>, transform_indices = @transform_2, window_bounds = array<i64: 3, 512, 256>}, {pipeline_mode = #tpu.pipeline_mode<synchronous>, transform_indices = @transform_3, window_bounds = array<i64: 256, 1024>}, {pipeline_mode = #tpu.pipeline_mode<synchronous>, transform_indices = @transform_4, window_bounds = array<i64: 3, 1024>}, {transform_indices = @transform_5, window_bounds = array<i64: 2, 8, 1024>}]} {
    %c0 = arith.constant 0 : index
    %c0_0 = arith.constant 0 : index
    %c0_1 = arith.constant 0 : index
    %0 = vector.load %arg1[%c0, %c0_0, %c0_1] : memref<2x8x1024xf32, #tpu.memory_space<vmem>>, vector<2x8x1024xf32>
    %1 = vector.shape_cast %0 : vector<2x8x1024xf32> to vector<16x1024xf32>
    %c0_2 = arith.constant 0 : index
    %c0_3 = arith.constant 0 : index
    %2 = vector.load %arg5[%c0_2, %c0_3] : memref<3x1024xf32, #tpu.memory_space<vmem>>, vector<1x512xf32>
    %c0_4 = arith.constant 0 : index
    %c0_5 = arith.constant 0 : index
    %3 = vector.load %arg2[%c0_4, %c0_5] : memref<1024x512xf32, #tpu.memory_space<vmem>>, vector<1024x512xf32>
    %cst = arith.constant dense<0.000000e+00> : vector<16x512xf32>
    %4 = tpu.matmul %1, %3, %cst {dimension_numbers = #tpu.dot_dimension_numbers<[1], [0], [0], [1], [0, 0, 1, 1], [], []>} : vector<16x1024xf32>, vector<1024x512xf32>, vector<16x512xf32> -> vector<16x512xf32>
    %5 = vector.broadcast %2 : vector<1x512xf32> to vector<16x512xf32>
    %6 = arith.addf %4, %5 : vector<16x512xf32>
    %cst_6 = arith.constant 0.000000e+00 : f32
    %7 = vector.broadcast %cst_6 : f32 to vector<16x512xf32>
    %8 = arith.maximumf %6, %7 : vector<16x512xf32>
    %cst_7 = arith.constant 0.000000e+00 : f32
    %9 = vector.broadcast %cst_7 : f32 to vector<2x1x512xf32>
    %c0_8 = arith.constant 0 : index
    %c0_9 = arith.constant 0 : index
    %c0_10 = arith.constant 0 : index
    %10 = vector.load %arg7[%c0_8, %c0_9, %c0_10] : memref<2x10x512xf32, #tpu.memory_space<vmem>>, vector<2x1x512xf32>
    tpu.vector_store %arg7[%c0_8, %c0_9, %c0_10], %9 {strides = array<i32>} : memref<2x10x512xf32, #tpu.memory_space<vmem>>, vector<2x1x512xf32>,
    %c0_11 = arith.constant 0 : index
    %c9 = arith.constant 9 : index
    %c0_12 = arith.constant 0 : index
    %11 = vector.load %arg7[%c0_11, %c9, %c0_12] : memref<2x10x512xf32, #tpu.memory_space<vmem>>, vector<2x1x512xf32>
    tpu.vector_store %arg7[%c0_11, %c9, %c0_12], %9 {strides = array<i32>} : memref<2x10x512xf32, #tpu.memory_space<vmem>>, vector<2x1x512xf32>,
    %12 = vector.shape_cast %8 : vector<16x512xf32> to vector<2x8x512xf32>
    %c0_13 = arith.constant 0 : index
    %c1 = arith.constant 1 : index
    %c0_14 = arith.constant 0 : index
    %13 = vector.load %arg7[%c0_13, %c1, %c0_14] : memref<2x10x512xf32, #tpu.memory_space<vmem>>, vector<2x8x512xf32>
    tpu.vector_store %arg7[%c0_13, %c1, %c0_14], %12 {strides = array<i32>} : memref<2x10x512xf32, #tpu.memory_space<vmem>>, vector<2x8x512xf32>,
    %cst_15 = arith.constant 0.000000e+00 : f32
    %14 = vector.broadcast %cst_15 : f32 to vector<16x256xf32>
    %c0_16 = arith.constant 0 : index
    %c0_17 = arith.constant 0 : index
    %c0_18 = arith.constant 0 : index
    %15 = vector.load %arg7[%c0_16, %c0_17, %c0_18] : memref<2x10x512xf32, #tpu.memory_space<vmem>>, vector<2x8x512xf32>
    %16 = vector.shape_cast %15 : vector<2x8x512xf32> to vector<16x512xf32>
    %c0_19 = arith.constant 0 : index
    %c0_20 = arith.constant 0 : index
    %c0_21 = arith.constant 0 : index
    %17 = vector.load %arg3[%c0_19, %c0_20, %c0_21] : memref<3x512x256xf32, #tpu.memory_space<vmem>>, vector<1x512x256xf32>
    %18 = vector.shape_cast %17 : vector<1x512x256xf32> to vector<512x256xf32>
    %cst_22 = arith.constant dense<0.000000e+00> : vector<16x256xf32>
    %19 = tpu.matmul %16, %18, %cst_22 {dimension_numbers = #tpu.dot_dimension_numbers<[1], [0], [0], [1], [0, 0, 1, 1], [], []>} : vector<16x512xf32>, vector<512x256xf32>, vector<16x256xf32> -> vector<16x256xf32>
    %20 = arith.addf %14, %19 : vector<16x256xf32>
    %c0_23 = arith.constant 0 : index
    %c1_24 = arith.constant 1 : index
    %c0_25 = arith.constant 0 : index
    %21 = vector.load %arg7[%c0_23, %c1_24, %c0_25] : memref<2x10x512xf32, #tpu.memory_space<vmem>>, vector<2x8x512xf32>
    %22 = vector.shape_cast %21 : vector<2x8x512xf32> to vector<16x512xf32>
    %c1_26 = arith.constant 1 : index
    %c0_27 = arith.constant 0 : index
    %c0_28 = arith.constant 0 : index
    %23 = vector.load %arg3[%c1_26, %c0_27, %c0_28] : memref<3x512x256xf32, #tpu.memory_space<vmem>>, vector<1x512x256xf32>
    %24 = vector.shape_cast %23 : vector<1x512x256xf32> to vector<512x256xf32>
    %cst_29 = arith.constant dense<0.000000e+00> : vector<16x256xf32>
    %25 = tpu.matmul %22, %24, %cst_29 {dimension_numbers = #tpu.dot_dimension_numbers<[1], [0], [0], [1], [0, 0, 1, 1], [], []>} : vector<16x512xf32>, vector<512x256xf32>, vector<16x256xf32> -> vector<16x256xf32>
    %26 = arith.addf %20, %25 : vector<16x256xf32>
    %c0_30 = arith.constant 0 : index
    %c2 = arith.constant 2 : index
    %c0_31 = arith.constant 0 : index
    %27 = vector.load %arg7[%c0_30, %c2, %c0_31] : memref<2x10x512xf32, #tpu.memory_space<vmem>>, vector<2x8x512xf32>
    %28 = vector.shape_cast %27 : vector<2x8x512xf32> to vector<16x512xf32>
    %c2_32 = arith.constant 2 : index
    %c0_33 = arith.constant 0 : index
    %c0_34 = arith.constant 0 : index
    %29 = vector.load %arg3[%c2_32, %c0_33, %c0_34] : memref<3x512x256xf32, #tpu.memory_space<vmem>>, vector<1x512x256xf32>
    %30 = vector.shape_cast %29 : vector<1x512x256xf32> to vector<512x256xf32>
    %cst_35 = arith.constant dense<0.000000e+00> : vector<16x256xf32>
    %31 = tpu.matmul %28, %30, %cst_35 {dimension_numbers = #tpu.dot_dimension_numbers<[1], [0], [0], [1], [0, 0, 1, 1], [], []>} : vector<16x512xf32>, vector<512x256xf32>, vector<16x256xf32> -> vector<16x256xf32>
    %32 = arith.addf %26, %31 : vector<16x256xf32>
    %c1_36 = arith.constant 1 : index
    %c0_37 = arith.constant 0 : index
    %33 = vector.load %arg5[%c1_36, %c0_37] : memref<3x1024xf32, #tpu.memory_space<vmem>>, vector<1x256xf32>
    %34 = vector.broadcast %33 : vector<1x256xf32> to vector<16x256xf32>
    %35 = arith.addf %32, %34 : vector<16x256xf32>
    %cst_38 = arith.constant 0.000000e+00 : f32
    %36 = vector.broadcast %cst_38 : f32 to vector<16x256xf32>
    %37 = arith.maximumf %35, %36 : vector<16x256xf32>
    %c2_39 = arith.constant 2 : index
    %c0_40 = arith.constant 0 : index
    %38 = vector.load %arg5[%c2_39, %c0_40] : memref<3x1024xf32, #tpu.memory_space<vmem>>, vector<1x1024xf32>
    %c0_41 = arith.constant 0 : index
    %c0_42 = arith.constant 0 : index
    %c0_43 = arith.constant 0 : index
    %39 = vector.load %arg1[%c0_41, %c0_42, %c0_43] : memref<2x8x1024xf32, #tpu.memory_space<vmem>>, vector<2x8x1024xf32>
    %40 = vector.shape_cast %39 : vector<2x8x1024xf32> to vector<16x1024xf32>
    %c0_44 = arith.constant 0 : index
    %c0_45 = arith.constant 0 : index
    %41 = vector.load %arg4[%c0_44, %c0_45] : memref<256x1024xf32, #tpu.memory_space<vmem>>, vector<256x1024xf32>
    %cst_46 = arith.constant dense<0.000000e+00> : vector<16x1024xf32>
    %42 = tpu.matmul %37, %41, %cst_46 {dimension_numbers = #tpu.dot_dimension_numbers<[1], [0], [0], [1], [0, 0, 1, 1], [], []>} : vector<16x256xf32>, vector<256x1024xf32>, vector<16x1024xf32> -> vector<16x1024xf32>
    %43 = vector.broadcast %38 : vector<1x1024xf32> to vector<16x1024xf32>
    %44 = arith.addf %42, %43 : vector<16x1024xf32>
    %45 = arith.addf %44, %40 : vector<16x1024xf32>
    %cst_47 = arith.constant 0.000000e+00 : f32
    %46 = vector.broadcast %cst_47 : f32 to vector<16x1024xf32>
    %47 = arith.maximumf %45, %46 : vector<16x1024xf32>
    %48 = vector.shape_cast %47 : vector<16x1024xf32> to vector<2x8x1024xf32>
    %c0_48 = arith.constant 0 : index
    %c0_49 = arith.constant 0 : index
    %c0_50 = arith.constant 0 : index
    %49 = vector.load %arg6[%c0_48, %c0_49, %c0_50] : memref<2x8x1024xf32, #tpu.memory_space<vmem>>, vector<2x8x1024xf32>
    tpu.vector_store %arg6[%c0_48, %c0_49, %c0_50], %48 {strides = array<i32>} : memref<2x8x1024xf32, #tpu.memory_space<vmem>>, vector<2x8x1024xf32>,
    return
  }
  func.func @transform_0(%arg0: i32) -> (i32, i32, i32) {
    %c0_i32 = arith.constant 0 : i32
    %c0_i32_0 = arith.constant 0 : i32
    %c0_i32_1 = arith.constant 0 : i32
    return %arg0, %c0_i32, %c0_i32_0 : i32, i32, i32
  }
  func.func @transform_1(%arg0: i32) -> (i32, i32) {
    %c0_i32 = arith.constant 0 : i32
    %c0_i32_0 = arith.constant 0 : i32
    %c0_i32_1 = arith.constant 0 : i32
    return %c0_i32, %c0_i32_0 : i32, i32
  }
  func.func @transform_2(%arg0: i32) -> (i32, i32, i32) {
    %c0_i32 = arith.constant 0 : i32
    %c0_i32_0 = arith.constant 0 : i32
    %c0_i32_1 = arith.constant 0 : i32
    %c0_i32_2 = arith.constant 0 : i32
    return %c0_i32, %c0_i32_0, %c0_i32_1 : i32, i32, i32
  }
  func.func @transform_3(%arg0: i32) -> (i32, i32) {
    %c0_i32 = arith.constant 0 : i32
    %c0_i32_0 = arith.constant 0 : i32
    %c0_i32_1 = arith.constant 0 : i32
    return %c0_i32, %c0_i32_0 : i32, i32
  }
  func.func @transform_4(%arg0: i32) -> (i32, i32) {
    %c0_i32 = arith.constant 0 : i32
    %c0_i32_0 = arith.constant 0 : i32
    %c0_i32_1 = arith.constant 0 : i32
    return %c0_i32, %c0_i32_0 : i32, i32
  }
  func.func @transform_5(%arg0: i32) -> (i32, i32, i32) {
    %c0_i32 = arith.constant 0 : i32
    %c0_i32_0 = arith.constant 0 : i32
    %c0_i32_1 = arith.constant 0 : i32
    return %arg0, %c0_i32, %c0_i32_0 : i32, i32, i32
  }
}

</mosaic_0001>

<bundles_post_ra>
// kernel: bottleneck_forward.1
= control target key start
LH: loop header
LB: loop body
LE: loop exit
PB: predicated region body
PF: predicated region fallthrough
CT: control target
= control target key end

     0   :  { %10 = vsyncpa [#allocation4], 0  ;;  %s3998_s0 = inlined_call_operand.vmem [shape: f32[2,8,1024], index: 0, kind: input, shape index: {}]   ;;  %s3999_s1 = inlined_call_operand.hbm [shape: f32[1024,512], index: 1, kind: input, shape index: {}]   ;;  %s4000_s2 = inlined_call_operand.hbm [shape: f32[3,512,256], index: 2, kind: input, shape index: {}]   ;;  %s4001_s3 = inlined_call_operand.hbm [shape: f32[256,1024], index: 3, kind: input, shape index: {}]   ;;  %s4002_s4 = inlined_call_operand.hbm [shape: f32[3,1024], index: 4, kind: input, shape index: {}]   ;;  %s4003_s5 = inlined_call_operand.vmem [shape: f32[2,8,1024], index: 5, kind: output, shape index: {}]  }
   0x1   :  { %11 = vsyncpa [#allocation6], 0  ;;  %s32_s20 = sshll.u32 %s4000_s2, 4  ;;  %s33_s20 = int_to_ptr.hbm [resolvable:$true] %s32_s20 }
   0x2   :  { %12 = vsyncpa [#allocation9], 0  ;;  %s3357_s21 = smov [#allocation5]   ;;  %s19_s25 = sshll.u32 %s3999_s1, 4  ;;  %s20_s25 = int_to_ptr.hbm [resolvable:$true] %s19_s25 }
   0x3   :  { %s34_s22 = sshll.u32 %s3357_s21, 4  ;;  %s3358_s26 = smov 256   ;;  %s35_s22 = int_to_ptr.vmem [resolvable:$true] %s34_s22 }
   0x4   :  { %s3359_s27 = smov 16   ;;  %s3360_s28 = smov [#allocation3]  }
   0x5   :  { %40 = dma.hbm_to_vmem [thread:$0]  %s33_s20, 49152, %s35_s22, [#allocation6], %s3358_s26, %s3358_s26, %s3359_s27  }
   0x6   :  { %s21_s29 = sshll.u32 %s3360_s28, 4  ;;  %s3361_s30 = smov 512   ;;  %s22_s29 = int_to_ptr.vmem [resolvable:$true] %s21_s29 }
   0x7   :  { %s3362_s6 = smov 32   ;;  %s45_s8 = sshll.u32 %s4001_s3, 4  ;;  %s46_s8 = int_to_ptr.hbm [resolvable:$true] %s45_s8 }
   0x8   :  { %27 = dma.hbm_to_vmem [thread:$0]  %s20_s25, 65536, %s22_s29, [#allocation4], %s3361_s30, %s3361_s30, %s3362_s6  }
   0x9   :  { %s3363_s9 = smov [#allocation7]   ;;  %s59_s12 = sshll.u32 %s4002_s4, 4  ;;  %s60_s12 = int_to_ptr.hbm [resolvable:$true] %s59_s12 }
   0xa   :  { %s47_s10 = sshll.u32 %s3363_s9, 4  ;;  %s3364_s13 = smov 1024   ;;  %s48_s10 = int_to_ptr.vmem [resolvable:$true] %s47_s10 }
   0xb   :  { %s3365_s14 = smov 64   ;;  %s3366_s15 = smov [#allocation8]  }
   0xc   :  { %53 = dma.hbm_to_vmem [thread:$0]  %s46_s8, 32768, %s48_s10, [#allocation6], %s3364_s13, %s3364_s13, %s3365_s14  }
   0xd   :  { %s61_s16 = sshll.u32 %s3366_s15, 4  ;;  %s62_s16 = int_to_ptr.vmem [resolvable:$true] %s61_s16 }
   0xe   :  { %64 = dma.hbm_to_vmem [thread:$0]  %s60_s12, 512, %s62_s16, [#allocation9]  }
   0xf   :  { %3351 = dma.done.wait [#allocation4], 65536  }
  0x10   :  { %3352 = vsyncadd [#allocation4], 4294901760 }
  0x11   :  { %3353 = dma.done.wait [#allocation6], 81920  }
  0x12   :  { %3354 = vsyncadd [#allocation6], 4294885376 }
  0x13   :  { %3355 = dma.done.wait [#allocation9], 512  }
  0x14   :  { %3356 = vsyncadd [#allocation9], 4294966784  ;;  %v158_v0 = vld [vmem:[#allocation3 + $0x1e0] sm:$0xff]  ;;  %vm1586_vm1 = vcmask 1046528   ;;  %vm2148_vm2 = vcmask 1045504  }
  0x15   :  { %v222_v1 = vld [vmem:[#allocation3 + $0x3e0] sm:$0xff]  ;;  %619 = vmatpush.msra.mxu0 %v158_v0 }
  0x16   :  { %v286_v2 = vld [vmem:[#allocation3 + $0x5e0] sm:$0xff]  ;;  %642 = vmatpush.msra.mxu1 %v222_v1 }
  0x17   :  { %v154_v3 = vld [vmem:[#allocation3 + $0x1c0] sm:$0xff]  ;;  %665 = vmatpush.msra.mxu2 %v286_v2 }
  0x18   :  { %v218_v4 = vld [vmem:[#allocation3 + $0x3c0] sm:$0xff]  ;;  %620 = vmatpush.msra.mxu0 %v154_v3 }
  0x19   :  { %v282_v5 = vld [vmem:[#allocation3 + $0x5c0] sm:$0xff]  ;;  %643 = vmatpush.msra.mxu1 %v218_v4 }
  0x1a   :  { %v350_v6 = vld [vmem:[#allocation3 + $0x7e0] sm:$0xff]  ;;  %666 = vmatpush.msra.mxu2 %v282_v5 }
  0x1b   :  { %v150_v7 = vld [vmem:[#allocation3 + $0x1a0] sm:$0xff]  ;;  %688 = vmatpush.msra.mxu3 %v350_v6 }
  0x1c   :  { %v214_v8 = vld [vmem:[#allocation3 + $0x3a0] sm:$0xff]  ;;  %621 = vmatpush.msra.mxu0 %v150_v7 }
  0x1d   :  { %v278_v9 = vld [vmem:[#allocation3 + $0x5a0] sm:$0xff]  ;;  %644 = vmatpush.msra.mxu1 %v214_v8 }
  0x1e   :  { %v346_v10 = vld [vmem:[#allocation3 + $0x7c0] sm:$0xff]  ;;  %667 = vmatpush.msra.mxu2 %v278_v9 }
  0x1f   :  { %v146_v11 = vld [vmem:[#allocation3 + $0x180] sm:$0xff]  ;;  %689 = vmatpush.msra.mxu3 %v346_v10 }
  0x20   :  { %v210_v12 = vld [vmem:[#allocation3 + $0x380] sm:$0xff]  ;;  %622 = vmatpush.msra.mxu0 %v146_v11 }
  0x21   :  { %v274_v13 = vld [vmem:[#allocation3 + $0x580] sm:$0xff]  ;;  %645 = vmatpush.msra.mxu1 %v210_v12 }
  0x22   :  { %v342_v14 = vld [vmem:[#allocation3 + $0x7a0] sm:$0xff]  ;;  %668 = vmatpush.msra.mxu2 %v274_v13 }
  0x23   :  { %v142_v15 = vld [vmem:[#allocation3 + $0x160] sm:$0xff]  ;;  %690 = vmatpush.msra.mxu3 %v342_v14 }
  0x24   :  { %v206_v16 = vld [vmem:[#allocation3 + $0x360] sm:$0xff]  ;;  %623 = vmatpush.msra.mxu0 %v142_v15 }
  0x25   :  { %v270_v17 = vld [vmem:[#allocation3 + $0x560] sm:$0xff]  ;;  %646 = vmatpush.msra.mxu1 %v206_v16 }
  0x26   :  { %v338_v18 = vld [vmem:[#allocation3 + $0x780] sm:$0xff]  ;;  %669 = vmatpush.msra.mxu2 %v270_v17 }
  0x27   :  { %v138_v19 = vld [vmem:[#allocation3 + $0x140] sm:$0xff]  ;;  %691 = vmatpush.msra.mxu3 %v338_v18 }
  0x28   :  { %v202_v20 = vld [vmem:[#allocation3 + $0x340] sm:$0xff]  ;;  %624 = vmatpush.msra.mxu0 %v138_v19 }
  0x29   :  { %v266_v21 = vld [vmem:[#allocation3 + $0x540] sm:$0xff]  ;;  %647 = vmatpush.msra.mxu1 %v202_v20 }
  0x2a   :  { %v334_v22 = vld [vmem:[#allocation3 + $0x760] sm:$0xff]  ;;  %670 = vmatpush.msra.mxu2 %v266_v21 }
  0x2b   :  { %v134_v23 = vld [vmem:[#allocation3 + $0x120] sm:$0xff]  ;;  %692 = vmatpush.msra.mxu3 %v334_v22 }
  0x2c   :  { %v198_v24 = vld [vmem:[#allocation3 + $0x320] sm:$0xff]  ;;  %625 = vmatpush.msra.mxu0 %v134_v23 }
  0x2d   :  { %v262_v25 = vld [vmem:[#allocation3 + $0x520] sm:$0xff]  ;;  %648 = vmatpush.msra.mxu1 %v198_v24 }
  0x2e   :  { %v330_v26 = vld [vmem:[#allocation3 + $0x740] sm:$0xff]  ;;  %671 = vmatpush.msra.mxu2 %v262_v25 }
  0x2f   :  { %v130_v27 = vld [vmem:[#allocation3 + $0x100] sm:$0xff]  ;;  %693 = vmatpush.msra.mxu3 %v330_v26 }
  0x30   :  { %v194_v28 = vld [vmem:[#allocation3 + $0x300] sm:$0xff]  ;;  %626 = vmatpush.msra.mxu0 %v130_v27 }
  0x31   :  { %v258_v29 = vld [vmem:[#allocation3 + $0x500] sm:$0xff]  ;;  %649 = vmatpush.msra.mxu1 %v194_v28 }
  0x32   :  { %v326_v30 = vld [vmem:[#allocation3 + $0x720] sm:$0xff]  ;;  %672 = vmatpush.msra.mxu2 %v258_v29 }
  0x33   :  { %v126_v31 = vld [vmem:[#allocation3 + $0xe0] sm:$0xff]  ;;  %694 = vmatpush.msra.mxu3 %v326_v30 }
  0x34   :  { %v190_v32 = vld [vmem:[#allocation3 + $0x2e0] sm:$0xff]  ;;  %627 = vmatpush.msra.mxu0 %v126_v31 }
  0x35   :  { %v254_v33 = vld [vmem:[#allocation3 + $0x4e0] sm:$0xff]  ;;  %650 = vmatpush.msra.mxu1 %v190_v32 }
  0x36   :  { %v322_v34 = vld [vmem:[#allocation3 + $0x700] sm:$0xff]  ;;  %673 = vmatpush.msra.mxu2 %v254_v33 }
  0x37   :  { %v122_v35 = vld [vmem:[#allocation3 + $0xc0] sm:$0xff]  ;;  %695 = vmatpush.msra.mxu3 %v322_v34 }
  0x38   :  { %v186_v36 = vld [vmem:[#allocation3 + $0x2c0] sm:$0xff]  ;;  %628 = vmatpush.msra.mxu0 %v122_v35 }
  0x39   :  { %v250_v37 = vld [vmem:[#allocation3 + $0x4c0] sm:$0xff]  ;;  %651 = vmatpush.msra.mxu1 %v186_v36 }
  0x3a   :  { %v318_v38 = vld [vmem:[#allocation3 + $0x6e0] sm:$0xff]  ;;  %674 = vmatpush.msra.mxu2 %v250_v37 }
  0x3b   :  { %v118_v39 = vld [vmem:[#allocation3 + $0xa0] sm:$0xff]  ;;  %696 = vmatpush.msra.mxu3 %v318_v38 }
  0x3c   :  { %v182_v40 = vld [vmem:[#allocation3 + $0x2a0] sm:$0xff]  ;;  %629 = vmatpush.msra.mxu0 %v118_v39 }
  0x3d   :  { %v246_v41 = vld [vmem:[#allocation3 + $0x4a0] sm:$0xff]  ;;  %652 = vmatpush.msra.mxu1 %v182_v40 }
  0x3e   :  { %v314_v42 = vld [vmem:[#allocation3 + $0x6c0] sm:$0xff]  ;;  %675 = vmatpush.msra.mxu2 %v246_v41 }
  0x3f   :  { %v114_v43 = vld [vmem:[#allocation3 + $0x80] sm:$0xff]  ;;  %697 = vmatpush.msra.mxu3 %v314_v42 }
  0x40   :  { %v178_v44 = vld [vmem:[#allocation3 + $0x280] sm:$0xff]  ;;  %630 = vmatpush.msra.mxu0 %v114_v43 }
  0x41   :  { %v242_v45 = vld [vmem:[#allocation3 + $0x480] sm:$0xff]  ;;  %653 = vmatpush.msra.mxu1 %v178_v44 }
  0x42   :  { %v310_v46 = vld [vmem:[#allocation3 + $0x6a0] sm:$0xff]  ;;  %676 = vmatpush.msra.mxu2 %v242_v45 }
  0x43   :  { %v110_v47 = vld [vmem:[#allocation3 + $0x60] sm:$0xff]  ;;  %698 = vmatpush.msra.mxu3 %v310_v46 }
  0x44   :  { %v174_v48 = vld [vmem:[#allocation3 + $0x260] sm:$0xff]  ;;  %631 = vmatpush.msra.mxu0 %v110_v47  ;;  %v3413_v47 = vld [vmem:[%s3998_s0 + $0x10] sm:$0xff] }
  0x45   :  { %v238_v49 = vld [vmem:[#allocation3 + $0x460] sm:$0xff]  ;;  %654 = vmatpush.msra.mxu1 %v174_v48 }
  0x46   :  { %v306_v50 = vld [vmem:[#allocation3 + $0x680] sm:$0xff]  ;;  %677 = vmatpush.msra.mxu2 %v238_v49 }
  0x47   :  { %v106_v51 = vld [vmem:[#allocation3 + $0x40] sm:$0xff]  ;;  %699 = vmatpush.msra.mxu3 %v306_v50 }
  0x48   :  { %v170_v52 = vld [vmem:[#allocation3 + $0x240] sm:$0xff]  ;;  %632 = vmatpush.msra.mxu0 %v106_v51 }
  0x49   :  { %v234_v53 = vld [vmem:[#allocation3 + $0x440] sm:$0xff]  ;;  %655 = vmatpush.msra.mxu1 %v170_v52 }
  0x4a   :  { %v302_v54 = vld [vmem:[#allocation3 + $0x660] sm:$0xff]  ;;  %678 = vmatpush.msra.mxu2 %v234_v53  ;;  %v3424_v53 = vld [vmem:[%s3998_s0 + $0x18] sm:$0xff] }
  0x4b   :  { %v102_v55 = vld [vmem:[#allocation3 + $0x20] sm:$0xff]  ;;  %700 = vmatpush.msra.mxu3 %v302_v54 }
  0x4c   :  { %v166_v56 = vld [vmem:[#allocation3 + $0x220] sm:$0xff]  ;;  %633 = vmatpush.msra.mxu0 %v102_v55 }
  0x4d   :  { %v230_v57 = vld [vmem:[#allocation3 + $0x420] sm:$0xff]  ;;  %656 = vmatpush.msra.mxu1 %v166_v56 }
  0x4e   :  { %v298_v58 = vld [vmem:[#allocation3 + $0x640] sm:$0xff]  ;;  %679 = vmatpush.msra.mxu2 %v230_v57 }
  0x4f   :  { %v98_v59 = vld [vmem:[#allocation3] sm:$0xff]  ;;  %701 = vmatpush.msra.mxu3 %v298_v58  ;;  %v3430_v58 = vld [vmem:[%s3998_s0 + $0x8] sm:$0xff] }
  0x50   :  { %v162_v60 = vld [vmem:[#allocation3 + $0x200] sm:$0xff]  ;;  %634 = vmatpush.msra.mxu0 %v98_v59 }
  0x51   :  { %v226_v61 = vld [vmem:[#allocation3 + $0x400] sm:$0xff]  ;;  %657 = vmatpush.msra.mxu1 %v162_v60 }
  0x52   :  { %v294_v62 = vld [vmem:[#allocation3 + $0x620] sm:$0xff]  ;;  %680 = vmatpush.msra.mxu2 %v226_v61  ;;  %658 = vmatmul.f32.vlgmr.msra.gmra.mxu1 %v3430_v58 }
  0x53   :  { %v414_v63 = vld [vmem:[#allocation3 + $0x9e0] sm:$0xff]  ;;  %702 = vmatpush.msra.mxu3 %v294_v62  ;;  %681 = vmatmul.f32.vlgmr.msra.gmra.mxu2 %v3413_v47 }
  0x54   :  { %v478_v0 = vld [vmem:[#allocation3 + $0xbe0] sm:$0xff]  ;;  %711 = vmatpush.msrb.mxu0 %v414_v63 }
  0x55   :  { %v542_v1 = vld [vmem:[#allocation3 + $0xde0] sm:$0xff]  ;;  %734 = vmatpush.msrb.mxu1 %v478_v0 }
  0x56   :  { %v290_v2 = vld [vmem:[#allocation3 + $0x600] sm:$0xff]  ;;  %757 = vmatpush.msrb.mxu2 %v542_v1 }
  0x57   :  { %v410_v3 = vld [vmem:[#allocation3 + $0x9c0] sm:$0xff]  ;;  %703 = vmatpush.msra.mxu3 %v290_v2 }
  0x58   :  { %v474_v4 = vld [vmem:[#allocation3 + $0xbc0] sm:$0xff]  ;;  %712 = vmatpush.msrb.mxu0 %v410_v3  ;;  %704 = vmatmul.f32.vlgmr.msra.gmra.mxu3 %v3424_v53  ;;  %v3437_v3 = vld [vmem:[%s3998_s0 + $0x50] sm:$0xff] }
  0x59   :  { %v538_v5 = vld [vmem:[#allocation3 + $0xdc0] sm:$0xff]  ;;  %735 = vmatpush.msrb.mxu1 %v474_v4  ;;  %v159_v4 = vld [vmem:[#allocation3 + $0x1e8] sm:$0xff] }
  0x5a   :  { %v606_v6 = vld [vmem:[#allocation3 + $0xfe0] sm:$0xff]  ;;  %758 = vmatpush.msrb.mxu2 %v538_v5  ;;  %v223_v5 = vld [vmem:[#allocation3 + $0x3e8] sm:$0xff] }
  0x5b   :  { %v406_v7 = vld [vmem:[#allocation3 + $0x9a0] sm:$0xff]  ;;  %780 = vmatpush.msrb.mxu3 %v606_v6  ;;  %v287_v6 = vld [vmem:[#allocation3 + $0x5e8] sm:$0xff]  ;;  %684 = vmatmul.f32.gmra.mxu2 %v3437_v3 }
  0x5c   :  { %v470_v8 = vld [vmem:[#allocation3 + $0xba0] sm:$0xff]  ;;  %713 = vmatpush.msrb.mxu0 %v406_v7 }
  0x5d   :  { %v534_v9 = vld [vmem:[#allocation3 + $0xda0] sm:$0xff]  ;;  %736 = vmatpush.msrb.mxu1 %v470_v8 }
  0x5e   :  { %v602_v10 = vld [vmem:[#allocation3 + $0xfc0] sm:$0xff]  ;;  %759 = vmatpush.msrb.mxu2 %v534_v9  ;;  %v3448_v9 = vld [vmem:[%s3998_s0 + $0x58] sm:$0xff] }
  0x5f   :  { %v402_v11 = vld [vmem:[#allocation3 + $0x980] sm:$0xff]  ;;  %781 = vmatpush.msrb.mxu3 %v602_v10  ;;  %v155_v10 = vld [vmem:[#allocation3 + $0x1c8] sm:$0xff] }
  0x60   :  { %v466_v12 = vld [vmem:[#allocation3 + $0xb80] sm:$0xff]  ;;  %714 = vmatpush.msrb.mxu0 %v402_v11  ;;  %v219_v11 = vld [vmem:[#allocation3 + $0x3c8] sm:$0xff]  ;;  %707 = vmatmul.f32.gmra.mxu3 %v3448_v9 }
  0x61   :  { %v530_v13 = vld [vmem:[#allocation3 + $0xd80] sm:$0xff]  ;;  %737 = vmatpush.msrb.mxu1 %v466_v12  ;;  %v283_v12 = vld [vmem:[#allocation3 + $0x5c8] sm:$0xff] }
  0x62   :  { %v598_v14 = vld [vmem:[#allocation3 + $0xfa0] sm:$0xff]  ;;  %760 = vmatpush.msrb.mxu2 %v530_v13  ;;  %v351_v13 = vld [vmem:[#allocation3 + $0x7e8] sm:$0xff] }
  0x63   :  { %v398_v15 = vld [vmem:[#allocation3 + $0x960] sm:$0xff]  ;;  %782 = vmatpush.msrb.mxu3 %v598_v14  ;;  %v3454_v14 = vld [vmem:[%s3998_s0 + $0x48] sm:$0xff] }
  0x64   :  { %v462_v16 = vld [vmem:[#allocation3 + $0xb60] sm:$0xff]  ;;  %715 = vmatpush.msrb.mxu0 %v398_v15  ;;  %v151_v15 = vld [vmem:[#allocation3 + $0x1a8] sm:$0xff]  ;;  %661 = vmatmul.f32.gmra.mxu1 %v3454_v14 }
  0x65   :  { %v526_v17 = vld [vmem:[#allocation3 + $0xd60] sm:$0xff]  ;;  %738 = vmatpush.msrb.mxu1 %v462_v16  ;;  %v215_v16 = vld [vmem:[#allocation3 + $0x3a8] sm:$0xff] }
  0x66   :  { %v594_v18 = vld [vmem:[#allocation3 + $0xf80] sm:$0xff]  ;;  %761 = vmatpush.msrb.mxu2 %v526_v17  ;;  %v279_v17 = vld [vmem:[#allocation3 + $0x5a8] sm:$0xff] }
  0x67   :  { %v394_v19 = vld [vmem:[#allocation3 + $0x940] sm:$0xff]  ;;  %783 = vmatpush.msrb.mxu3 %v594_v18  ;;  %v347_v18 = vld [vmem:[#allocation3 + $0x7c8] sm:$0xff] }
  0x68   :  { %v458_v20 = vld [vmem:[#allocation3 + $0xb40] sm:$0xff]  ;;  %716 = vmatpush.msrb.mxu0 %v394_v19  ;;  %v147_v19 = vld [vmem:[#allocation3 + $0x188] sm:$0xff] }
  0x69   :  { %v522_v21 = vld [vmem:[#allocation3 + $0xd40] sm:$0xff]  ;;  %739 = vmatpush.msrb.mxu1 %v458_v20  ;;  %v211_v20 = vld [vmem:[#allocation3 + $0x388] sm:$0xff] }
  0x6a   :  { %v590_v22 = vld [vmem:[#allocation3 + $0xf60] sm:$0xff]  ;;  %762 = vmatpush.msrb.mxu2 %v522_v21  ;;  %v275_v21 = vld [vmem:[#allocation3 + $0x588] sm:$0xff] }
  0x6b   :  { %v390_v23 = vld [vmem:[#allocation3 + $0x920] sm:$0xff]  ;;  %784 = vmatpush.msrb.mxu3 %v590_v22  ;;  %v343_v22 = vld [vmem:[#allocation3 + $0x7a8] sm:$0xff] }
  0x6c   :  { %v454_v24 = vld [vmem:[#allocation3 + $0xb20] sm:$0xff]  ;;  %717 = vmatpush.msrb.mxu0 %v390_v23  ;;  %v3461_v23 = vld [vmem:[%s3998_s0 + $0x30] sm:$0xff] }
  0x6d   :  { %v518_v25 = vld [vmem:[#allocation3 + $0xd20] sm:$0xff]  ;;  %740 = vmatpush.msrb.mxu1 %v454_v24  ;;  %v143_v24 = vld [vmem:[#allocation3 + $0x168] sm:$0xff] }
  0x6e   :  { %v586_v26 = vld [vmem:[#allocation3 + $0xf40] sm:$0xff]  ;;  %763 = vmatpush.msrb.mxu2 %v518_v25  ;;  %v207_v25 = vld [vmem:[#allocation3 + $0x368] sm:$0xff] }
  0x6f   :  { %v386_v27 = vld [vmem:[#allocation3 + $0x900] sm:$0xff]  ;;  %785 = vmatpush.msrb.mxu3 %v586_v26  ;;  %v271_v26 = vld [vmem:[#allocation3 + $0x568] sm:$0xff] }
  0x70   :  { %v450_v28 = vld [vmem:[#allocation3 + $0xb00] sm:$0xff]  ;;  %718 = vmatpush.msrb.mxu0 %v386_v27  ;;  %v339_v27 = vld [vmem:[#allocation3 + $0x788] sm:$0xff] }
  0x71   :  { %v514_v29 = vld [vmem:[#allocation3 + $0xd00] sm:$0xff]  ;;  %741 = vmatpush.msrb.mxu1 %v450_v28 }
  0x72   :  { %v582_v30 = vld [vmem:[#allocation3 + $0xf20] sm:$0xff]  ;;  %764 = vmatpush.msrb.mxu2 %v514_v29  ;;  %v3472_v29 = vld [vmem:[%s3998_s0 + $0x38] sm:$0xff] }
  0x73   :  { %v382_v31 = vld [vmem:[#allocation3 + $0x8e0] sm:$0xff]  ;;  %786 = vmatpush.msrb.mxu3 %v582_v30  ;;  %v139_v30 = vld [vmem:[#allocation3 + $0x148] sm:$0xff] }
  0x74   :  { %v446_v32 = vld [vmem:[#allocation3 + $0xae0] sm:$0xff]  ;;  %719 = vmatpush.msrb.mxu0 %v382_v31  ;;  %v203_v31 = vld [vmem:[#allocation3 + $0x348] sm:$0xff] }
  0x75   :  { %v510_v33 = vld [vmem:[#allocation3 + $0xce0] sm:$0xff]  ;;  %742 = vmatpush.msrb.mxu1 %v446_v32  ;;  %v267_v32 = vld [vmem:[#allocation3 + $0x548] sm:$0xff] }
  0x76   :  { %v578_v34 = vld [vmem:[#allocation3 + $0xf00] sm:$0xff]  ;;  %765 = vmatpush.msrb.mxu2 %v510_v33  ;;  %v335_v33 = vld [vmem:[#allocation3 + $0x768] sm:$0xff] }
  0x77   :  { %v378_v35 = vld [vmem:[#allocation3 + $0x8c0] sm:$0xff]  ;;  %787 = vmatpush.msrb.mxu3 %v578_v34  ;;  %v3478_v34 = vld [vmem:[%s3998_s0 + $0x28] sm:$0xff] }
  0x78   :  { %v442_v36 = vld [vmem:[#allocation3 + $0xac0] sm:$0xff]  ;;  %720 = vmatpush.msrb.mxu0 %v378_v35  ;;  %v135_v35 = vld [vmem:[#allocation3 + $0x128] sm:$0xff] }
  0x79   :  { %v506_v37 = vld [vmem:[#allocation3 + $0xcc0] sm:$0xff]  ;;  %743 = vmatpush.msrb.mxu1 %v442_v36  ;;  %v199_v36 = vld [vmem:[#allocation3 + $0x328] sm:$0xff] }
  0x7a   :  { %v574_v38 = vld [vmem:[#allocation3 + $0xee0] sm:$0xff]  ;;  %766 = vmatpush.msrb.mxu2 %v506_v37  ;;  %v263_v37 = vld [vmem:[#allocation3 + $0x528] sm:$0xff] }
  0x7b   :  { %v374_v39 = vld [vmem:[#allocation3 + $0x8a0] sm:$0xff]  ;;  %788 = vmatpush.msrb.mxu3 %v574_v38  ;;  %v331_v38 = vld [vmem:[#allocation3 + $0x748] sm:$0xff] }
  0x7c   :  { %v438_v40 = vld [vmem:[#allocation3 + $0xaa0] sm:$0xff]  ;;  %721 = vmatpush.msrb.mxu0 %v374_v39  ;;  %v131_v39 = vld [vmem:[#allocation3 + $0x108] sm:$0xff] }
  0x7d   :  { %v502_v41 = vld [vmem:[#allocation3 + $0xca0] sm:$0xff]  ;;  %744 = vmatpush.msrb.mxu1 %v438_v40  ;;  %v195_v40 = vld [vmem:[#allocation3 + $0x308] sm:$0xff] }
  0x7e   :  { %v570_v42 = vld [vmem:[#allocation3 + $0xec0] sm:$0xff]  ;;  %767 = vmatpush.msrb.mxu2 %v502_v41  ;;  %v259_v41 = vld [vmem:[#allocation3 + $0x508] sm:$0xff] }
  0x7f   :  { %v370_v43 = vld [vmem:[#allocation3 + $0x880] sm:$0xff]  ;;  %789 = vmatpush.msrb.mxu3 %v570_v42  ;;  %v327_v42 = vld [vmem:[#allocation3 + $0x728] sm:$0xff] }
  0x80   :  { %v434_v44 = vld [vmem:[#allocation3 + $0xa80] sm:$0xff]  ;;  %722 = vmatpush.msrb.mxu0 %v370_v43  ;;  %v127_v43 = vld [vmem:[#allocation3 + $0xe8] sm:$0xff] }
  0x81   :  { %v498_v45 = vld [vmem:[#allocation3 + $0xc80] sm:$0xff]  ;;  %745 = vmatpush.msrb.mxu1 %v434_v44  ;;  %v191_v44 = vld [vmem:[#allocation3 + $0x2e8] sm:$0xff] }
  0x82   :  { %v566_v46 = vld [vmem:[#allocation3 + $0xea0] sm:$0xff]  ;;  %768 = vmatpush.msrb.mxu2 %v498_v45  ;;  %v255_v45 = vld [vmem:[#allocation3 + $0x4e8] sm:$0xff] }
  0x83   :  { %v366_v48 = vld [vmem:[#allocation3 + $0x860] sm:$0xff]  ;;  %790 = vmatpush.msrb.mxu3 %v566_v46  ;;  %v323_v46 = vld [vmem:[#allocation3 + $0x708] sm:$0xff] }
  0x84   :  { %v430_v49 = vld [vmem:[#allocation3 + $0xa60] sm:$0xff]  ;;  %723 = vmatpush.msrb.mxu0 %v366_v48  ;;  %v123_v48 = vld [vmem:[#allocation3 + $0xc8] sm:$0xff] }
  0x85   :  { %v494_v50 = vld [vmem:[#allocation3 + $0xc60] sm:$0xff]  ;;  %746 = vmatpush.msrb.mxu1 %v430_v49  ;;  %v187_v49 = vld [vmem:[#allocation3 + $0x2c8] sm:$0xff] }
  0x86   :  { %v562_v51 = vld [vmem:[#allocation3 + $0xe80] sm:$0xff]  ;;  %769 = vmatpush.msrb.mxu2 %v494_v50  ;;  %v251_v50 = vld [vmem:[#allocation3 + $0x4c8] sm:$0xff] }
  0x87   :  { %v3418_v52 = vld [vmem:[%s3998_s0] sm:$0xff]  ;;  %791 = vmatpush.msrb.mxu3 %v562_v51  ;;  %v319_v51 = vld [vmem:[#allocation3 + $0x6e8] sm:$0xff] }
  0x88   :  { %v362_v54 = vld [vmem:[#allocation3 + $0x840] sm:$0xff]  ;;  %635 = vmatmul.f32.vlgmr.msra.gmra.mxu0 %v3418_v52 }
  0x89   :  { %v426_v55 = vld [vmem:[#allocation3 + $0xa40] sm:$0xff]  ;;  %724 = vmatpush.msrb.mxu0 %v362_v54  ;;  %v119_v54 = vld [vmem:[#allocation3 + $0xa8] sm:$0xff] }
  0x8a   :  { %v490_v56 = vld [vmem:[#allocation3 + $0xc40] sm:$0xff]  ;;  %747 = vmatpush.msrb.mxu1 %v426_v55  ;;  %v183_v55 = vld [vmem:[#allocation3 + $0x2a8] sm:$0xff] }
  0x8b   :  { %v558_v57 = vld [vmem:[#allocation3 + $0xe60] sm:$0xff]  ;;  %770 = vmatpush.msrb.mxu2 %v490_v56  ;;  %v247_v56 = vld [vmem:[#allocation3 + $0x4a8] sm:$0xff] }
  0x8c   :  { %v358_v59 = vld [vmem:[#allocation3 + $0x820] sm:$0xff]  ;;  %792 = vmatpush.msrb.mxu3 %v558_v57  ;;  %v315_v57 = vld [vmem:[#allocation3 + $0x6c8] sm:$0xff] }
  0x8d   :  { %v422_v60 = vld [vmem:[#allocation3 + $0xa20] sm:$0xff]  ;;  %725 = vmatpush.msrb.mxu0 %v358_v59  ;;  %v115_v59 = vld [vmem:[#allocation3 + $0x88] sm:$0xff] }
  0x8e   :  { %v486_v61 = vld [vmem:[#allocation3 + $0xc20] sm:$0xff]  ;;  %748 = vmatpush.msrb.mxu1 %v422_v60  ;;  %v179_v60 = vld [vmem:[#allocation3 + $0x288] sm:$0xff] }
  0x8f   :  { %v554_v62 = vld [vmem:[#allocation3 + $0xe40] sm:$0xff]  ;;  %771 = vmatpush.msrb.mxu2 %v486_v61  ;;  %v243_v61 = vld [vmem:[#allocation3 + $0x488] sm:$0xff] }
  0x90   :  { %v354_v63 = vld [vmem:[#allocation3 + $0x800] sm:$0xff]  ;;  %793 = vmatpush.msrb.mxu3 %v554_v62  ;;  %v311_v62 = vld [vmem:[#allocation3 + $0x6a8] sm:$0xff] }
  0x91   :  { %v418_v0 = vld [vmem:[#allocation3 + $0xa00] sm:$0xff]  ;;  %726 = vmatpush.msrb.mxu0 %v354_v63  ;;  %v111_v63 = vld [vmem:[#allocation3 + $0x68] sm:$0xff] }
  0x92   :  { %v482_v1 = vld [vmem:[#allocation3 + $0xc00] sm:$0xff]  ;;  %749 = vmatpush.msrb.mxu1 %v418_v0  ;;  %v175_v0 = vld [vmem:[#allocation3 + $0x268] sm:$0xff] }
  0x93   :  { %v550_v2 = vld [vmem:[#allocation3 + $0xe20] sm:$0xff]  ;;  %772 = vmatpush.msrb.mxu2 %v482_v1  ;;  %803 = vmatpush.msra.mxu0 %v159_v4  ;;  %v239_v1 = vld [vmem:[#allocation3 + $0x468] sm:$0xff] }
  0x94   :  { %794 = vmatpush.msrb.mxu3 %v550_v2  ;;  %v546_v7 = vld [vmem:[#allocation3 + $0xe00] sm:$0xff]  ;;  %826 = vmatpush.msra.mxu1 %v223_v5  ;;  %v307_v2 = vld [vmem:[#allocation3 + $0x688] sm:$0xff] }
  0x95   :  { %v3442_v8 = vld [vmem:[%s3998_s0 + $0x40] sm:$0xff]  ;;  %849 = vmatpush.msra.mxu2 %v287_v6  ;;  %804 = vmatpush.msra.mxu0 %v155_v10  ;;  %v107_v4 = vld [vmem:[#allocation3 + $0x48] sm:$0xff] }
  0x96   :  { %795 = vmatpush.msrb.mxu3 %v546_v7  ;;  %638 = vmatmul.f32.gmra.mxu0 %v3442_v8  ;;  %v3466_v28 = vld [vmem:[%s3998_s0 + $0x20] sm:$0xff]  ;;  %v171_v5 = vld [vmem:[#allocation3 + $0x248] sm:$0xff] }
  0x97   :  { %827 = vmatpush.msra.mxu1 %v219_v11  ;;  %850 = vmatpush.msra.mxu2 %v283_v12  ;;  %v235_v6 = vld [vmem:[#allocation3 + $0x448] sm:$0xff] }
  0x98   :  { %872 = vmatpush.msra.mxu3 %v351_v13  ;;  %805 = vmatpush.msra.mxu0 %v151_v15  ;;  %v303_v7 = vld [vmem:[#allocation3 + $0x668] sm:$0xff] }
  0x99   :  { %828 = vmatpush.msra.mxu1 %v215_v16  ;;  %851 = vmatpush.msra.mxu2 %v279_v17  ;;  %v103_v10 = vld [vmem:[#allocation3 + $0x28] sm:$0xff] }
  0x9a   :  { %873 = vmatpush.msra.mxu3 %v347_v18  ;;  %806 = vmatpush.msra.mxu0 %v147_v19  ;;  %v167_v11 = vld [vmem:[#allocation3 + $0x228] sm:$0xff]  ;;  %v3485_v19 = vld [vmem:[%s3998_s0 + $0x70] sm:$0xff] }
  0x9b   :  { %829 = vmatpush.msra.mxu1 %v211_v20  ;;  %852 = vmatpush.msra.mxu2 %v275_v21  ;;  %v231_v12 = vld [vmem:[#allocation3 + $0x428] sm:$0xff] }
  0x9c   :  { %874 = vmatpush.msra.mxu3 %v343_v22  ;;  %773 = vmatmul.f32.vlgmr.msrb.gmra.mxu2 %v3461_v23  ;;  %v299_v13 = vld [vmem:[#allocation3 + $0x648] sm:$0xff] }
  0x9d   :  { %807 = vmatpush.msra.mxu0 %v143_v24  ;;  %830 = vmatpush.msra.mxu1 %v207_v25  ;;  %v99_v15 = vld [vmem:[#allocation3 + $0x8] sm:$0xff]  ;;  %v3490_v25 = vld [vmem:[%s3998_s0 + $0x60] sm:$0xff] }
  0x9e   :  { %853 = vmatpush.msra.mxu2 %v271_v26  ;;  %875 = vmatpush.msra.mxu3 %v339_v27  ;;  %v163_v16 = vld [vmem:[#allocation3 + $0x208] sm:$0xff]  ;;  %v3496_v26 = vld [vmem:[%s3998_s0 + $0x78] sm:$0xff] }
  0x9f   :  { %727 = vmatmul.f32.vlgmr.msrb.gmra.mxu0 %v3466_v28  ;;  %796 = vmatmul.f32.vlgmr.msrb.gmra.mxu3 %v3472_v29  ;;  %v227_v17 = vld [vmem:[#allocation3 + $0x408] sm:$0xff] }
  0xa0   :  { %808 = vmatpush.msra.mxu0 %v139_v30  ;;  %831 = vmatpush.msra.mxu1 %v203_v31  ;;  %v295_v18 = vld [vmem:[#allocation3 + $0x628] sm:$0xff] }
  0xa1   :  { %854 = vmatpush.msra.mxu2 %v267_v32  ;;  %876 = vmatpush.msra.mxu3 %v335_v33  ;;  %v415_v20 = vld [vmem:[#allocation3 + $0x9e8] sm:$0xff] }
  0xa2   :  { %750 = vmatmul.f32.vlgmr.msrb.gmra.mxu1 %v3478_v34  ;;  %809 = vmatpush.msra.mxu0 %v135_v35  ;;  %v479_v21 = vld [vmem:[#allocation3 + $0xbe8] sm:$0xff] }
  0xa3   :  { %832 = vmatpush.msra.mxu1 %v199_v36  ;;  %855 = vmatpush.msra.mxu2 %v263_v37  ;;  %v543_v22 = vld [vmem:[#allocation3 + $0xde8] sm:$0xff] }
  0xa4   :  { %877 = vmatpush.msra.mxu3 %v331_v38  ;;  %810 = vmatpush.msra.mxu0 %v131_v39  ;;  %v291_v24 = vld [vmem:[#allocation3 + $0x608] sm:$0xff] }
  0xa5   :  { %833 = vmatpush.msra.mxu1 %v195_v40  ;;  %856 = vmatpush.msra.mxu2 %v259_v41  ;;  %v411_v27 = vld [vmem:[#allocation3 + $0x9c8] sm:$0xff] }
  0xa6   :  { %878 = vmatpush.msra.mxu3 %v327_v42  ;;  %811 = vmatpush.msra.mxu0 %v127_v43  ;;  %v475_v30 = vld [vmem:[#allocation3 + $0xbc8] sm:$0xff] }
  0xa7   :  { %834 = vmatpush.msra.mxu1 %v191_v44  ;;  %857 = vmatpush.msra.mxu2 %v255_v45  ;;  %v539_v31 = vld [vmem:[#allocation3 + $0xdc8] sm:$0xff] }
  0xa8   :  { %879 = vmatpush.msra.mxu3 %v323_v46  ;;  %812 = vmatpush.msra.mxu0 %v123_v48  ;;  %v607_v32 = vld [vmem:[#allocation3 + $0xfe8] sm:$0xff] }
  0xa9   :  { %835 = vmatpush.msra.mxu1 %v187_v49  ;;  %858 = vmatpush.msra.mxu2 %v251_v50  ;;  %v3502_v33 = vld [vmem:[%s3998_s0 + $0x68] sm:$0xff] }
  0xaa   :  { %880 = vmatpush.msra.mxu3 %v319_v51  ;;  %813 = vmatpush.msra.mxu0 %v119_v54  ;;  %v407_v35 = vld [vmem:[#allocation3 + $0x9a8] sm:$0xff] }
  0xab   :  { %836 = vmatpush.msra.mxu1 %v183_v55  ;;  %859 = vmatpush.msra.mxu2 %v247_v56  ;;  %v471_v36 = vld [vmem:[#allocation3 + $0xba8] sm:$0xff] }
  0xac   :  { %881 = vmatpush.msra.mxu3 %v315_v57  ;;  %814 = vmatpush.msra.mxu0 %v115_v59  ;;  %v535_v37 = vld [vmem:[#allocation3 + $0xda8] sm:$0xff] }
  0xad   :  { %837 = vmatpush.msra.mxu1 %v179_v60  ;;  %860 = vmatpush.msra.mxu2 %v243_v61  ;;  %v603_v38 = vld [vmem:[#allocation3 + $0xfc8] sm:$0xff] }
  0xae   :  { %882 = vmatpush.msra.mxu3 %v311_v62  ;;  %815 = vmatpush.msra.mxu0 %v111_v63  ;;  %v403_v39 = vld [vmem:[#allocation3 + $0x988] sm:$0xff] }
  0xaf   :  { %838 = vmatpush.msra.mxu1 %v175_v0  ;;  %861 = vmatpush.msra.mxu2 %v239_v1  ;;  %v467_v40 = vld [vmem:[#allocation3 + $0xb88] sm:$0xff] }
  0xb0   :  { %883 = vmatpush.msra.mxu3 %v307_v2  ;;  %816 = vmatpush.msra.mxu0 %v107_v4  ;;  %v531_v41 = vld [vmem:[#allocation3 + $0xd88] sm:$0xff] }
  0xb1   :  { %839 = vmatpush.msra.mxu1 %v171_v5  ;;  %862 = vmatpush.msra.mxu2 %v235_v6  ;;  %v599_v42 = vld [vmem:[#allocation3 + $0xfa8] sm:$0xff] }
  0xb2   :  { %884 = vmatpush.msra.mxu3 %v303_v7  ;;  %817 = vmatpush.msra.mxu0 %v103_v10  ;;  %v399_v43 = vld [vmem:[#allocation3 + $0x968] sm:$0xff] }
  0xb3   :  { %840 = vmatpush.msra.mxu1 %v167_v11  ;;  %863 = vmatpush.msra.mxu2 %v231_v12  ;;  %v463_v44 = vld [vmem:[#allocation3 + $0xb68] sm:$0xff] }
  0xb4   :  { %885 = vmatpush.msra.mxu3 %v299_v13  ;;  %818 = vmatpush.msra.mxu0 %v99_v15  ;;  %v527_v45 = vld [vmem:[#allocation3 + $0xd68] sm:$0xff] }
  0xb5   :  { %841 = vmatpush.msra.mxu1 %v163_v16  ;;  %864 = vmatpush.msra.mxu2 %v227_v17  ;;  %v595_v46 = vld [vmem:[#allocation3 + $0xf88] sm:$0xff] }
  0xb6   :  { %886 = vmatpush.msra.mxu3 %v295_v18  ;;  %776 = vmatmul.f32.gmra.mxu2 %v3485_v19  ;;  %v395_v48 = vld [vmem:[#allocation3 + $0x948] sm:$0xff] }
  0xb7   :  { %895 = vmatpush.msrb.mxu0 %v415_v20  ;;  %918 = vmatpush.msrb.mxu1 %v479_v21  ;;  %v459_v49 = vld [vmem:[#allocation3 + $0xb48] sm:$0xff] }
  0xb8   :  { %941 = vmatpush.msrb.mxu2 %v543_v22  ;;  %887 = vmatpush.msra.mxu3 %v291_v24  ;;  %v523_v50 = vld [vmem:[#allocation3 + $0xd48] sm:$0xff] }
  0xb9   :  { %730 = vmatmul.f32.gmra.mxu0 %v3490_v25  ;;  %799 = vmatmul.f32.gmra.mxu3 %v3496_v26  ;;  %v591_v51 = vld [vmem:[#allocation3 + $0xf68] sm:$0xff] }
  0xba   :  { %896 = vmatpush.msrb.mxu0 %v411_v27  ;;  %919 = vmatpush.msrb.mxu1 %v475_v30  ;;  %v391_v54 = vld [vmem:[#allocation3 + $0x928] sm:$0xff] }
  0xbb   :  { %942 = vmatpush.msrb.mxu2 %v539_v31  ;;  %964 = vmatpush.msrb.mxu3 %v607_v32  ;;  %v455_v55 = vld [vmem:[#allocation3 + $0xb28] sm:$0xff] }
  0xbc   :  { %753 = vmatmul.f32.gmra.mxu1 %v3502_v33  ;;  %897 = vmatpush.msrb.mxu0 %v407_v35  ;;  %v519_v56 = vld [vmem:[#allocation3 + $0xd28] sm:$0xff] }
  0xbd   :  { %920 = vmatpush.msrb.mxu1 %v471_v36  ;;  %943 = vmatpush.msrb.mxu2 %v535_v37  ;;  %v587_v57 = vld [vmem:[#allocation3 + $0xf48] sm:$0xff] }
  0xbe   :  { %965 = vmatpush.msrb.mxu3 %v603_v38  ;;  %898 = vmatpush.msrb.mxu0 %v403_v39  ;;  %v387_v59 = vld [vmem:[#allocation3 + $0x908] sm:$0xff]  ;;  %v160_v39 = vld [vmem:[#allocation3 + $0x1f0] sm:$0xff] }
  0xbf   :  { %921 = vmatpush.msrb.mxu1 %v467_v40  ;;  %944 = vmatpush.msrb.mxu2 %v531_v41  ;;  %v451_v60 = vld [vmem:[#allocation3 + $0xb08] sm:$0xff]  ;;  %v224_v40 = vld [vmem:[#allocation3 + $0x3f0] sm:$0xff] }
  0xc0   :  { %966 = vmatpush.msrb.mxu3 %v599_v42  ;;  %899 = vmatpush.msrb.mxu0 %v399_v43  ;;  %v515_v61 = vld [vmem:[#allocation3 + $0xd08] sm:$0xff]  ;;  %v288_v41 = vld [vmem:[#allocation3 + $0x5f0] sm:$0xff] }
  0xc1   :  { %922 = vmatpush.msrb.mxu1 %v463_v44  ;;  %945 = vmatpush.msrb.mxu2 %v527_v45  ;;  %v583_v62 = vld [vmem:[#allocation3 + $0xf28] sm:$0xff]  ;;  %v220_v43 = vld [vmem:[#allocation3 + $0x3d0] sm:$0xff] }
  0xc2   :  { %967 = vmatpush.msrb.mxu3 %v595_v46  ;;  %900 = vmatpush.msrb.mxu0 %v395_v48  ;;  %v383_v63 = vld [vmem:[#allocation3 + $0x8e8] sm:$0xff]  ;;  %v284_v44 = vld [vmem:[#allocation3 + $0x5d0] sm:$0xff] }
  0xc3   :  { %923 = vmatpush.msrb.mxu1 %v459_v49  ;;  %946 = vmatpush.msrb.mxu2 %v523_v50  ;;  %v447_v0 = vld [vmem:[#allocation3 + $0xae8] sm:$0xff]  ;;  %v352_v45 = vld [vmem:[#allocation3 + $0x7f0] sm:$0xff] }
  0xc4   :  { %968 = vmatpush.msrb.mxu3 %v591_v51  ;;  %901 = vmatpush.msrb.mxu0 %v391_v54  ;;  %v511_v1 = vld [vmem:[#allocation3 + $0xce8] sm:$0xff]  ;;  %v280_v46 = vld [vmem:[#allocation3 + $0x5b0] sm:$0xff] }
  0xc5   :  { %924 = vmatpush.msrb.mxu1 %v455_v55  ;;  %947 = vmatpush.msrb.mxu2 %v519_v56  ;;  %v579_v2 = vld [vmem:[#allocation3 + $0xf08] sm:$0xff]  ;;  %v348_v48 = vld [vmem:[#allocation3 + $0x7d0] sm:$0xff] }
  0xc6   :  { %969 = vmatpush.msrb.mxu3 %v587_v57  ;;  %902 = vmatpush.msrb.mxu0 %v387_v59  ;;  %v379_v4 = vld [vmem:[#allocation3 + $0x8c8] sm:$0xff]  ;;  %v212_v49 = vld [vmem:[#allocation3 + $0x390] sm:$0xff] }
  0xc7   :  { %925 = vmatpush.msrb.mxu1 %v451_v60  ;;  %948 = vmatpush.msrb.mxu2 %v515_v61  ;;  %v443_v5 = vld [vmem:[#allocation3 + $0xac8] sm:$0xff]  ;;  %v276_v50 = vld [vmem:[#allocation3 + $0x590] sm:$0xff] }
  0xc8   :  { %970 = vmatpush.msrb.mxu3 %v583_v62  ;;  %903 = vmatpush.msrb.mxu0 %v383_v63  ;;  %v507_v6 = vld [vmem:[#allocation3 + $0xcc8] sm:$0xff]  ;;  %v344_v51 = vld [vmem:[#allocation3 + $0x7b0] sm:$0xff] }
  0xc9   :  { %926 = vmatpush.msrb.mxu1 %v447_v0  ;;  %v575_v7 = vld [vmem:[#allocation3 + $0xee8] sm:$0xff]  ;;  %949 = vmatpush.msrb.mxu2 %v511_v1  ;;  %v144_v54 = vld [vmem:[#allocation3 + $0x170] sm:$0xff] }
  0xca   :  { %971 = vmatpush.msrb.mxu3 %v579_v2  ;;  %v375_v10 = vld [vmem:[#allocation3 + $0x8a8] sm:$0xff]  ;;  %904 = vmatpush.msrb.mxu0 %v379_v4  ;;  %v208_v55 = vld [vmem:[#allocation3 + $0x370] sm:$0xff] }
  0xcb   :  { %927 = vmatpush.msrb.mxu1 %v443_v5  ;;  %v439_v11 = vld [vmem:[#allocation3 + $0xaa8] sm:$0xff]  ;;  %950 = vmatpush.msrb.mxu2 %v507_v6  ;;  %v272_v56 = vld [vmem:[#allocation3 + $0x570] sm:$0xff] }
  0xcc   :  { %v503_v12 = vld [vmem:[#allocation3 + $0xca8] sm:$0xff]  ;;  %972 = vmatpush.msrb.mxu3 %v575_v7  ;;  %865 = vmatmul.f32.vlgmr.msra.gmra.mxu2 %v3413_v47  ;;  %v340_v57 = vld [vmem:[#allocation3 + $0x790] sm:$0xff] }
  0xcd   :  { %v571_v13 = vld [vmem:[#allocation3 + $0xec8] sm:$0xff]  ;;  %905 = vmatpush.msrb.mxu0 %v375_v10  ;;  %928 = vmatpush.msrb.mxu1 %v439_v11  ;;  %v204_v59 = vld [vmem:[#allocation3 + $0x350] sm:$0xff] }
  0xce   :  { %v371_v15 = vld [vmem:[#allocation3 + $0x888] sm:$0xff]  ;;  %951 = vmatpush.msrb.mxu2 %v503_v12  ;;  %973 = vmatpush.msrb.mxu3 %v571_v13  ;;  %v268_v60 = vld [vmem:[#allocation3 + $0x550] sm:$0xff] }
  0xcf   :  { %v435_v16 = vld [vmem:[#allocation3 + $0xa88] sm:$0xff]  ;;  %819 = vmatmul.f32.vlgmr.msra.gmra.mxu0 %v3418_v52  ;;  %888 = vmatmul.f32.vlgmr.msra.gmra.mxu3 %v3424_v53  ;;  %v336_v61 = vld [vmem:[#allocation3 + $0x770] sm:$0xff] }
  0xd0   :  { %v499_v17 = vld [vmem:[#allocation3 + $0xc88] sm:$0xff]  ;;  %906 = vmatpush.msrb.mxu0 %v371_v15  ;;  %929 = vmatpush.msrb.mxu1 %v435_v16  ;;  %v264_v62 = vld [vmem:[#allocation3 + $0x530] sm:$0xff] }
  0xd1   :  { %v567_v18 = vld [vmem:[#allocation3 + $0xea8] sm:$0xff]  ;;  %952 = vmatpush.msrb.mxu2 %v499_v17  ;;  %842 = vmatmul.f32.vlgmr.msra.gmra.mxu1 %v3430_v58  ;;  %v332_v63 = vld [vmem:[#allocation3 + $0x750] sm:$0xff] }
  0xd2   :  { %v367_v20 = vld [vmem:[#allocation3 + $0x868] sm:$0xff]  ;;  %974 = vmatpush.msrb.mxu3 %v567_v18  ;;  %v196_v0 = vld [vmem:[#allocation3 + $0x310] sm:$0xff] }
  0xd3   :  { %v431_v21 = vld [vmem:[#allocation3 + $0xa68] sm:$0xff]  ;;  %907 = vmatpush.msrb.mxu0 %v367_v20  ;;  %v260_v1 = vld [vmem:[#allocation3 + $0x510] sm:$0xff] }
  0xd4   :  { %v495_v22 = vld [vmem:[#allocation3 + $0xc68] sm:$0xff]  ;;  %930 = vmatpush.msrb.mxu1 %v431_v21  ;;  %868 = vmatmul.f32.gmra.mxu2 %v3437_v3  ;;  %v156_v3 = vld [vmem:[#allocation3 + $0x1d0] sm:$0xff] }
  0xd5   :  { %v563_v24 = vld [vmem:[#allocation3 + $0xe88] sm:$0xff]  ;;  %953 = vmatpush.msrb.mxu2 %v495_v22  ;;  %v328_v2 = vld [vmem:[#allocation3 + $0x730] sm:$0xff] }
  0xd6   :  { %v363_v47 = vld [vmem:[#allocation3 + $0x848] sm:$0xff]  ;;  %975 = vmatpush.msrb.mxu3 %v563_v24  ;;  %v128_v4 = vld [vmem:[#allocation3 + $0xf0] sm:$0xff] }
  0xd7   :  { %v427_v27 = vld [vmem:[#allocation3 + $0xa48] sm:$0xff]  ;;  %908 = vmatpush.msrb.mxu0 %v363_v47  ;;  %891 = vmatmul.f32.gmra.mxu3 %v3448_v9  ;;  %v216_v9 = vld [vmem:[#allocation3 + $0x3b0] sm:$0xff] }
  0xd8   :  { %v491_v30 = vld [vmem:[#allocation3 + $0xc48] sm:$0xff]  ;;  %931 = vmatpush.msrb.mxu1 %v427_v27  ;;  %822 = vmatmul.f32.gmra.mxu0 %v3442_v8  ;;  %v152_v8 = vld [vmem:[#allocation3 + $0x1b0] sm:$0xff] }
  0xd9   :  { %v559_v31 = vld [vmem:[#allocation3 + $0xe68] sm:$0xff]  ;;  %954 = vmatpush.msrb.mxu2 %v491_v30  ;;  %845 = vmatmul.f32.gmra.mxu1 %v3454_v14  ;;  %v148_v14 = vld [vmem:[#allocation3 + $0x190] sm:$0xff] }
  0xda   :  { %v359_v52 = vld [vmem:[#allocation3 + $0x828] sm:$0xff]  ;;  %976 = vmatpush.msrb.mxu3 %v559_v31  ;;  %v192_v5 = vld [vmem:[#allocation3 + $0x2f0] sm:$0xff] }
  0xdb   :  { %v423_v53 = vld [vmem:[#allocation3 + $0xa28] sm:$0xff]  ;;  %909 = vmatpush.msrb.mxu0 %v359_v52  ;;  %v256_v6 = vld [vmem:[#allocation3 + $0x4f0] sm:$0xff] }
  0xdc   :  { %v487_v32 = vld [vmem:[#allocation3 + $0xc28] sm:$0xff]  ;;  %932 = vmatpush.msrb.mxu1 %v423_v53  ;;  %v324_v7 = vld [vmem:[#allocation3 + $0x710] sm:$0xff] }
  0xdd   :  { %v555_v35 = vld [vmem:[#allocation3 + $0xe48] sm:$0xff]  ;;  %955 = vmatpush.msrb.mxu2 %v487_v32  ;;  %v124_v10 = vld [vmem:[#allocation3 + $0xd0] sm:$0xff] }
  0xde   :  { %v355_v58 = vld [vmem:[#allocation3 + $0x808] sm:$0xff]  ;;  %977 = vmatpush.msrb.mxu3 %v555_v35  ;;  %v188_v11 = vld [vmem:[#allocation3 + $0x2d0] sm:$0xff] }
  0xdf   :  { %v419_v36 = vld [vmem:[#allocation3 + $0xa08] sm:$0xff]  ;;  %910 = vmatpush.msrb.mxu0 %v355_v58  ;;  %v252_v12 = vld [vmem:[#allocation3 + $0x4d0] sm:$0xff] }
  0xe0   :  { %v483_v37 = vld [vmem:[#allocation3 + $0xc08] sm:$0xff]  ;;  %933 = vmatpush.msrb.mxu1 %v419_v36  ;;  %911 = vmatmul.f32.vlgmr.msrb.gmra.mxu0 %v3466_v28  ;;  %v136_v28 = vld [vmem:[#allocation3 + $0x130] sm:$0xff] }
  0xe1   :  { %v551_v38 = vld [vmem:[#allocation3 + $0xe28] sm:$0xff]  ;;  %956 = vmatpush.msrb.mxu2 %v483_v37  ;;  %987 = vmatpush.msra.mxu0 %v160_v39  ;;  %v320_v13 = vld [vmem:[#allocation3 + $0x6f0] sm:$0xff] }
  0xe2   :  { %v547_v42 = vld [vmem:[#allocation3 + $0xe08] sm:$0xff]  ;;  %978 = vmatpush.msrb.mxu3 %v551_v38  ;;  %1010 = vmatpush.msra.mxu1 %v224_v40  ;;  %v120_v15 = vld [vmem:[#allocation3 + $0xb0] sm:$0xff] }
  0xe3   :  { %1033 = vmatpush.msra.mxu2 %v288_v41  ;;  %988 = vmatpush.msra.mxu0 %v156_v3  ;;  %v184_v16 = vld [vmem:[#allocation3 + $0x2b0] sm:$0xff] }
  0xe4   :  { %979 = vmatpush.msrb.mxu3 %v547_v42  ;;  %1011 = vmatpush.msra.mxu1 %v220_v43  ;;  %v248_v17 = vld [vmem:[#allocation3 + $0x4b0] sm:$0xff] }
  0xe5   :  { %1034 = vmatpush.msra.mxu2 %v284_v44  ;;  %989 = vmatpush.msra.mxu0 %v152_v8  ;;  %v316_v18 = vld [vmem:[#allocation3 + $0x6d0] sm:$0xff] }
  0xe6   :  { %1056 = vmatpush.msra.mxu3 %v352_v45  ;;  %957 = vmatmul.f32.vlgmr.msrb.gmra.mxu2 %v3461_v23  ;;  %v140_v23 = vld [vmem:[#allocation3 + $0x150] sm:$0xff] }
  0xe7   :  { %1012 = vmatpush.msra.mxu1 %v216_v9  ;;  %1035 = vmatpush.msra.mxu2 %v280_v46  ;;  %v116_v20 = vld [vmem:[#allocation3 + $0x90] sm:$0xff] }
  0xe8   :  { %1057 = vmatpush.msra.mxu3 %v348_v48  ;;  %990 = vmatpush.msra.mxu0 %v148_v14  ;;  %v180_v21 = vld [vmem:[#allocation3 + $0x290] sm:$0xff] }
  0xe9   :  { %980 = vmatmul.f32.vlgmr.msrb.gmra.mxu3 %v3472_v29  ;;  %1013 = vmatpush.msra.mxu1 %v212_v49  ;;  %v200_v29 = vld [vmem:[#allocation3 + $0x330] sm:$0xff] }
  0xea   :  { %1036 = vmatpush.msra.mxu2 %v276_v50  ;;  %1058 = vmatpush.msra.mxu3 %v344_v51  ;;  %v244_v22 = vld [vmem:[#allocation3 + $0x490] sm:$0xff] }
  0xeb   :  { %934 = vmatmul.f32.vlgmr.msrb.gmra.mxu1 %v3478_v34  ;;  %991 = vmatpush.msra.mxu0 %v144_v54  ;;  %v132_v34 = vld [vmem:[#allocation3 + $0x110] sm:$0xff] }
  0xec   :  { %1014 = vmatpush.msra.mxu1 %v208_v55  ;;  %1037 = vmatpush.msra.mxu2 %v272_v56  ;;  %v312_v24 = vld [vmem:[#allocation3 + $0x6b0] sm:$0xff] }
  0xed   :  { %1059 = vmatpush.msra.mxu3 %v340_v57  ;;  %992 = vmatpush.msra.mxu0 %v140_v23  ;;  %v112_v47 = vld [vmem:[#allocation3 + $0x70] sm:$0xff] }
  0xee   :  { %1015 = vmatpush.msra.mxu1 %v204_v59  ;;  %1038 = vmatpush.msra.mxu2 %v268_v60  ;;  %v176_v27 = vld [vmem:[#allocation3 + $0x270] sm:$0xff]  ;;  %v3522_v60 = vld [vmem:[#allocation8] ss:$4 sm:$0xf] }
  0xef   :  { %1060 = vmatpush.msra.mxu3 %v336_v61  ;;  %960 = vmatmul.f32.gmra.mxu2 %v3485_v19  ;;  %v240_v30 = vld [vmem:[#allocation3 + $0x470] sm:$0xff] }
  0xf0   :  { %993 = vmatpush.msra.mxu0 %v136_v28  ;;  %1016 = vmatpush.msra.mxu1 %v200_v29  ;;  %v308_v31 = vld [vmem:[#allocation3 + $0x690] sm:$0xff] }
  0xf1   :  { %1039 = vmatpush.msra.mxu2 %v264_v62  ;;  %1061 = vmatpush.msra.mxu3 %v332_v63  ;;  %v108_v52 = vld [vmem:[#allocation3 + $0x50] sm:$0xff] }
  0xf2   :  { %914 = vmatmul.f32.gmra.mxu0 %v3490_v25  ;;  %983 = vmatmul.f32.gmra.mxu3 %v3496_v26  ;;  %v172_v53 = vld [vmem:[#allocation3 + $0x250] sm:$0xff] }
  0xf3   :  { %994 = vmatpush.msra.mxu0 %v132_v34  ;;  %1017 = vmatpush.msra.mxu1 %v196_v0  ;;  %v236_v32 = vld [vmem:[#allocation3 + $0x450] sm:$0xff] }
  0xf4   :  { %1040 = vmatpush.msra.mxu2 %v260_v1  ;;  %1062 = vmatpush.msra.mxu3 %v328_v2  ;;  %v304_v35 = vld [vmem:[#allocation3 + $0x670] sm:$0xff]  ;;  %v611_v1 = vperm.slane %v3522_v60, 0 }
  0xf5   :  { %937 = vmatmul.f32.gmra.mxu1 %v3502_v33  ;;  %995 = vmatpush.msra.mxu0 %v128_v4  ;;  %v104_v58 = vld [vmem:[#allocation3 + $0x30] sm:$0xff] }
  0xf6   :  { %1018 = vmatpush.msra.mxu1 %v192_v5  ;;  %1041 = vmatpush.msra.mxu2 %v256_v6  ;;  %v168_v36 = vld [vmem:[#allocation3 + $0x230] sm:$0xff] }
  0xf7   :  { %1063 = vmatpush.msra.mxu3 %v324_v7  ;;  %996 = vmatpush.msra.mxu0 %v124_v10  ;;  %v232_v37 = vld [vmem:[#allocation3 + $0x430] sm:$0xff]  ;;  %v659_v7 = vpop.f32.mrf.mxu1 }
  0xf8   :  { %1019 = vmatpush.msra.mxu1 %v188_v11  ;;  %1042 = vmatpush.msra.mxu2 %v252_v12  ;;  %v300_v38 = vld [vmem:[#allocation3 + $0x650] sm:$0xff]  ;;  %v682_v12 = vpop.f32.mrf.mxu2 }
  0xf9   :  { %1064 = vmatpush.msra.mxu3 %v320_v13  ;;  %997 = vmatpush.msra.mxu0 %v120_v15  ;;  %v100_v39 = vld [vmem:[#allocation3 + $0x10] sm:$0xff] }
  0xfa   :  { %1020 = vmatpush.msra.mxu1 %v184_v16  ;;  %1043 = vmatpush.msra.mxu2 %v248_v17  ;;  %v164_v40 = vld [vmem:[#allocation3 + $0x210] sm:$0xff] }
  0xfb   :  { %1065 = vmatpush.msra.mxu3 %v316_v18  ;;  %998 = vmatpush.msra.mxu0 %v116_v20  ;;  %v228_v41 = vld [vmem:[#allocation3 + $0x410] sm:$0xff] }
  0xfc   :  { %1021 = vmatpush.msra.mxu1 %v180_v21  ;;  %1044 = vmatpush.msra.mxu2 %v244_v22  ;;  %v296_v42 = vld [vmem:[#allocation3 + $0x630] sm:$0xff]  ;;  %v705_v21 = vpop.f32.mrf.mxu3 }
  0xfd   :  { %1066 = vmatpush.msra.mxu3 %v312_v24  ;;  %999 = vmatpush.msra.mxu0 %v112_v47  ;;  %v416_v3 = vld [vmem:[#allocation3 + $0x9f0] sm:$0xff] }
  0xfe   :  { %1022 = vmatpush.msra.mxu1 %v176_v27  ;;  %1045 = vmatpush.msra.mxu2 %v240_v30  ;;  %v480_v43 = vld [vmem:[#allocation3 + $0xbf0] sm:$0xff] }
  0xff   :  { %1067 = vmatpush.msra.mxu3 %v308_v31  ;;  %1000 = vmatpush.msra.mxu0 %v108_v52  ;;  %v544_v44 = vld [vmem:[#allocation3 + $0xdf0] sm:$0xff] }
 0x100   :  { %1023 = vmatpush.msra.mxu1 %v172_v53  ;;  %1046 = vmatpush.msra.mxu2 %v236_v32  ;;  %v292_v45 = vld [vmem:[#allocation3 + $0x610] sm:$0xff]  ;;  %v3538_v53 = vld [vmem:[%s3998_s0] sm:$0xff] }
 0x101   :  { %1068 = vmatpush.msra.mxu3 %v304_v35  ;;  %1001 = vmatpush.msra.mxu0 %v104_v58  ;;  %v412_v8 = vld [vmem:[#allocation3 + $0x9d0] sm:$0xff]  ;;  %v3544_v35 = vld [vmem:[%s3998_s0 + $0x18] sm:$0xff] }
 0x102   :  { %1024 = vmatpush.msra.mxu1 %v168_v36  ;;  %1047 = vmatpush.msra.mxu2 %v232_v37  ;;  %v476_v9 = vld [vmem:[#allocation3 + $0xbd0] sm:$0xff] }
 0x103   :  { %1069 = vmatpush.msra.mxu3 %v300_v38  ;;  %1002 = vmatpush.msra.mxu0 %v100_v39  ;;  %v540_v46 = vld [vmem:[#allocation3 + $0xdd0] sm:$0xff] }
 0x104   :  { %1025 = vmatpush.msra.mxu1 %v164_v40  ;;  %1048 = vmatpush.msra.mxu2 %v228_v41  ;;  %v608_v48 = vld [vmem:[#allocation3 + $0xff0] sm:$0xff]  ;;  %v3547_v40 = vpop.f32.mrf.mxu1  ;;  %v3552_v41 = vld [vmem:[%s3998_s0 + $0x8] sm:$0xff] }
 0x105   :  { %1070 = vmatpush.msra.mxu3 %v296_v42  ;;  %1079 = vmatpush.msrb.mxu0 %v416_v3  ;;  %v408_v14 = vld [vmem:[#allocation3 + $0x9b0] sm:$0xff]  ;;  %v636_v63 = vpop.f32.mrf.mxu0 }
 0x106   :  { %1102 = vmatpush.msrb.mxu1 %v480_v43  ;;  %1125 = vmatpush.msrb.mxu2 %v544_v44  ;;  %v472_v49 = vld [vmem:[#allocation3 + $0xbb0] sm:$0xff]  ;;  %v637_v16 = vadd.f32 %v636_v63, %v611_v1  ;;  %v3555_v43 = vpop.f32.mrf.mxu2 }
 0x107   :  { %1071 = vmatpush.msra.mxu3 %v292_v45  ;;  %1080 = vmatpush.msrb.mxu0 %v412_v8  ;;  %v536_v50 = vld [vmem:[#allocation3 + $0xdb0] sm:$0xff] }
 0x108   :  { %1103 = vmatpush.msrb.mxu1 %v476_v9  ;;  %v604_v51 = vld [vmem:[#allocation3 + $0xfd0] sm:$0xff]  ;;  %1126 = vmatpush.msrb.mxu2 %v540_v46  ;;  %v660_v27 = vadd.f32 %v659_v7, %v637_v16 }
 0x109   :  { %1148 = vmatpush.msrb.mxu3 %v608_v48  ;;  %v404_v54 = vld [vmem:[#allocation3 + $0x990] sm:$0xff]  ;;  %1081 = vmatpush.msrb.mxu0 %v408_v14  ;;  %v3557_v14 = vpop.f32.mrf.mxu3 }
 0x10a   :  { %v468_v55 = vld [vmem:[#allocation3 + $0xb90] sm:$0xff]  ;;  %1104 = vmatpush.msrb.mxu1 %v472_v49  ;;  %1127 = vmatpush.msrb.mxu2 %v536_v50  ;;  %v683_v39 = vadd.f32 %v682_v12, %v660_v27 }
 0x10b   :  { %v532_v56 = vld [vmem:[#allocation3 + $0xd90] sm:$0xff]  ;;  %1149 = vmatpush.msrb.mxu3 %v604_v51  ;;  %1082 = vmatpush.msrb.mxu0 %v404_v54 }
 0x10c   :  { %v600_v57 = vld [vmem:[#allocation3 + $0xfb0] sm:$0xff]  ;;  %1105 = vmatpush.msrb.mxu1 %v468_v55  ;;  %1128 = vmatpush.msrb.mxu2 %v532_v56  ;;  %v706_v48 = vadd.f32 %v705_v21, %v683_v39  ;;  %v157_v21 = vld [vmem:[#allocation3 + $0x1d8] sm:$0xff]  ;;  %v1363_v39 = vlaneseq }
 0x10d   :  { %v400_v23 = vld [vmem:[#allocation3 + $0x970] sm:$0xff]  ;;  %1150 = vmatpush.msrb.mxu3 %v600_v57  ;;  %1003 = vmatmul.f32.vlgmr.msra.gmra.mxu0 %v3538_v53  ;;  %v3568_v57 = vld [vmem:[%s3998_s0 + $0x40] sm:$0xff] }
 0x10e   :  { %v464_v59 = vld [vmem:[#allocation3 + $0xb70] sm:$0xff]  ;;  %1083 = vmatpush.msrb.mxu0 %v400_v23  ;;  %1072 = vmatmul.f32.vlgmr.msra.gmra.mxu3 %v3544_v35  ;;  %vm3610_vm0 = vcmp.lt.s32.totalorder %v1363_v39, 512  ;;  %v113_v39 = vld [vmem:[#allocation3 + $0x78] sm:$0xff] }
 0x10f   :  { %v528_v61 = vld [vmem:[#allocation3 + $0xd70] sm:$0xff]  ;;  %1106 = vmatpush.msrb.mxu1 %v464_v59 }
 0x110   :  { %v596_v28 = vld [vmem:[#allocation3 + $0xf90] sm:$0xff]  ;;  %1129 = vmatpush.msrb.mxu2 %v528_v61  ;;  %1026 = vmatmul.f32.vlgmr.msra.gmra.mxu1 %v3552_v41  ;;  %v3574_v61 = vld [vmem:[%s3998_s0 + $0x58] sm:$0xff] }
 0x111   :  { %v396_v29 = vld [vmem:[#allocation3 + $0x950] sm:$0xff]  ;;  %1151 = vmatpush.msrb.mxu3 %v596_v28 }
 0x112   :  { %v460_v62 = vld [vmem:[#allocation3 + $0xb50] sm:$0xff]  ;;  %1084 = vmatpush.msrb.mxu0 %v396_v29 }
 0x113   :  { %v524_v34 = vld [vmem:[#allocation3 + $0xd50] sm:$0xff]  ;;  %1107 = vmatpush.msrb.mxu1 %v460_v62  ;;  %v3533_v52 = vpop.f32.mrf.mxu0 }
 0x114   :  { %v592_v0 = vld [vmem:[#allocation3 + $0xf70] sm:$0xff]  ;;  %1130 = vmatpush.msrb.mxu2 %v524_v34 }
 0x115   :  { %v392_v2 = vld [vmem:[#allocation3 + $0x930] sm:$0xff]  ;;  %1152 = vmatpush.msrb.mxu3 %v592_v0  ;;  %1006 = vmatmul.f32.gmra.mxu0 %v3568_v57  ;;  %v3580_v0 = vld [vmem:[%s3998_s0 + $0x48] sm:$0xff] }
 0x116   :  { %v456_v4 = vld [vmem:[#allocation3 + $0xb30] sm:$0xff]  ;;  %1085 = vmatpush.msrb.mxu0 %v392_v2  ;;  %1075 = vmatmul.f32.gmra.mxu3 %v3574_v61 }
 0x117   :  { %v520_v5 = vld [vmem:[#allocation3 + $0xd30] sm:$0xff]  ;;  %1108 = vmatpush.msrb.mxu1 %v456_v4 }
 0x118   :  { %v588_v6 = vld [vmem:[#allocation3 + $0xf50] sm:$0xff]  ;;  %1131 = vmatpush.msrb.mxu2 %v520_v5  ;;  %1029 = vmatmul.f32.gmra.mxu1 %v3580_v0 }
 0x119   :  { %v388_v10 = vld [vmem:[#allocation3 + $0x910] sm:$0xff]  ;;  %1153 = vmatpush.msrb.mxu3 %v588_v6 }
 0x11a   :  { %v452_v11 = vld [vmem:[#allocation3 + $0xb10] sm:$0xff]  ;;  %1086 = vmatpush.msrb.mxu0 %v388_v10 }
 0x11b   :  { %v516_v13 = vld [vmem:[#allocation3 + $0xd10] sm:$0xff]  ;;  %1109 = vmatpush.msrb.mxu1 %v452_v11  ;;  %v161_v11 = vld [vmem:[#allocation3 + $0x1f8] sm:$0xff] }
 0x11c   :  { %v584_v15 = vld [vmem:[#allocation3 + $0xf30] sm:$0xff]  ;;  %1132 = vmatpush.msrb.mxu2 %v516_v13  ;;  %v728_v56 = vpop.f32.mrf.mxu0  ;;  %v225_v13 = vld [vmem:[#allocation3 + $0x3f8] sm:$0xff] }
 0x11d   :  { %v384_v17 = vld [vmem:[#allocation3 + $0x8f0] sm:$0xff]  ;;  %1154 = vmatpush.msrb.mxu3 %v584_v15  ;;  %v729_v59 = vadd.f32 %v728_v56, %v706_v48  ;;  %v289_v15 = vld [vmem:[#allocation3 + $0x5f8] sm:$0xff] }
 0x11e   :  { %v448_v18 = vld [vmem:[#allocation3 + $0xaf0] sm:$0xff]  ;;  %1087 = vmatpush.msrb.mxu0 %v384_v17  ;;  %v145_v48 = vld [vmem:[#allocation3 + $0x178] sm:$0xff] }
 0x11f   :  { %v512_v20 = vld [vmem:[#allocation3 + $0xcf0] sm:$0xff]  ;;  %1110 = vmatpush.msrb.mxu1 %v448_v18  ;;  %v751_v34 = vpop.f32.mrf.mxu1  ;;  %v774_v6 = vpop.f32.mrf.mxu2  ;;  %v141_v56 = vld [vmem:[#allocation3 + $0x158] sm:$0xff] }
 0x120   :  { %v580_v22 = vld [vmem:[#allocation3 + $0xf10] sm:$0xff]  ;;  %1133 = vmatpush.msrb.mxu2 %v512_v20  ;;  %v752_v5 = vadd.f32 %v751_v34, %v729_v59  ;;  %v269_v59 = vld [vmem:[#allocation3 + $0x558] sm:$0xff] }
 0x121   :  { %v3530_v24 = vld [vmem:[%s3998_s0 + $0x10] sm:$0xff]  ;;  %1155 = vmatpush.msrb.mxu3 %v580_v22  ;;  %v221_v22 = vld [vmem:[#allocation3 + $0x3d8] sm:$0xff] }
 0x122   :  { %1049 = vmatmul.f32.vlgmr.msra.gmra.mxu2 %v3530_v24  ;;  %v380_v47 = vld [vmem:[#allocation3 + $0x8d0] sm:$0xff]  ;;  %v775_v12 = vadd.f32 %v774_v6, %v752_v5  ;;  %v797_v16 = vpop.f32.mrf.mxu3  ;;  %v133_v34 = vld [vmem:[#allocation3 + $0x118] sm:$0xff] }
 0x123   :  { %v444_v30 = vld [vmem:[#allocation3 + $0xad0] sm:$0xff]  ;;  %1088 = vmatpush.msrb.mxu0 %v380_v47  ;;  %v285_v47 = vld [vmem:[#allocation3 + $0x5d8] sm:$0xff] }
 0x124   :  { %v508_v31 = vld [vmem:[#allocation3 + $0xcd0] sm:$0xff]  ;;  %1111 = vmatpush.msrb.mxu1 %v444_v30  ;;  %v798_v18 = vadd.f32 %v797_v16, %v775_v12  ;;  %v3592_v30 = vld [vmem:[%s3998_s0 + $0x20] sm:$0xff]  ;;  %v193_v5 = vld [vmem:[#allocation3 + $0x2f8] sm:$0xff] }
 0x125   :  { %v576_v32 = vld [vmem:[#allocation3 + $0xef0] sm:$0xff]  ;;  %1134 = vmatpush.msrb.mxu2 %v508_v31  ;;  %v353_v31 = vld [vmem:[#allocation3 + $0x7f8] sm:$0xff] }
 0x126   :  { %v376_v58 = vld [vmem:[#allocation3 + $0x8b0] sm:$0xff]  ;;  %1156 = vmatpush.msrb.mxu3 %v576_v32  ;;  %v1355_v27 = vmax.f32 %v798_v18, 0.0  ;;  %v640_v32 = vadd.f32 %v3533_v52, %v611_v1  ;;  %v3607_v1 = vld [vmem:[%s3998_s0 + $0x28] sm:$0xff]  ;;  %v149_v52 = vld [vmem:[#allocation3 + $0x198] sm:$0xff] }
 0x127   :  { %v440_v36 = vld [vmem:[#allocation3 + $0xab0] sm:$0xff]  ;;  %1089 = vmatpush.msrb.mxu0 %v376_v58  ;;  %v3601_v58 = vld [vmem:[%s3998_s0 + $0x38] sm:$0xff] }
 0x128   :  { %v504_v37 = vld [vmem:[#allocation3 + $0xcb0] sm:$0xff]  ;;  %1112 = vmatpush.msrb.mxu1 %v440_v36  ;;  %v153_v36 = vld [vmem:[#allocation3 + $0x1b8] sm:$0xff] }
 0x129   :  { %v572_v38 = vld [vmem:[#allocation3 + $0xed0] sm:$0xff]  ;;  %1135 = vmatpush.msrb.mxu2 %v504_v37  ;;  %v217_v37 = vld [vmem:[#allocation3 + $0x3b8] sm:$0xff] }
 0x12a   :  { %v372_v42 = vld [vmem:[#allocation3 + $0x890] sm:$0xff]  ;;  %1157 = vmatpush.msrb.mxu3 %v572_v38  ;;  %v1386_v38 = vrot.slane %v1355_v27, 7  ;;  %v253_v12 = vld [vmem:[#allocation3 + $0x4d8] sm:$0xff] }
 0x12b   :  { %v436_v3 = vld [vmem:[#allocation3 + $0xa90] sm:$0xff]  ;;  %1090 = vmatpush.msrb.mxu0 %v372_v42  ;;  %v281_v42 = vld [vmem:[#allocation3 + $0x5b8] sm:$0xff] }
 0x12c   :  { %v500_v44 = vld [vmem:[#allocation3 + $0xc90] sm:$0xff]  ;;  %1113 = vmatpush.msrb.mxu1 %v436_v3  ;;  %v349_v3 = vld [vmem:[#allocation3 + $0x7d8] sm:$0xff]  ;;  %1402 = vst [vmem:[#allocation2] sm:$0xfe] %v1386_v38 }
 0x12d   :  { %v568_v45 = vld [vmem:[#allocation3 + $0xeb0] sm:$0xff]  ;;  %1136 = vmatpush.msrb.mxu2 %v500_v44  ;;  %v213_v44 = vld [vmem:[#allocation3 + $0x398] sm:$0xff]  ;;  %1406 = vst [vmem:[#allocation2 + $0x20] sm:$0x1] %v1386_v38 }
 0x12e   :  { %v368_v8 = vld [vmem:[#allocation3 + $0x870] sm:$0xff]  ;;  %1158 = vmatpush.msrb.mxu3 %v568_v45  ;;  %v121_v16 = vld [vmem:[#allocation3 + $0xb8] sm:$0xff] }
 0x12f   :  { %v432_v9 = vld [vmem:[#allocation3 + $0xa70] sm:$0xff]  ;;  %1091 = vmatpush.msrb.mxu0 %v368_v8  ;;  %v663_v8 = vadd.f32 %v3547_v40, %v640_v32  ;;  %v341_v40 = vld [vmem:[#allocation3 + $0x798] sm:$0xff] }
 0x130   :  { %v496_v46 = vld [vmem:[#allocation3 + $0xc70] sm:$0xff]  ;;  %1114 = vmatpush.msrb.mxu1 %v432_v9  ;;  %v277_v9 = vld [vmem:[#allocation3 + $0x598] sm:$0xff] }
 0x131   :  { %v564_v49 = vld [vmem:[#allocation3 + $0xe90] sm:$0xff]  ;;  %1137 = vmatpush.msrb.mxu2 %v496_v46  ;;  %v345_v46 = vld [vmem:[#allocation3 + $0x7b8] sm:$0xff] }
 0x132   :  { %v3562_v50 = vld [vmem:[%s3998_s0 + $0x50] sm:$0xff]  ;;  %1159 = vmatpush.msrb.mxu3 %v564_v49  ;;  %v3367_v49 = vmov 0.0   ;;  %v117_v27 = vld [vmem:[#allocation3 + $0x98] sm:$0xff] }
 0x133   :  { %1052 = vmatmul.f32.gmra.mxu2 %v3562_v50  ;;  %v364_v51 = vld [vmem:[#allocation3 + $0x850] sm:$0xff]  ;;  %1367 = vst.msk [vmem:[#allocation2] ss:$8 sm:$0xf] %vm3610_vm0, %v3367_v49  ;;  %v109_v45 = vld [vmem:[#allocation3 + $0x58] sm:$0xff] }
 0x134   :  { %v428_v54 = vld [vmem:[#allocation3 + $0xa50] sm:$0xff]  ;;  %1092 = vmatpush.msrb.mxu0 %v364_v51  ;;  %v209_v51 = vld [vmem:[#allocation3 + $0x378] sm:$0xff]  ;;  %1370 = vst.msk [vmem:[#allocation2 + $0x40] ss:$8 sm:$0xf] %vm3610_vm0, %v3367_v49 }
 0x135   :  { %v492_v55 = vld [vmem:[#allocation3 + $0xc50] sm:$0xff]  ;;  %1115 = vmatpush.msrb.mxu1 %v428_v54  ;;  %v273_v54 = vld [vmem:[#allocation3 + $0x578] sm:$0xff]  ;;  %1373 = vst.msk [vmem:[#allocation2 + $0x21] ss:$8 sm:$0xf] %vm3610_vm0, %v3367_v49 }
 0x136   :  { %v560_v23 = vld [vmem:[#allocation3 + $0xe70] sm:$0xff]  ;;  %1138 = vmatpush.msrb.mxu2 %v492_v55  ;;  %v686_v55 = vadd.f32 %v3555_v43, %v663_v8  ;;  %1376 = vst.msk [vmem:[#allocation2 + $0x61] ss:$8 sm:$0xf] %vm3610_vm0, %v3367_v49  ;;  %v201_v43 = vld [vmem:[#allocation3 + $0x338] sm:$0xff]  ;;  %v731_v6 = vpop.f32.mrf.mxu0 }
 0x137   :  { %v360_v28 = vld [vmem:[#allocation3 + $0x830] sm:$0xff]  ;;  %1160 = vmatpush.msrb.mxu3 %v560_v23  ;;  %v205_v23 = vld [vmem:[#allocation3 + $0x358] sm:$0xff] }
 0x138   :  { %v424_v29 = vld [vmem:[#allocation3 + $0xa30] sm:$0xff]  ;;  %1093 = vmatpush.msrb.mxu0 %v360_v28  ;;  %v337_v28 = vld [vmem:[#allocation3 + $0x778] sm:$0xff] }
 0x139   :  { %v488_v62 = vld [vmem:[#allocation3 + $0xc30] sm:$0xff]  ;;  %1116 = vmatpush.msrb.mxu1 %v424_v29  ;;  %v137_v29 = vld [vmem:[#allocation3 + $0x138] sm:$0xff] }
 0x13a   :  { %v556_v63 = vld [vmem:[#allocation3 + $0xe50] sm:$0xff]  ;;  %1139 = vmatpush.msrb.mxu2 %v488_v62  ;;  %v265_v62 = vld [vmem:[#allocation3 + $0x538] sm:$0xff] }
 0x13b   :  { %v356_v2 = vld [vmem:[#allocation3 + $0x810] sm:$0xff]  ;;  %1161 = vmatpush.msrb.mxu3 %v556_v63  ;;  %v333_v63 = vld [vmem:[#allocation3 + $0x758] sm:$0xff] }
 0x13c   :  { %v420_v4 = vld [vmem:[#allocation3 + $0xa10] sm:$0xff]  ;;  %1094 = vmatpush.msrb.mxu0 %v356_v2  ;;  %v197_v2 = vld [vmem:[#allocation3 + $0x318] sm:$0xff]  ;;  %v800_v38 = vpop.f32.mrf.mxu3 }
 0x13d   :  { %v484_v7 = vld [vmem:[#allocation3 + $0xc10] sm:$0xff]  ;;  %1117 = vmatpush.msrb.mxu1 %v420_v4  ;;  %1095 = vmatmul.f32.vlgmr.msrb.gmra.mxu0 %v3592_v30  ;;  %v329_v4 = vld [vmem:[#allocation3 + $0x738] sm:$0xff] }
 0x13e   :  { %v552_v10 = vld [vmem:[#allocation3 + $0xe30] sm:$0xff]  ;;  %1140 = vmatpush.msrb.mxu2 %v484_v7  ;;  %1171 = vmatpush.msra.mxu0 %v161_v11  ;;  %v325_v7 = vld [vmem:[#allocation3 + $0x718] sm:$0xff] }
 0x13f   :  { %1162 = vmatpush.msrb.mxu3 %v552_v10  ;;  %v548_v17 = vld [vmem:[#allocation3 + $0xe10] sm:$0xff]  ;;  %1194 = vmatpush.msra.mxu1 %v225_v13  ;;  %v125_v11 = vld [vmem:[#allocation3 + $0xd8] sm:$0xff] }
 0x140   :  { %v3586_v20 = vld [vmem:[%s3998_s0 + $0x30] sm:$0xff]  ;;  %1217 = vmatpush.msra.mxu2 %v289_v15  ;;  %1172 = vmatpush.msra.mxu0 %v157_v21  ;;  %v321_v13 = vld [vmem:[#allocation3 + $0x6f8] sm:$0xff]  ;;  %v754_v15 = vpop.f32.mrf.mxu1  ;;  %v777_v21 = vpop.f32.mrf.mxu2 }
 0x141   :  { %1141 = vmatmul.f32.vlgmr.msrb.gmra.mxu2 %v3586_v20  ;;  %1163 = vmatpush.msrb.mxu3 %v548_v17  ;;  %v185_v17 = vld [vmem:[#allocation3 + $0x2b8] sm:$0xff] }
 0x142   :  { %1164 = vmatmul.f32.vlgmr.msrb.gmra.mxu3 %v3601_v58  ;;  %1195 = vmatpush.msra.mxu1 %v221_v22  ;;  %v249_v22 = vld [vmem:[#allocation3 + $0x4b8] sm:$0xff] }
 0x143   :  { %1218 = vmatpush.msra.mxu2 %v285_v47  ;;  %1240 = vmatpush.msra.mxu3 %v353_v31  ;;  %v317_v47 = vld [vmem:[#allocation3 + $0x6d8] sm:$0xff] }
 0x144   :  { %1118 = vmatmul.f32.vlgmr.msrb.gmra.mxu1 %v3607_v1  ;;  %1173 = vmatpush.msra.mxu0 %v153_v36  ;;  %v181_v31 = vld [vmem:[#allocation3 + $0x298] sm:$0xff] }
 0x145   :  { %1196 = vmatpush.msra.mxu1 %v217_v37  ;;  %1219 = vmatpush.msra.mxu2 %v281_v42  ;;  %v245_v36 = vld [vmem:[#allocation3 + $0x498] sm:$0xff] }
 0x146   :  { %1241 = vmatpush.msra.mxu3 %v349_v3  ;;  %1174 = vmatpush.msra.mxu0 %v149_v52  ;;  %v313_v37 = vld [vmem:[#allocation3 + $0x6b8] sm:$0xff] }
 0x147   :  { %1197 = vmatpush.msra.mxu1 %v213_v44  ;;  %1220 = vmatpush.msra.mxu2 %v277_v9  ;;  %v177_v42 = vld [vmem:[#allocation3 + $0x278] sm:$0xff] }
 0x148   :  { %1242 = vmatpush.msra.mxu3 %v345_v46  ;;  %1175 = vmatpush.msra.mxu0 %v145_v48  ;;  %v241_v52 = vld [vmem:[#allocation3 + $0x478] sm:$0xff] }
 0x149   :  { %1144 = vmatmul.f32.gmra.mxu2 %v3485_v19  ;;  %1198 = vmatpush.msra.mxu1 %v209_v51  ;;  %v709_v19 = vadd.f32 %v3557_v14, %v686_v55  ;;  %v257_v14 = vld [vmem:[#allocation3 + $0x4f8] sm:$0xff] }
 0x14a   :  { %1221 = vmatpush.msra.mxu2 %v273_v54  ;;  %1243 = vmatpush.msra.mxu3 %v341_v40  ;;  %v309_v44 = vld [vmem:[#allocation3 + $0x698] sm:$0xff] }
 0x14b   :  { %1098 = vmatmul.f32.gmra.mxu0 %v3490_v25  ;;  %1167 = vmatmul.f32.gmra.mxu3 %v3496_v26  ;;  %v261_v25 = vld [vmem:[#allocation3 + $0x518] sm:$0xff]  ;;  %v732_v10 = vadd.f32 %v731_v6, %v709_v19 }
 0x14c   :  { %1176 = vmatpush.msra.mxu0 %v141_v56  ;;  %1199 = vmatpush.msra.mxu1 %v205_v23  ;;  %v129_v26 = vld [vmem:[#allocation3 + $0xf8] sm:$0xff] }
 0x14d   :  { %1222 = vmatpush.msra.mxu2 %v269_v59  ;;  %1244 = vmatpush.msra.mxu3 %v337_v28  ;;  %v755_v18 = vadd.f32 %v754_v15, %v732_v10  ;;  %v173_v8 = vld [vmem:[#allocation3 + $0x258] sm:$0xff]  ;;  %v820_v10 = vpop.f32.mrf.mxu0 }
 0x14e   :  { %1121 = vmatmul.f32.gmra.mxu1 %v3502_v33  ;;  %1177 = vmatpush.msra.mxu0 %v137_v29  ;;  %v189_v33 = vld [vmem:[#allocation3 + $0x2d8] sm:$0xff] }
 0x14f   :  { %1200 = vmatpush.msra.mxu1 %v201_v43  ;;  %1223 = vmatpush.msra.mxu2 %v265_v62  ;;  %v778_v32 = vadd.f32 %v777_v21, %v755_v18  ;;  %v237_v46 = vld [vmem:[#allocation3 + $0x458] sm:$0xff]  ;;  %v843_v18 = vpop.f32.mrf.mxu1 }
 0x150   :  { %1245 = vmatpush.msra.mxu3 %v333_v63  ;;  %1178 = vmatpush.msra.mxu0 %v133_v34  ;;  %v305_v48 = vld [vmem:[#allocation3 + $0x678] sm:$0xff] }
 0x151   :  { %1201 = vmatpush.msra.mxu1 %v197_v2  ;;  %1224 = vmatpush.msra.mxu2 %v261_v25  ;;  %v801_v3 = vadd.f32 %v800_v38, %v778_v32  ;;  %v105_v49 = vld [vmem:[#allocation3 + $0x38] sm:$0xff] }
 0x152   :  { %1246 = vmatpush.msra.mxu3 %v329_v4  ;;  %1179 = vmatpush.msra.mxu0 %v129_v26  ;;  %v169_v51 = vld [vmem:[#allocation3 + $0x238] sm:$0xff] }
 0x153   :  { %1202 = vmatpush.msra.mxu1 %v193_v5  ;;  %1225 = vmatpush.msra.mxu2 %v257_v14  ;;  %v1359_v9 = vmax.f32 %v801_v3, 0.0  ;;  %v233_v40 = vld [vmem:[#allocation3 + $0x438] sm:$0xff] }
 0x154   :  { %1247 = vmatpush.msra.mxu3 %v325_v7  ;;  %1180 = vmatpush.msra.mxu0 %v125_v11  ;;  %v301_v55 = vld [vmem:[#allocation3 + $0x658] sm:$0xff] }
 0x155   :  { %1203 = vmatpush.msra.mxu1 %v189_v33  ;;  %1226 = vmatpush.msra.mxu2 %v253_v12  ;;  %v1390_v54 = vrot.slane %v1359_v9, 7  ;;  %v101_v56 = vld [vmem:[#allocation3 + $0x18] sm:$0xff]  ;;  %v612_v12 = vperm.slane %v3522_v60, 1 }
 0x156   :  { %1248 = vmatpush.msra.mxu3 %v321_v13  ;;  %1181 = vmatpush.msra.mxu0 %v121_v16  ;;  %v165_v23 = vld [vmem:[#allocation3 + $0x218] sm:$0xff] }
 0x157   :  { %1204 = vmatpush.msra.mxu1 %v185_v17  ;;  %1227 = vmatpush.msra.mxu2 %v249_v22  ;;  %1410 = vst [vmem:[#allocation2 + $0x40] sm:$0xfe] %v1390_v54  ;;  %v229_v59 = vld [vmem:[#allocation3 + $0x418] sm:$0xff]  ;;  %v821_v32 = vadd.f32 %v820_v10, %v612_v12 }
 0x158   :  { %1249 = vmatpush.msra.mxu3 %v317_v47  ;;  %1182 = vmatpush.msra.mxu0 %v117_v27  ;;  %v297_v28 = vld [vmem:[#allocation3 + $0x638] sm:$0xff]  ;;  %1414 = vst [vmem:[#allocation2 + $0x60] sm:$0x1] %v1390_v54  ;;  %v866_v47 = vpop.f32.mrf.mxu2  ;;  %v846_v54 = vpop.f32.mrf.mxu1 }
 0x159   :  { %1205 = vmatpush.msra.mxu1 %v181_v31  ;;  %1228 = vmatpush.msra.mxu2 %v245_v36  ;;  %v417_v29 = vld [vmem:[#allocation3 + $0x9f8] sm:$0xff] }
 0x15a   :  { %1250 = vmatpush.msra.mxu3 %v313_v37  ;;  %1183 = vmatpush.msra.mxu0 %v113_v39  ;;  %v481_v43 = vld [vmem:[#allocation3 + $0xbf8] sm:$0xff]  ;;  %v889_v39 = vpop.f32.mrf.mxu3 }
 0x15b   :  { %1206 = vmatpush.msra.mxu1 %v177_v42  ;;  %1229 = vmatpush.msra.mxu2 %v241_v52  ;;  %v545_v19 = vld [vmem:[#allocation3 + $0xdf8] sm:$0xff] }
 0x15c   :  { %1251 = vmatpush.msra.mxu3 %v309_v44  ;;  %1184 = vmatpush.msra.mxu0 %v109_v45  ;;  %v293_v62 = vld [vmem:[#allocation3 + $0x618] sm:$0xff]  ;;  %v844_v45 = vadd.f32 %v843_v18, %v821_v32 }
 0x15d   :  { %1207 = vmatpush.msra.mxu1 %v173_v8  ;;  %1230 = vmatpush.msra.mxu2 %v237_v46  ;;  %v413_v63 = vld [vmem:[#allocation3 + $0x9d8] sm:$0xff]  ;;  %v823_v8 = vpop.f32.mrf.mxu0 }
 0x15e   :  { %1252 = vmatpush.msra.mxu3 %v305_v48  ;;  %1185 = vmatpush.msra.mxu0 %v105_v49  ;;  %v477_v34 = vld [vmem:[#allocation3 + $0xbd8] sm:$0xff] }
 0x15f   :  { %1208 = vmatpush.msra.mxu1 %v169_v51  ;;  %1231 = vmatpush.msra.mxu2 %v233_v40  ;;  %v541_v2 = vld [vmem:[#allocation3 + $0xdd8] sm:$0xff]  ;;  %v867_v51 = vadd.f32 %v866_v47, %v844_v45  ;;  %v1680_v45 = vld [vmem:[#allocation5 + $0x5e0] sm:$0xff] }
 0x160   :  { %1253 = vmatpush.msra.mxu3 %v301_v55  ;;  %1186 = vmatpush.msra.mxu0 %v101_v56  ;;  %v609_v25 = vld [vmem:[#allocation3 + $0xff8] sm:$0xff]  ;;  %v869_v56 = vpop.f32.mrf.mxu2 }
 0x161   :  { %1209 = vmatpush.msra.mxu1 %v165_v23  ;;  %1232 = vmatpush.msra.mxu2 %v229_v59  ;;  %v409_v4 = vld [vmem:[#allocation3 + $0x9b8] sm:$0xff] }
 0x162   :  { %1254 = vmatpush.msra.mxu3 %v297_v28  ;;  %1263 = vmatpush.msrb.mxu0 %v417_v29  ;;  %v473_v26 = vld [vmem:[#allocation3 + $0xbb8] sm:$0xff]  ;;  %v824_v28 = vadd.f32 %v823_v8, %v612_v12 }
 0x163   :  { %1286 = vmatpush.msrb.mxu1 %v481_v43  ;;  %1309 = vmatpush.msrb.mxu2 %v545_v19  ;;  %v537_v5 = vld [vmem:[#allocation3 + $0xdb8] sm:$0xff]  ;;  %v890_v19 = vadd.f32 %v889_v39, %v867_v51  ;;  %v1644_v51 = vld [vmem:[#allocation5 + $0x4c0] sm:$0xff] }
 0x164   :  { %1255 = vmatpush.msra.mxu3 %v293_v62  ;;  %1264 = vmatpush.msrb.mxu0 %v413_v63  ;;  %v605_v6 = vld [vmem:[#allocation3 + $0xfd8] sm:$0xff]  ;;  %v892_v62 = vpop.f32.mrf.mxu3 }
 0x165   :  { %1287 = vmatpush.msrb.mxu1 %v477_v34  ;;  %1310 = vmatpush.msrb.mxu2 %v541_v2  ;;  %v405_v14 = vld [vmem:[#allocation3 + $0x998] sm:$0xff] }
 0x166   :  { %1332 = vmatpush.msrb.mxu3 %v609_v25  ;;  %v469_v7 = vld [vmem:[#allocation3 + $0xb98] sm:$0xff]  ;;  %1265 = vmatpush.msrb.mxu0 %v409_v4  ;;  %v847_v4 = vadd.f32 %v846_v54, %v824_v28  ;;  %v3251_v28 = vld [vmem:[%s3998_s0 + $0x70] sm:$0xff] }
 0x167   :  { %1288 = vmatpush.msrb.mxu1 %v473_v26  ;;  %v533_v11 = vld [vmem:[#allocation3 + $0xd98] sm:$0xff]  ;;  %1311 = vmatpush.msrb.mxu2 %v537_v5 }
 0x168   :  { %v601_v33 = vld [vmem:[#allocation3 + $0xfb8] sm:$0xff]  ;;  %1333 = vmatpush.msrb.mxu3 %v605_v6  ;;  %1266 = vmatpush.msrb.mxu0 %v405_v14  ;;  %v935_v10 = vpop.f32.mrf.mxu1 }
 0x169   :  { %v401_v13 = vld [vmem:[#allocation3 + $0x978] sm:$0xff]  ;;  %1289 = vmatpush.msrb.mxu1 %v469_v7  ;;  %1312 = vmatpush.msrb.mxu2 %v533_v11  ;;  %v870_v7 = vadd.f32 %v869_v56, %v847_v4  ;;  %v1642_v56 = vld [vmem:[#allocation5 + $0x4b0] sm:$0xff]  ;;  %v1668_v4 = vld [vmem:[#allocation5 + $0x580] sm:$0xff] }
 0x16a   :  { %v465_v15 = vld [vmem:[#allocation3 + $0xb78] sm:$0xff]  ;;  %1334 = vmatpush.msrb.mxu3 %v601_v33  ;;  %1267 = vmatpush.msrb.mxu0 %v401_v13  ;;  %v958_v13 = vpop.f32.mrf.mxu2 }
 0x16b   :  { %v529_v16 = vld [vmem:[#allocation3 + $0xd78] sm:$0xff]  ;;  %1290 = vmatpush.msrb.mxu1 %v465_v15  ;;  %1187 = vmatmul.f32.vlgmr.msra.gmra.mxu0 %v3538_v53 }
 0x16c   :  { %v597_v17 = vld [vmem:[#allocation3 + $0xf98] sm:$0xff]  ;;  %1313 = vmatpush.msrb.mxu2 %v529_v16  ;;  %1210 = vmatmul.f32.vlgmr.msra.gmra.mxu1 %v3552_v41  ;;  %v981_v47 = vpop.f32.mrf.mxu3 }
 0x16d   :  { %v397_v21 = vld [vmem:[#allocation3 + $0x958] sm:$0xff]  ;;  %1335 = vmatpush.msrb.mxu3 %v597_v17  ;;  %1233 = vmatmul.f32.vlgmr.msra.gmra.mxu2 %v3530_v24 }
 0x16e   :  { %v461_v22 = vld [vmem:[#allocation3 + $0xb58] sm:$0xff]  ;;  %1268 = vmatpush.msrb.mxu0 %v397_v21  ;;  %1256 = vmatmul.f32.vlgmr.msra.gmra.mxu3 %v3544_v35  ;;  %v912_v35 = vpop.f32.mrf.mxu0 }
 0x16f   :  { %v525_v27 = vld [vmem:[#allocation3 + $0xd58] sm:$0xff]  ;;  %1291 = vmatpush.msrb.mxu1 %v461_v22  ;;  %v913_v5 = vadd.f32 %v912_v35, %v890_v19  ;;  %v893_v22 = vadd.f32 %v892_v62, %v870_v7  ;;  %v3252_v19 = vld [vmem:[%s3998_s0 + $0x68] sm:$0xff]  ;;  %v1704_v35 = vld [vmem:[#allocation5 + $0x6a0] sm:$0xff] }
 0x170   :  { %v593_v31 = vld [vmem:[#allocation3 + $0xf78] sm:$0xff]  ;;  %1314 = vmatpush.msrb.mxu2 %v525_v27  ;;  %v1700_v7 = vld [vmem:[#allocation5 + $0x680] sm:$0xff] }
 0x171   :  { %v393_v60 = vld [vmem:[#allocation3 + $0x938] sm:$0xff]  ;;  %1336 = vmatpush.msrb.mxu3 %v593_v31  ;;  %v936_v12 = vadd.f32 %v935_v10, %v913_v5  ;;  %v1702_v5 = vld [vmem:[#allocation5 + $0x690] sm:$0xff] }
 0x172   :  { %v457_v36 = vld [vmem:[#allocation3 + $0xb38] sm:$0xff]  ;;  %1269 = vmatpush.msrb.mxu0 %v393_v60  ;;  %v1630_v10 = vld [vmem:[#allocation5 + $0x450] sm:$0xff] }
 0x173   :  { %v521_v37 = vld [vmem:[#allocation3 + $0xd38] sm:$0xff]  ;;  %1292 = vmatpush.msrb.mxu1 %v457_v36  ;;  %1190 = vmatmul.f32.gmra.mxu0 %v3568_v57  ;;  %v959_v18 = vadd.f32 %v958_v13, %v936_v12  ;;  %v1628_v12 = vld [vmem:[#allocation5 + $0x440] sm:$0xff] }
 0x174   :  { %v589_v38 = vld [vmem:[#allocation3 + $0xf58] sm:$0xff]  ;;  %1315 = vmatpush.msrb.mxu2 %v521_v37  ;;  %1213 = vmatmul.f32.gmra.mxu1 %v3580_v0  ;;  %v1650_v37 = vld [vmem:[#allocation5 + $0x4f0] sm:$0xff]  ;;  %v1660_v13 = vld [vmem:[#allocation5 + $0x540] sm:$0xff] }
 0x175   :  { %v389_v42 = vld [vmem:[#allocation3 + $0x918] sm:$0xff]  ;;  %1337 = vmatpush.msrb.mxu3 %v589_v38  ;;  %1236 = vmatmul.f32.gmra.mxu2 %v3562_v50  ;;  %v982_v32 = vadd.f32 %v981_v47, %v959_v18  ;;  %v1682_v38 = vld [vmem:[#allocation5 + $0x5f0] sm:$0xff]  ;;  %v984_v54 = vpop.f32.mrf.mxu3  ;;  %v1656_v47 = vld [vmem:[#allocation5 + $0x520] sm:$0xff] }
 0x176   :  { %v453_v3 = vld [vmem:[#allocation3 + $0xb18] sm:$0xff]  ;;  %1270 = vmatpush.msrb.mxu0 %v389_v42  ;;  %1259 = vmatmul.f32.gmra.mxu3 %v3574_v61  ;;  %v915_v36 = vpop.f32.mrf.mxu0 }
 0x177   :  { %v517_v52 = vld [vmem:[#allocation3 + $0xd18] sm:$0xff]  ;;  %1293 = vmatpush.msrb.mxu1 %v453_v3  ;;  %v1356_v61 = vmax.f32 %v982_v32, 0.0  ;;  %v916_v39 = vadd.f32 %v915_v36, %v893_v22  ;;  %v1624_v22 = vld [vmem:[#allocation5 + $0x420] sm:$0xff] }
 0x178   :  { %v585_v44 = vld [vmem:[#allocation3 + $0xf38] sm:$0xff]  ;;  %1316 = vmatpush.msrb.mxu2 %v517_v52  ;;  %v1648_v52 = vld [vmem:[#allocation5 + $0x4e0] sm:$0xff] }
 0x179   :  { %v385_v9 = vld [vmem:[#allocation3 + $0x8f8] sm:$0xff]  ;;  %1338 = vmatpush.msrb.mxu3 %v585_v44  ;;  %v1387_v3 = vrot.slane %v1356_v61, 7  ;;  %v938_v44 = vpop.f32.mrf.mxu1  ;;  %v1654_v61 = vld [vmem:[#allocation5 + $0x510] sm:$0xff] }
 0x17a   :  { %v449_v46 = vld [vmem:[#allocation3 + $0xaf8] sm:$0xff]  ;;  %1271 = vmatpush.msrb.mxu0 %v385_v9  ;;  %v939_v8 = vadd.f32 %v938_v44, %v916_v39  ;;  %v961_v9 = vpop.f32.mrf.mxu2  ;;  %v1620_v39 = vld [vmem:[#allocation5 + $0x400] sm:$0xff] }
 0x17b   :  { %v513_v48 = vld [vmem:[#allocation3 + $0xcf8] sm:$0xff]  ;;  %1294 = vmatpush.msrb.mxu1 %v449_v46  ;;  %1403 = vst [vmem:[#allocation2 + $0x8] sm:$0xfe] %v1387_v3  ;;  %v1714_v46 = vld [vmem:[#allocation5 + $0x6f0] sm:$0xff] }
 0x17c   :  { %v581_v49 = vld [vmem:[#allocation3 + $0xf18] sm:$0xff]  ;;  %1317 = vmatpush.msrb.mxu2 %v513_v48  ;;  %v1646_v48 = vld [vmem:[#allocation5 + $0x4d0] sm:$0xff]  ;;  %1407 = vst [vmem:[#allocation2 + $0x28] sm:$0x1] %v1387_v3 }
 0x17d   :  { %v381_v40 = vld [vmem:[#allocation3 + $0x8d8] sm:$0xff]  ;;  %1339 = vmatpush.msrb.mxu3 %v581_v49  ;;  %v962_v49 = vadd.f32 %v961_v9, %v939_v8 }
 0x17e   :  { %v445_v55 = vld [vmem:[#allocation3 + $0xad8] sm:$0xff]  ;;  %1272 = vmatpush.msrb.mxu0 %v381_v40  ;;  %v1676_v40 = vld [vmem:[#allocation5 + $0x5c0] sm:$0xff] }
 0x17f   :  { %v509_v23 = vld [vmem:[#allocation3 + $0xcd8] sm:$0xff]  ;;  %1295 = vmatpush.msrb.mxu1 %v445_v55  ;;  %v985_v55 = vadd.f32 %v984_v54, %v962_v49  ;;  %v1681_v49 = vld [vmem:[#allocation5 + $0x5e8] sm:$0xff] }
 0x180   :  { %v577_v59 = vld [vmem:[#allocation3 + $0xef8] sm:$0xff]  ;;  %1318 = vmatpush.msrb.mxu2 %v509_v23 }
 0x181   :  { %v377_v29 = vld [vmem:[#allocation3 + $0x8b8] sm:$0xff]  ;;  %1340 = vmatpush.msrb.mxu3 %v577_v59  ;;  %v1360_v23 = vmax.f32 %v985_v55, 0.0  ;;  %v1710_v59 = vld [vmem:[#allocation5 + $0x6d0] sm:$0xff] }
 0x182   :  { %v441_v53 = vld [vmem:[#allocation3 + $0xab8] sm:$0xff]  ;;  %1273 = vmatpush.msrb.mxu0 %v377_v29  ;;  %v1640_v29 = vld [vmem:[#allocation5 + $0x4a0] sm:$0xff] }
 0x183   :  { %v505_v24 = vld [vmem:[#allocation3 + $0xcb8] sm:$0xff]  ;;  %1296 = vmatpush.msrb.mxu1 %v441_v53  ;;  %v1672_v53 = vld [vmem:[#allocation5 + $0x5a0] sm:$0xff]  ;;  %v1559_v18 = vld [vmem:[#allocation2 + $0x28] sm:$0x1] }
 0x184   :  { %v573_v43 = vld [vmem:[#allocation3 + $0xed8] sm:$0xff]  ;;  %1319 = vmatpush.msrb.mxu2 %v505_v24  ;;  %v1391_v24 = vrot.slane %v1360_v23, 7  ;;  %v1591_v32 = vrot.slane %v1559_v18, 1 }
 0x185   :  { %v373_v63 = vld [vmem:[#allocation3 + $0x898] sm:$0xff]  ;;  %1341 = vmatpush.msrb.mxu3 %v573_v43  ;;  %v1708_v43 = vld [vmem:[#allocation5 + $0x6c0] sm:$0xff] }
 0x186   :  { %v437_v34 = vld [vmem:[#allocation3 + $0xa98] sm:$0xff]  ;;  %1274 = vmatpush.msrb.mxu0 %v373_v63  ;;  %v1638_v63 = vld [vmem:[#allocation5 + $0x490] sm:$0xff]  ;;  %1411 = vst [vmem:[#allocation2 + $0x48] sm:$0xfe] %v1391_v24 }
 0x187   :  { %v501_v2 = vld [vmem:[#allocation3 + $0xc98] sm:$0xff]  ;;  %1297 = vmatpush.msrb.mxu1 %v437_v34  ;;  %v1670_v34 = vld [vmem:[#allocation5 + $0x590] sm:$0xff]  ;;  %1415 = vst [vmem:[#allocation2 + $0x68] sm:$0x1] %v1391_v24  ;;  %v1677_v24 = vld [vmem:[#allocation5 + $0x5c8] sm:$0xff] }
 0x188   :  { %v569_v25 = vld [vmem:[#allocation3 + $0xeb8] sm:$0xff]  ;;  %1320 = vmatpush.msrb.mxu2 %v501_v2  ;;  %v1706_v2 = vld [vmem:[#allocation5 + $0x6b0] sm:$0xff] }
 0x189   :  { %v369_v41 = vld [vmem:[#allocation3 + $0x878] sm:$0xff]  ;;  %1342 = vmatpush.msrb.mxu3 %v569_v25  ;;  %v1636_v25 = vld [vmem:[#allocation5 + $0x480] sm:$0xff] }
 0x18a   :  { %v433_v26 = vld [vmem:[#allocation3 + $0xa78] sm:$0xff]  ;;  %1275 = vmatpush.msrb.mxu0 %v369_v41  ;;  %v1634_v41 = vld [vmem:[#allocation5 + $0x470] sm:$0xff] }
 0x18b   :  { %v497_v6 = vld [vmem:[#allocation3 + $0xc78] sm:$0xff]  ;;  %1298 = vmatpush.msrb.mxu1 %v433_v26  ;;  %v1666_v26 = vld [vmem:[#allocation5 + $0x570] sm:$0xff] }
 0x18c   :  { %v565_v14 = vld [vmem:[#allocation3 + $0xe98] sm:$0xff]  ;;  %1321 = vmatpush.msrb.mxu2 %v497_v6  ;;  %v1632_v6 = vld [vmem:[#allocation5 + $0x460] sm:$0xff] }
 0x18d   :  { %v365_v11 = vld [vmem:[#allocation3 + $0x858] sm:$0xff]  ;;  %1343 = vmatpush.msrb.mxu3 %v565_v14  ;;  %v1664_v14 = vld [vmem:[#allocation5 + $0x560] sm:$0xff] }
 0x18e   :  { %v429_v33 = vld [vmem:[#allocation3 + $0xa58] sm:$0xff]  ;;  %1276 = vmatpush.msrb.mxu0 %v365_v11  ;;  %v1662_v11 = vld [vmem:[#allocation5 + $0x550] sm:$0xff]  ;;  %v1567_v8 = vld [vmem:[#allocation2 + $0x68] sm:$0x1] }
 0x18f   :  { %v493_v15 = vld [vmem:[#allocation3 + $0xc58] sm:$0xff]  ;;  %1299 = vmatpush.msrb.mxu1 %v429_v33  ;;  %v1698_v33 = vld [vmem:[#allocation5 + $0x670] sm:$0xff]  ;;  %v1603_v54 = vrot.slane %v1567_v8, 1 }
 0x190   :  { %v561_v16 = vld [vmem:[#allocation3 + $0xe78] sm:$0xff]  ;;  %1322 = vmatpush.msrb.mxu2 %v493_v15  ;;  %v1626_v15 = vld [vmem:[#allocation5 + $0x430] sm:$0xff] }
 0x191   :  { %v361_v17 = vld [vmem:[#allocation3 + $0x838] sm:$0xff]  ;;  %1344 = vmatpush.msrb.mxu3 %v561_v16  ;;  %v1696_v16 = vld [vmem:[#allocation5 + $0x660] sm:$0xff] }
 0x192   :  { %v425_v57 = vld [vmem:[#allocation3 + $0xa38] sm:$0xff]  ;;  %1277 = vmatpush.msrb.mxu0 %v361_v17  ;;  %v1658_v17 = vld [vmem:[#allocation5 + $0x530] sm:$0xff] }
 0x193   :  { %v489_v50 = vld [vmem:[#allocation3 + $0xc38] sm:$0xff]  ;;  %1300 = vmatpush.msrb.mxu1 %v425_v57  ;;  %v1555_v57 = vld [vmem:[#allocation2 + $0x8] sm:$0xfe] }
 0x194   :  { %v557_v21 = vld [vmem:[#allocation3 + $0xe58] sm:$0xff]  ;;  %1323 = vmatpush.msrb.mxu2 %v489_v50  ;;  %v1554_v50 = vld [vmem:[#allocation2] sm:$0xfe] }
 0x195   :  { %v357_v27 = vld [vmem:[#allocation3 + $0x818] sm:$0xff]  ;;  %1345 = vmatpush.msrb.mxu3 %v557_v21  ;;  %v1694_v21 = vld [vmem:[#allocation5 + $0x650] sm:$0xff]  ;;  %v1587_v36 = vrot.slane %v1554_v50, 1  ;;  %v1633_v50 = vld [vmem:[#allocation5 + $0x468] sm:$0xff] }
 0x196   :  { %v421_v31 = vld [vmem:[#allocation3 + $0xa18] sm:$0xff]  ;;  %1278 = vmatpush.msrb.mxu0 %v357_v27  ;;  %v1558_v27 = vld [vmem:[#allocation2 + $0x20] sm:$0x1] }
 0x197   :  { %v485_v60 = vld [vmem:[#allocation3 + $0xc18] sm:$0xff]  ;;  %1301 = vmatpush.msrb.mxu1 %v421_v31  ;;  %1279 = vmatmul.f32.vlgmr.msrb.gmra.mxu0 %v3592_v30  ;;  %v1678_v30 = vld [vmem:[#allocation5 + $0x5d0] sm:$0xff]  ;;  %v1590_v31 = vrot.slane %v1555_v57, 1 }
 0x198   :  { %v553_v0 = vld [vmem:[#allocation3 + $0xe38] sm:$0xff]  ;;  %1324 = vmatpush.msrb.mxu2 %v485_v60  ;;  %1748 = vmatpush.msra.mxu0 %v1650_v37  ;;  %v1692_v60 = vld [vmem:[#allocation5 + $0x640] sm:$0xff]  ;;  %v1588_v37 = vrot.slane %v1558_v27, 1  ;;  %v1705_v27 = vld [vmem:[#allocation5 + $0x6a8] sm:$0xff] }
 0x199   :  { %1346 = vmatpush.msrb.mxu3 %v553_v0  ;;  %v549_v42 = vld [vmem:[#allocation3 + $0xe18] sm:$0xff]  ;;  %1325 = vmatmul.f32.vlgmr.msrb.gmra.mxu2 %v3586_v20  ;;  %v1712_v20 = vld [vmem:[#allocation5 + $0x6e0] sm:$0xff]  ;;  %v1622_v0 = vld [vmem:[#allocation5 + $0x410] sm:$0xff]  ;;  %v3655_v3 = vsel %vm1586_vm1, %v1590_v31, %v1591_v32 }
 0x19a   :  { %1771 = vmatpush.msra.mxu1 %v1682_v38  ;;  %1749 = vmatpush.msra.mxu0 %v1648_v52  ;;  %v3253_v62 = vld [vmem:[%s3998_s0 + $0x78] sm:$0xff]  ;;  %v1690_v38 = vld [vmem:[#allocation5 + $0x630] sm:$0xff]  ;;  %v3658_v9 = vsel %vm1586_vm1, %v1587_v36, %v1588_v37  ;;  %v1629_v36 = vld [vmem:[#allocation5 + $0x448] sm:$0xff] }
 0x19b   :  { %1347 = vmatpush.msrb.mxu3 %v549_v42  ;;  %1302 = vmatmul.f32.vlgmr.msrb.gmra.mxu1 %v3607_v1  ;;  %v1674_v1 = vld [vmem:[#allocation5 + $0x5b0] sm:$0xff]  ;;  %v1652_v42 = vld [vmem:[#allocation5 + $0x500] sm:$0xff]  ;;  %v1651_v52 = vld [vmem:[#allocation5 + $0x4f8] sm:$0xff] }
 0x19c   :  { %1348 = vmatmul.f32.vlgmr.msrb.gmra.mxu3 %v3601_v58  ;;  %1772 = vmatpush.msra.mxu1 %v1680_v45  ;;  %v3250_v58 = vld [vmem:[%s3998_s0 + $0x60] sm:$0xff]  ;;  %v1683_v44 = vld [vmem:[#allocation5 + $0x5f8] sm:$0xff]  ;;  %v1563_v45 = vld [vmem:[#allocation2 + $0x48] sm:$0xfe] }
 0x19d   :  { %1794 = vmatpush.msra.mxu2 %v1714_v46  ;;  %1750 = vmatpush.msra.mxu0 %v1646_v48  ;;  %v1562_v46 = vld [vmem:[#allocation2 + $0x40] sm:$0xfe]  ;;  %v1647_v55 = vld [vmem:[#allocation5 + $0x4d8] sm:$0xff]  ;;  %v1661_v37 = vld [vmem:[#allocation5 + $0x548] sm:$0xff] }
 0x19e   :  { %1773 = vmatpush.msra.mxu1 %v1678_v30  ;;  %v1688_v48 = vld [vmem:[#allocation5 + $0x620] sm:$0xff]  ;;  %v1649_v30 = vld [vmem:[#allocation5 + $0x4e8] sm:$0xff]  ;;  %v1599_v23 = vrot.slane %v1562_v46, 1  ;;  %v1707_v18 = vld [vmem:[#allocation5 + $0x6b8] sm:$0xff] }
 0x19f   :  { %1795 = vmatpush.msra.mxu2 %v1712_v20  ;;  %1751 = vmatpush.msra.mxu0 %v1644_v51  ;;  %v1566_v20 = vld [vmem:[#allocation2 + $0x60] sm:$0x1]  ;;  %v1602_v51 = vrot.slane %v1563_v45, 1  ;;  %v1631_v31 = vld [vmem:[#allocation5 + $0x458] sm:$0xff]  ;;  %v1625_v46 = vld [vmem:[#allocation5 + $0x428] sm:$0xff] }
 0x1a0   :  { %1774 = vmatpush.msra.mxu1 %v1676_v40  ;;  %1282 = vmatmul.f32.gmra.mxu0 %v3250_v58  ;;  %v1686_v40 = vld [vmem:[#allocation5 + $0x610] sm:$0xff]  ;;  %v3662_v58 = vld [vmem:[#allocation8] ss:$4 sm:$0xf]  ;;  %v1663_v32 = vld [vmem:[#allocation5 + $0x558] sm:$0xff] }
 0x1a1   :  { %1328 = vmatmul.f32.gmra.mxu2 %v3251_v28  ;;  %1752 = vmatpush.msra.mxu0 %v1642_v56  ;;  %v1679_v56 = vld [vmem:[#allocation5 + $0x5d8] sm:$0xff]  ;;  %v613_v28 = vperm.slane %v3662_v58, 2 }
 0x1a2   :  { %1775 = vmatpush.msra.mxu1 %v1674_v1  ;;  %1796 = vmatpush.msra.mxu2 %v1710_v59  ;;  %v1004_v1 = vpop.f32.mrf.mxu0  ;;  %v1600_v59 = vrot.slane %v1566_v20, 1  ;;  %v1699_v8 = vld [vmem:[#allocation5 + $0x678] sm:$0xff]  ;;  %v1697_v20 = vld [vmem:[#allocation5 + $0x668] sm:$0xff] }
 0x1a3   :  { %1305 = vmatmul.f32.gmra.mxu1 %v3252_v19  ;;  %1753 = vmatpush.msra.mxu0 %v1640_v29  ;;  %v1684_v29 = vld [vmem:[#allocation5 + $0x600] sm:$0xff]  ;;  %v1027_v19 = vpop.f32.mrf.mxu1 }
 0x1a4   :  { %1351 = vmatmul.f32.gmra.mxu3 %v3253_v62  ;;  %1776 = vmatpush.msra.mxu1 %v1672_v53  ;;  %v1645_v53 = vld [vmem:[#allocation5 + $0x4c8] sm:$0xff]  ;;  %v1643_v62 = vld [vmem:[#allocation5 + $0x4b8] sm:$0xff] }
 0x1a5   :  { %1797 = vmatpush.msra.mxu2 %v1708_v43  ;;  %1754 = vmatpush.msra.mxu0 %v1638_v63  ;;  %v3666_v43 = vsel %vm1586_vm1, %v1602_v51, %v1603_v54  ;;  %v1675_v63 = vld [vmem:[#allocation5 + $0x5b8] sm:$0xff] }
 0x1a6   :  { %1777 = vmatpush.msra.mxu1 %v1670_v34  ;;  %v1050_v34 = vpop.f32.mrf.mxu2  ;;  %v1623_v51 = vld [vmem:[#allocation5 + $0x418] sm:$0xff] }
 0x1a7   :  { %1798 = vmatpush.msra.mxu2 %v1706_v2  ;;  %1755 = vmatpush.msra.mxu0 %v1636_v25  ;;  %v3669_v2 = vsel %vm1586_vm1, %v1599_v23, %v1600_v59  ;;  %v1005_v25 = vadd.f32 %v1004_v1, %v613_v28  ;;  %v1655_v54 = vld [vmem:[#allocation5 + $0x518] sm:$0xff]  ;;  %v1746_v1 = vld [vmem:[#allocation5 + $0x7f0] sm:$0xff]  ;;  %v1621_v23 = vld [vmem:[#allocation5 + $0x408] sm:$0xff] }
 0x1a8   :  { %1778 = vmatpush.msra.mxu1 %v1668_v4  ;;  %v1715_v4 = vld [vmem:[#allocation5 + $0x6f8] sm:$0xff]  ;;  %v1653_v59 = vld [vmem:[#allocation5 + $0x508] sm:$0xff]  ;;  %1817 = vmatpush.msra.mxu3 %v1746_v1  ;;  %v1516_v1 = vld [vmem:[#allocation5 + $0x2d0] sm:$0xff] }
 0x1a9   :  { %1799 = vmatpush.msra.mxu2 %v1704_v35  ;;  %1756 = vmatpush.msra.mxu0 %v1634_v41  ;;  %v1641_v35 = vld [vmem:[#allocation5 + $0x4a8] sm:$0xff] }
 0x1aa   :  { %1779 = vmatpush.msra.mxu1 %v1666_v26  ;;  %v1673_v41 = vld [vmem:[#allocation5 + $0x5a8] sm:$0xff]  ;;  %v1073_v26 = vpop.f32.mrf.mxu3 }
 0x1ab   :  { %1800 = vmatpush.msra.mxu2 %v1702_v5  ;;  %1757 = vmatpush.msra.mxu0 %v1632_v6  ;;  %v1713_v5 = vld [vmem:[#allocation5 + $0x6e8] sm:$0xff]  ;;  %v1639_v6 = vld [vmem:[#allocation5 + $0x498] sm:$0xff]  ;;  %v1030_v57 = vpop.f32.mrf.mxu1 }
 0x1ac   :  { %1780 = vmatpush.msra.mxu1 %v1664_v14  ;;  %v1671_v14 = vld [vmem:[#allocation5 + $0x598] sm:$0xff] }
 0x1ad   :  { %1801 = vmatpush.msra.mxu2 %v1700_v7  ;;  %1758 = vmatpush.msra.mxu0 %v1630_v10  ;;  %v1028_v7 = vadd.f32 %v1027_v19, %v1005_v25  ;;  %v1711_v10 = vld [vmem:[#allocation5 + $0x6d8] sm:$0xff]  ;;  %v1456_v19 = vld [vmem:[#allocation5 + $0xf0] sm:$0xff] }
 0x1ae   :  { %1781 = vmatpush.msra.mxu1 %v1662_v11  ;;  %v1637_v11 = vld [vmem:[#allocation5 + $0x488] sm:$0xff]  ;;  %v1742_v25 = vld [vmem:[#allocation5 + $0x7d0] sm:$0xff] }
 0x1af   :  { %1802 = vmatpush.msra.mxu2 %v1698_v33  ;;  %1759 = vmatpush.msra.mxu0 %v1628_v12  ;;  %v1669_v33 = vld [vmem:[#allocation5 + $0x588] sm:$0xff]  ;;  %v1007_v12 = vpop.f32.mrf.mxu0 }
 0x1b0   :  { %1782 = vmatpush.msra.mxu1 %v1660_v13  ;;  %v1709_v13 = vld [vmem:[#allocation5 + $0x6c8] sm:$0xff] }
 0x1b1   :  { %1803 = vmatpush.msra.mxu2 %v1696_v16  ;;  %1760 = vmatpush.msra.mxu0 %v1626_v15  ;;  %v1635_v15 = vld [vmem:[#allocation5 + $0x478] sm:$0xff] }
 0x1b2   :  { %1783 = vmatpush.msra.mxu1 %v1658_v17  ;;  %v1667_v16 = vld [vmem:[#allocation5 + $0x578] sm:$0xff]  ;;  %v1051_v17 = vadd.f32 %v1050_v34, %v1028_v7  ;;  %v1693_v34 = vld [vmem:[#allocation5 + $0x648] sm:$0xff]  ;;  %v1452_v7 = vld [vmem:[#allocation5 + $0xd0] sm:$0xff] }
 0x1b3   :  { %1804 = vmatpush.msra.mxu2 %v1694_v21  ;;  %1761 = vmatpush.msra.mxu0 %v1624_v22  ;;  %v1665_v21 = vld [vmem:[#allocation5 + $0x568] sm:$0xff] }
 0x1b4   :  { %1784 = vmatpush.msra.mxu1 %v1656_v47  ;;  %v1008_v47 = vadd.f32 %v1007_v12, %v613_v28  ;;  %v1738_v12 = vld [vmem:[#allocation5 + $0x7b0] sm:$0xff] }
 0x1b5   :  { %1805 = vmatpush.msra.mxu2 %v1692_v60  ;;  %1762 = vmatpush.msra.mxu0 %v1622_v0  ;;  %v1074_v60 = vadd.f32 %v1073_v26, %v1051_v17  ;;  %v1076_v0 = vpop.f32.mrf.mxu3  ;;  %v1448_v17 = vld [vmem:[#allocation5 + $0xb0] sm:$0xff] }
 0x1b6   :  { %1785 = vmatpush.msra.mxu1 %v1654_v61  ;;  %v1053_v22 = vpop.f32.mrf.mxu2  ;;  %v1703_v61 = vld [vmem:[#allocation5 + $0x698] sm:$0xff] }
 0x1b7   :  { %1806 = vmatpush.msra.mxu2 %v1690_v38  ;;  %1763 = vmatpush.msra.mxu0 %v1620_v39  ;;  %v1031_v38 = vadd.f32 %v1030_v57, %v1008_v47  ;;  %v1701_v39 = vld [vmem:[#allocation5 + $0x688] sm:$0xff]  ;;  %v1480_v57 = vld [vmem:[#allocation5 + $0x1b0] sm:$0xff]  ;;  %v1446_v47 = vld [vmem:[#allocation5 + $0xa0] sm:$0xff] }
 0x1b8   :  { %1786 = vmatpush.msra.mxu1 %v1652_v42  ;;  %1764 = vmatmul.f32.vlgmr.msra.gmra.mxu0 %v3658_v9  ;;  %v1627_v42 = vld [vmem:[#allocation5 + $0x438] sm:$0xff] }
 0x1b9   :  { %1787 = vmatmul.f32.vlgmr.msra.gmra.mxu1 %v3655_v3  ;;  %1840 = vmatpush.msrb.mxu0 %v1651_v52  ;;  %v1659_v52 = vld [vmem:[#allocation5 + $0x538] sm:$0xff] }
 0x1ba   :  { %1863 = vmatpush.msrb.mxu1 %v1683_v44  ;;  %1807 = vmatpush.msra.mxu2 %v1688_v48  ;;  %v1096_v44 = vpop.f32.mrf.mxu0  ;;  %v1657_v48 = vld [vmem:[#allocation5 + $0x528] sm:$0xff] }
 0x1bb   :  { %1841 = vmatpush.msrb.mxu0 %v1649_v30  ;;  %v1097_v45 = vadd.f32 %v1096_v44, %v1074_v60  ;;  %v1054_v30 = vadd.f32 %v1053_v22, %v1031_v38  ;;  %v1736_v22 = vld [vmem:[#allocation5 + $0x7a0] sm:$0xff]  ;;  %v1734_v60 = vld [vmem:[#allocation5 + $0x790] sm:$0xff] }
 0x1bc   :  { %1864 = vmatpush.msrb.mxu1 %v1681_v49  ;;  %1808 = vmatpush.msra.mxu2 %v1686_v40  ;;  %v1732_v38 = vld [vmem:[#allocation5 + $0x780] sm:$0xff] }
 0x1bd   :  { %1842 = vmatpush.msrb.mxu0 %v1647_v55 }
 0x1be   :  { %1865 = vmatpush.msrb.mxu1 %v1679_v56  ;;  %1809 = vmatpush.msra.mxu2 %v1684_v29  ;;  %v1695_v56 = vld [vmem:[#allocation5 + $0x658] sm:$0xff]  ;;  %v1077_v29 = vadd.f32 %v1076_v0, %v1054_v30  ;;  %v1444_v0 = vld [vmem:[#allocation5 + $0x90] sm:$0xff] }
 0x1bf   :  { %1843 = vmatpush.msrb.mxu0 %v1645_v53  ;;  %v1520_v30 = vld [vmem:[#allocation5 + $0x2f0] sm:$0xff] }
 0x1c0   :  { %1866 = vmatpush.msrb.mxu1 %v1677_v24  ;;  %1767 = vmatmul.f32.gmra.mxu0 %v3669_v2  ;;  %v1744_v24 = vld [vmem:[#allocation5 + $0x7e0] sm:$0xff] }
 0x1c1   :  { %1790 = vmatmul.f32.gmra.mxu1 %v3666_v43  ;;  %1844 = vmatpush.msrb.mxu0 %v1643_v62  ;;  %v1119_v49 = vpop.f32.mrf.mxu1  ;;  %v1488_v62 = vld [vmem:[#allocation5 + $0x1f0] sm:$0xff] }
 0x1c2   :  { %1867 = vmatpush.msrb.mxu1 %v1675_v63  ;;  %1886 = vmatpush.msrb.mxu2 %v1715_v4  ;;  %v1120_v40 = vadd.f32 %v1119_v49, %v1097_v45  ;;  %v1454_v4 = vld [vmem:[#allocation5 + $0xe0] sm:$0xff]  ;;  %v1730_v45 = vld [vmem:[#allocation5 + $0x770] sm:$0xff] }
 0x1c3   :  { %1845 = vmatpush.msrb.mxu0 %v1641_v35  ;;  %1818 = vmatpush.msra.mxu3 %v1744_v24  ;;  %v1486_v35 = vld [vmem:[#allocation5 + $0x1e0] sm:$0xff]  ;;  %v1722_v24 = vld [vmem:[#allocation5 + $0x730] sm:$0xff] }
 0x1c4   :  { %1868 = vmatpush.msrb.mxu1 %v1673_v41  ;;  %1887 = vmatpush.msrb.mxu2 %v1713_v5  ;;  %v1142_v55 = vpop.f32.mrf.mxu2  ;;  %v1728_v49 = vld [vmem:[#allocation5 + $0x760] sm:$0xff] }
 0x1c5   :  { %1846 = vmatpush.msrb.mxu0 %v1639_v6  ;;  %v1143_v28 = vadd.f32 %v1142_v55, %v1120_v40  ;;  %v1165_v53 = vpop.f32.mrf.mxu3  ;;  %v1691_v6 = vld [vmem:[#allocation5 + $0x638] sm:$0xff]  ;;  %1819 = vmatpush.msra.mxu3 %v1742_v25  ;;  %v1726_v40 = vld [vmem:[#allocation5 + $0x750] sm:$0xff] }
 0x1c6   :  { %1869 = vmatpush.msrb.mxu1 %v1671_v14  ;;  %1888 = vmatpush.msrb.mxu2 %v1711_v10  ;;  %v1740_v14 = vld [vmem:[#allocation5 + $0x7c0] sm:$0xff]  ;;  %v1484_v10 = vld [vmem:[#allocation5 + $0x1d0] sm:$0xff] }
 0x1c7   :  { %1847 = vmatpush.msrb.mxu0 %v1637_v11  ;;  %v1166_v63 = vadd.f32 %v1165_v53, %v1143_v28  ;;  %1820 = vmatpush.msra.mxu3 %v1740_v14  ;;  %v1436_v55 = vld [vmem:[#allocation5 + $0x50] sm:$0xff]  ;;  %v1466_v28 = vld [vmem:[#allocation5 + $0x140] sm:$0xff] }
 0x1c8   :  { %1870 = vmatpush.msrb.mxu1 %v1669_v33  ;;  %1889 = vmatpush.msrb.mxu2 %v1709_v13  ;;  %v1099_v26 = vpop.f32.mrf.mxu0  ;;  %v1482_v13 = vld [vmem:[#allocation5 + $0x1c0] sm:$0xff]  ;;  %v1428_v14 = vld [vmem:[#allocation5 + $0x10] sm:$0xff] }
 0x1c9   :  { %1848 = vmatpush.msrb.mxu0 %v1635_v15  ;;  %v1357_v41 = vmax.f32 %v1166_v63, 0.0  ;;  %v1100_v5 = vadd.f32 %v1099_v26, %v1077_v29  ;;  %1821 = vmatpush.msra.mxu3 %v1738_v12  ;;  %v1514_v29 = vld [vmem:[#allocation5 + $0x2c0] sm:$0xff] }
 0x1ca   :  { %1871 = vmatpush.msrb.mxu1 %v1667_v16  ;;  %1890 = vmatpush.msrb.mxu2 %v1707_v18  ;;  %v3685_v12 = vld [vmem:[#allocation2] sm:$0xff] }
 0x1cb   :  { %1849 = vmatpush.msrb.mxu0 %v1633_v50  ;;  %v1388_v11 = vrot.slane %v1357_v41, 7  ;;  %v1122_v33 = vpop.f32.mrf.mxu1  ;;  %1822 = vmatpush.msra.mxu3 %v1736_v22  ;;  %v1462_v41 = vld [vmem:[#allocation5 + $0x120] sm:$0xff]  ;;  %v1453_v22 = vld [vmem:[#allocation5 + $0xd8] sm:$0xff] }
 0x1cc   :  { %1872 = vmatpush.msrb.mxu1 %v1665_v21  ;;  %1891 = vmatpush.msrb.mxu2 %v1705_v27  ;;  %v1123_v15 = vadd.f32 %v1122_v33, %v1100_v5  ;;  %v1145_v16 = vpop.f32.mrf.mxu2  ;;  %v1687_v21 = vld [vmem:[#allocation5 + $0x618] sm:$0xff]  ;;  %v1478_v27 = vld [vmem:[#allocation5 + $0x1a0] sm:$0xff]  ;;  %v1512_v5 = vld [vmem:[#allocation5 + $0x2b0] sm:$0xff] }
 0x1cd   :  { %1850 = vmatpush.msrb.mxu0 %v1631_v31  ;;  %1404 = vst [vmem:[#allocation2 + $0x10] sm:$0xfe] %v1388_v11  ;;  %1823 = vmatpush.msra.mxu3 %v1734_v60  ;;  %v1426_v33 = vld [vmem:[#allocation5] sm:$0xff] }
 0x1ce   :  { %1873 = vmatpush.msrb.mxu1 %v1663_v32  ;;  %1892 = vmatpush.msrb.mxu2 %v1703_v61  ;;  %1408 = vst [vmem:[#allocation2 + $0x30] sm:$0x1] %v1388_v11  ;;  %v1146_v18 = vadd.f32 %v1145_v16, %v1123_v15  ;;  %v1168_v50 = vpop.f32.mrf.mxu3  ;;  %v1685_v32 = vld [vmem:[#allocation5 + $0x608] sm:$0xff]  ;;  %v1476_v61 = vld [vmem:[#allocation5 + $0x190] sm:$0xff]  ;;  %v1716_v11 = vld [vmem:[#allocation5 + $0x700] sm:$0xff] }
 0x1cf   :  { %1851 = vmatpush.msrb.mxu0 %v1629_v36  ;;  %1824 = vmatpush.msra.mxu3 %v1732_v38  ;;  %v3687_v15 = vld [vmem:[#allocation2 + $0x8] sm:$0xff]  ;;  %v1508_v16 = vld [vmem:[#allocation5 + $0x290] sm:$0xff]  ;;  %v3691_v60 = vld [vmem:[#allocation2 + $0x40] sm:$0xff] }
 0x1d0   :  { %1874 = vmatpush.msrb.mxu1 %v1661_v37  ;;  %1893 = vmatpush.msrb.mxu2 %v1701_v39  ;;  %v1169_v31 = vadd.f32 %v1168_v50, %v1146_v18  ;;  %v1442_v39 = vld [vmem:[#allocation5 + $0x80] sm:$0xff]  ;;  %v1487_v18 = vld [vmem:[#allocation5 + $0x1e8] sm:$0xff] }
 0x1d1   :  { %1852 = vmatpush.msrb.mxu0 %v1627_v42  ;;  %1825 = vmatpush.msra.mxu3 %v1730_v45  ;;  %v1506_v50 = vld [vmem:[#allocation5 + $0x280] sm:$0xff]  ;;  %v1741_v38 = vld [vmem:[#allocation5 + $0x7c8] sm:$0xff]  ;;  %v1477_v45 = vld [vmem:[#allocation5 + $0x198] sm:$0xff] }
 0x1d2   :  { %1875 = vmatpush.msrb.mxu1 %v1659_v52  ;;  %1894 = vmatpush.msrb.mxu2 %v1699_v8  ;;  %v1361_v36 = vmax.f32 %v1169_v31, 0.0  ;;  %v1440_v8 = vld [vmem:[#allocation5 + $0x70] sm:$0xff]  ;;  %v1451_v31 = vld [vmem:[#allocation5 + $0xc8] sm:$0xff] }
 0x1d3   :  { %1853 = vmatpush.msrb.mxu0 %v1625_v46  ;;  %v1472_v46 = vld [vmem:[#allocation5 + $0x170] sm:$0xff]  ;;  %1826 = vmatpush.msra.mxu3 %v1728_v49  ;;  %v1443_v49 = vld [vmem:[#allocation5 + $0x88] sm:$0xff] }
 0x1d4   :  { %1876 = vmatpush.msrb.mxu1 %v1657_v48  ;;  %1895 = vmatpush.msrb.mxu2 %v1697_v20  ;;  %v1556_v37 = vld [vmem:[#allocation2 + $0x10] sm:$0xfe]  ;;  %v1392_v42 = vrot.slane %v1361_v36, 7  ;;  %v1438_v20 = vld [vmem:[#allocation5 + $0x60] sm:$0xff]  ;;  %v3694_v36 = vld [vmem:[#allocation2 + $0x48] sm:$0xff] }
 0x1d5   :  { %1854 = vmatpush.msrb.mxu0 %v1623_v51  ;;  %v1593_v52 = vrot.slane %v1556_v37, 1  ;;  %v1470_v51 = vld [vmem:[#allocation5 + $0x160] sm:$0xff]  ;;  %1827 = vmatpush.msra.mxu3 %v1726_v40  ;;  %v1504_v37 = vld [vmem:[#allocation5 + $0x270] sm:$0xff]  ;;  %v1441_v40 = vld [vmem:[#allocation5 + $0x78] sm:$0xff] }
 0x1d6   :  { %1877 = vmatpush.msrb.mxu1 %v1655_v54  ;;  %1896 = vmatpush.msrb.mxu2 %v1695_v56  ;;  %1412 = vst [vmem:[#allocation2 + $0x50] sm:$0xfe] %v1392_v42  ;;  %v1518_v54 = vld [vmem:[#allocation5 + $0x2e0] sm:$0xff]  ;;  %v1468_v56 = vld [vmem:[#allocation5 + $0x150] sm:$0xff] }
 0x1d7   :  { %1855 = vmatpush.msrb.mxu0 %v1621_v23  ;;  %1416 = vst [vmem:[#allocation2 + $0x70] sm:$0x1] %v1392_v42  ;;  %v1724_v23 = vld [vmem:[#allocation5 + $0x740] sm:$0xff] }
 0x1d8   :  { %1878 = vmatpush.msrb.mxu1 %v1653_v59  ;;  %1856 = vmatmul.f32.vlgmr.msrb.gmra.mxu0 %v3658_v9  ;;  %v1689_v9 = vld [vmem:[#allocation5 + $0x628] sm:$0xff]  ;;  %v1434_v59 = vld [vmem:[#allocation5 + $0x40] sm:$0xff] }
 0x1d9   :  { %1879 = vmatmul.f32.vlgmr.msrb.gmra.mxu1 %v3655_v3  ;;  %1932 = vmatpush.msra.mxu0 %v1456_v19  ;;  %v1450_v3 = vld [vmem:[#allocation5 + $0xc0] sm:$0xff]  ;;  %v1432_v19 = vld [vmem:[#allocation5 + $0x30] sm:$0xff] }
 0x1da   :  { %1955 = vmatpush.msra.mxu1 %v1488_v62  ;;  %1897 = vmatpush.msrb.mxu2 %v1693_v34  ;;  %v1464_v62 = vld [vmem:[#allocation5 + $0x130] sm:$0xff] }
 0x1db   :  { %1933 = vmatpush.msra.mxu0 %v1454_v4  ;;  %1828 = vmatpush.msra.mxu3 %v1724_v23  ;;  %v1720_v4 = vld [vmem:[#allocation5 + $0x720] sm:$0xff]  ;;  %v1439_v23 = vld [vmem:[#allocation5 + $0x68] sm:$0xff] }
 0x1dc   :  { %1956 = vmatpush.msra.mxu1 %v1486_v35  ;;  %1898 = vmatpush.msrb.mxu2 %v1691_v6  ;;  %v1430_v35 = vld [vmem:[#allocation5 + $0x20] sm:$0xff]  ;;  %v1718_v6 = vld [vmem:[#allocation5 + $0x710] sm:$0xff] }
 0x1dd   :  { %1934 = vmatpush.msra.mxu0 %v1452_v7  ;;  %v1564_v53 = vld [vmem:[#allocation2 + $0x50] sm:$0xfe]  ;;  %1829 = vmatpush.msra.mxu3 %v1722_v24  ;;  %v1437_v24 = vld [vmem:[#allocation5 + $0x58] sm:$0xff] }
 0x1de   :  { %1957 = vmatpush.msra.mxu1 %v1484_v10  ;;  %1899 = vmatpush.msrb.mxu2 %v1689_v9  ;;  %v1568_v63 = vld [vmem:[#allocation2 + $0x70] sm:$0x1]  ;;  %v1605_v34 = vrot.slane %v1564_v53, 1  ;;  %v1510_v10 = vld [vmem:[#allocation5 + $0x2a0] sm:$0xff]  ;;  %v1731_v53 = vld [vmem:[#allocation5 + $0x778] sm:$0xff] }
 0x1df   :  { %1935 = vmatpush.msra.mxu0 %v1450_v3  ;;  %v1606_v25 = vrot.slane %v1568_v63, 1  ;;  %v1460_v7 = vld [vmem:[#allocation5 + $0x110] sm:$0xff]  ;;  %1830 = vmatpush.msra.mxu3 %v1720_v4  ;;  %v1458_v9 = vld [vmem:[#allocation5 + $0x100] sm:$0xff]  ;;  %v1457_v3 = vld [vmem:[#allocation5 + $0xf8] sm:$0xff] }
 0x1e0   :  { %1958 = vmatpush.msra.mxu1 %v1482_v13  ;;  %1859 = vmatmul.f32.gmra.mxu0 %v3669_v2  ;;  %v1474_v2 = vld [vmem:[#allocation5 + $0x180] sm:$0xff]  ;;  %v1489_v13 = vld [vmem:[#allocation5 + $0x1f8] sm:$0xff]  ;;  %v1435_v4 = vld [vmem:[#allocation5 + $0x48] sm:$0xff] }
 0x1e1   :  { %1882 = vmatmul.f32.gmra.mxu1 %v3666_v43  ;;  %1936 = vmatpush.msra.mxu0 %v1448_v17  ;;  %v1560_v43 = vld [vmem:[#allocation2 + $0x30] sm:$0x1]  ;;  %v3682_v26 = vsel %vm1586_vm1, %v1605_v34, %v1606_v25  ;;  %v1747_v17 = vld [vmem:[#allocation5 + $0x7f8] sm:$0xff]  ;;  %v1494_v34 = vld [vmem:[#allocation5 + $0x220] sm:$0xff] }
 0x1e2   :  { %1959 = vmatpush.msra.mxu1 %v1480_v57  ;;  %1900 = vmatpush.msrb.mxu2 %v1687_v21  ;;  %v1594_v44 = vrot.slane %v1560_v43, 1  ;;  %v1455_v57 = vld [vmem:[#allocation5 + $0xe8] sm:$0xff]  ;;  %v1502_v43 = vld [vmem:[#allocation5 + $0x260] sm:$0xff] }
 0x1e3   :  { %1937 = vmatpush.msra.mxu0 %v1446_v47  ;;  %1831 = vmatpush.msra.mxu3 %v1718_v6  ;;  %v1745_v21 = vld [vmem:[#allocation5 + $0x7e8] sm:$0xff]  ;;  %v1485_v47 = vld [vmem:[#allocation5 + $0x1d8] sm:$0xff] }
 0x1e4   :  { %1960 = vmatpush.msra.mxu1 %v1478_v27  ;;  %1901 = vmatpush.msrb.mxu2 %v1685_v32  ;;  %v3678_v48 = vsel %vm1586_vm1, %v1593_v52, %v1594_v44  ;;  %v1743_v27 = vld [vmem:[#allocation5 + $0x7d8] sm:$0xff]  ;;  %v1483_v32 = vld [vmem:[#allocation5 + $0x1c8] sm:$0xff] }
 0x1e5   :  { %1938 = vmatpush.msra.mxu0 %v1444_v0  ;;  %1810 = vmatmul.f32.vlgmr.msra.gmra.mxu2 %v3678_v48  ;;  %v1449_v0 = vld [vmem:[#allocation5 + $0xb8] sm:$0xff]  ;;  %v1729_v25 = vld [vmem:[#allocation5 + $0x768] sm:$0xff] }
 0x1e6   :  { %1961 = vmatpush.msra.mxu1 %v1476_v61  ;;  %1978 = vmatpush.msra.mxu2 %v1520_v30  ;;  %v1481_v61 = vld [vmem:[#allocation5 + $0x1b8] sm:$0xff]  ;;  %v1737_v30 = vld [vmem:[#allocation5 + $0x7a8] sm:$0xff] }
 0x1e7   :  { %1939 = vmatpush.msra.mxu0 %v1442_v39  ;;  %1832 = vmatpush.msra.mxu3 %v1716_v11  ;;  %v1447_v39 = vld [vmem:[#allocation5 + $0xa8] sm:$0xff]  ;;  %v1739_v52 = vld [vmem:[#allocation5 + $0x7b8] sm:$0xff] }
 0x1e8   :  { %1962 = vmatpush.msra.mxu1 %v1474_v2  ;;  %1979 = vmatpush.msra.mxu2 %v1518_v54  ;;  %v1479_v2 = vld [vmem:[#allocation5 + $0x1a8] sm:$0xff]  ;;  %v1188_v42 = vpop.f32.mrf.mxu0  ;;  %v1445_v44 = vld [vmem:[#allocation5 + $0x98] sm:$0xff] }
 0x1e9   :  { %1940 = vmatpush.msra.mxu0 %v1440_v8  ;;  %1909 = vmatpush.msrb.mxu3 %v1747_v17  ;;  %v614_v8 = vperm.slane %v3662_v58, 3  ;;  %v1735_v54 = vld [vmem:[#allocation5 + $0x798] sm:$0xff]  ;;  %v1733_v58 = vld [vmem:[#allocation5 + $0x788] sm:$0xff] }
 0x1ea   :  { %1963 = vmatpush.msra.mxu1 %v1472_v46  ;;  %1980 = vmatpush.msra.mxu2 %v1516_v1  ;;  %v1500_v46 = vld [vmem:[#allocation5 + $0x250] sm:$0xff]  ;;  %v1727_v6 = vld [vmem:[#allocation5 + $0x758] sm:$0xff]  ;;  %v1725_v11 = vld [vmem:[#allocation5 + $0x748] sm:$0xff] }
 0x1eb   :  { %1941 = vmatpush.msra.mxu0 %v1438_v20  ;;  %1910 = vmatpush.msrb.mxu3 %v1745_v21  ;;  %v1475_v20 = vld [vmem:[#allocation5 + $0x188] sm:$0xff]  ;;  %v1189_v1 = vadd.f32 %v1188_v42, %v614_v8  ;;  %v1723_v17 = vld [vmem:[#allocation5 + $0x738] sm:$0xff]  ;;  %v2244_v42 = vld [vmem:[#allocation5 + $0x9f0] sm:$0xff] }
 0x1ec   :  { %1964 = vmatpush.msra.mxu1 %v1470_v51  ;;  %1981 = vmatpush.msra.mxu2 %v1514_v29  ;;  %v1498_v51 = vld [vmem:[#allocation5 + $0x240] sm:$0xff]  ;;  %v1519_v21 = vld [vmem:[#allocation5 + $0x2e8] sm:$0xff] }
 0x1ed   :  { %1942 = vmatpush.msra.mxu0 %v1436_v55  ;;  %1813 = vmatmul.f32.gmra.mxu2 %v3682_v26  ;;  %v1473_v55 = vld [vmem:[#allocation5 + $0x178] sm:$0xff] }
 0x1ee   :  { %1965 = vmatpush.msra.mxu1 %v1468_v56  ;;  %1982 = vmatpush.msra.mxu2 %v1512_v5 }
 0x1ef   :  { %1943 = vmatpush.msra.mxu0 %v1434_v59  ;;  %1911 = vmatpush.msrb.mxu3 %v1743_v27  ;;  %v1471_v59 = vld [vmem:[#allocation5 + $0x168] sm:$0xff]  ;;  %v3700_v27 = vld [vmem:[#allocation2 + $0x10] sm:$0xff] }
 0x1f0   :  { %1966 = vmatpush.msra.mxu1 %v1466_v28  ;;  %1983 = vmatpush.msra.mxu2 %v1510_v10  ;;  %v1234_v56 = vpop.f32.mrf.mxu2  ;;  %v1496_v28 = vld [vmem:[#allocation5 + $0x230] sm:$0xff]  ;;  %v1490_v10 = vld [vmem:[#allocation5 + $0x200] sm:$0xff] }
 0x1f1   :  { %1944 = vmatpush.msra.mxu0 %v1432_v19  ;;  %1912 = vmatpush.msrb.mxu3 %v1741_v38  ;;  %v1257_v29 = vpop.f32.mrf.mxu3  ;;  %v1469_v19 = vld [vmem:[#allocation5 + $0x158] sm:$0xff] }
 0x1f2   :  { %1967 = vmatpush.msra.mxu1 %v1464_v62  ;;  %1984 = vmatpush.msra.mxu2 %v1508_v16  ;;  %v1191_v62 = vpop.f32.mrf.mxu0  ;;  %v1521_v16 = vld [vmem:[#allocation5 + $0x2f8] sm:$0xff] }
 0x1f3   :  { %1945 = vmatpush.msra.mxu0 %v1430_v35  ;;  %1913 = vmatpush.msrb.mxu3 %v1739_v52  ;;  %v1467_v35 = vld [vmem:[#allocation5 + $0x148] sm:$0xff]  ;;  %v1517_v38 = vld [vmem:[#allocation5 + $0x2d8] sm:$0xff] }
 0x1f4   :  { %1968 = vmatpush.msra.mxu1 %v1462_v41  ;;  %1985 = vmatpush.msra.mxu2 %v1506_v50  ;;  %v1492_v41 = vld [vmem:[#allocation5 + $0x210] sm:$0xff]  ;;  %v1461_v50 = vld [vmem:[#allocation5 + $0x118] sm:$0xff]  ;;  %v1515_v52 = vld [vmem:[#allocation5 + $0x2c8] sm:$0xff] }
 0x1f5   :  { %1946 = vmatpush.msra.mxu0 %v1428_v14  ;;  %1902 = vmatmul.f32.vlgmr.msrb.gmra.mxu2 %v3678_v48  ;;  %v1211_v48 = vpop.f32.mrf.mxu1  ;;  %v1465_v14 = vld [vmem:[#allocation5 + $0x138] sm:$0xff] }
 0x1f6   :  { %1969 = vmatpush.msra.mxu1 %v1460_v7  ;;  %1986 = vmatpush.msra.mxu2 %v1504_v37  ;;  %v1212_v63 = vadd.f32 %v1211_v48, %v1189_v1  ;;  %v1513_v48 = vld [vmem:[#allocation5 + $0x2b8] sm:$0xff]  ;;  %v3705_v1 = vld [vmem:[#allocation2 + $0x50] sm:$0xff] }
 0x1f7   :  { %1947 = vmatpush.msra.mxu0 %v1426_v33  ;;  %1914 = vmatpush.msrb.mxu3 %v1737_v30  ;;  %v1192_v33 = vadd.f32 %v1191_v62, %v614_v8  ;;  %v2242_v8 = vld [vmem:[#allocation5 + $0x9e0] sm:$0xff]  ;;  %v1507_v62 = vld [vmem:[#allocation5 + $0x288] sm:$0xff] }
 0x1f8   :  { %1970 = vmatpush.msra.mxu1 %v1458_v9  ;;  %1948 = vmatmul.f32.vlgmr.msra.gmra.mxu0 %v3685_v12  ;;  %v1235_v7 = vadd.f32 %v1234_v56, %v1212_v63  ;;  %v1431_v9 = vld [vmem:[#allocation5 + $0x28] sm:$0xff] }
 0x1f9   :  { %1971 = vmatmul.f32.vlgmr.msra.gmra.mxu1 %v3687_v15  ;;  %2024 = vmatpush.msrb.mxu0 %v1457_v3  ;;  %v1463_v3 = vld [vmem:[#allocation5 + $0x128] sm:$0xff] }
 0x1fa   :  { %2047 = vmatpush.msrb.mxu1 %v1489_v13  ;;  %1987 = vmatpush.msra.mxu2 %v1502_v43  ;;  %v1237_v13 = vpop.f32.mrf.mxu2 }
 0x1fb   :  { %2025 = vmatpush.msrb.mxu0 %v1455_v57  ;;  %1915 = vmatpush.msrb.mxu3 %v1735_v54  ;;  %v1429_v57 = vld [vmem:[#allocation5 + $0x18] sm:$0xff] }
 0x1fc   :  { %2048 = vmatpush.msrb.mxu1 %v1487_v18  ;;  %1988 = vmatpush.msra.mxu2 %v1500_v46  ;;  %v1258_v18 = vadd.f32 %v1257_v29, %v1235_v7  ;;  %v2230_v7 = vld [vmem:[#allocation5 + $0x980] sm:$0xff] }
 0x1fd   :  { %2026 = vmatpush.msrb.mxu0 %v1453_v22  ;;  %1905 = vmatmul.f32.gmra.mxu2 %v3682_v26  ;;  %v1214_v5 = vpop.f32.mrf.mxu1  ;;  %v1433_v26 = vld [vmem:[#allocation5 + $0x38] sm:$0xff]  ;;  %v1260_v22 = vpop.f32.mrf.mxu3 }
 0x1fe   :  { %2049 = vmatpush.msrb.mxu1 %v1485_v47  ;;  %1989 = vmatpush.msra.mxu2 %v1498_v51  ;;  %v1215_v47 = vadd.f32 %v1214_v5, %v1192_v33  ;;  %v2240_v51 = vld [vmem:[#allocation5 + $0x9d0] sm:$0xff] }
 0x1ff   :  { %2027 = vmatpush.msrb.mxu0 %v1451_v31  ;;  %1916 = vmatpush.msrb.mxu3 %v1733_v58  ;;  %v1427_v31 = vld [vmem:[#allocation5 + $0x8] sm:$0xff]  ;;  %v2238_v58 = vld [vmem:[#allocation5 + $0x9c0] sm:$0xff]  ;;  %v2200_v5 = vld [vmem:[#allocation5 + $0x890] sm:$0xff] }
 0x200   :  { %2050 = vmatpush.msrb.mxu1 %v1483_v32  ;;  %1951 = vmatmul.f32.gmra.mxu0 %v3691_v60  ;;  %v1238_v43 = vadd.f32 %v1237_v13, %v1215_v47  ;;  %v2196_v33 = vld [vmem:[#allocation5 + $0x870] sm:$0xff]  ;;  %v1499_v13 = vld [vmem:[#allocation5 + $0x248] sm:$0xff] }
 0x201   :  { %1974 = vmatmul.f32.gmra.mxu1 %v3694_v36  ;;  %2028 = vmatpush.msrb.mxu0 %v1449_v0  ;;  %v1721_v0 = vld [vmem:[#allocation5 + $0x728] sm:$0xff] }
 0x202   :  { %2051 = vmatpush.msrb.mxu1 %v1481_v61  ;;  %1990 = vmatpush.msra.mxu2 %v1496_v28  ;;  %v1459_v61 = vld [vmem:[#allocation5 + $0x108] sm:$0xff]  ;;  %v1509_v28 = vld [vmem:[#allocation5 + $0x298] sm:$0xff] }
 0x203   :  { %2029 = vmatpush.msrb.mxu0 %v1447_v39  ;;  %1917 = vmatpush.msrb.mxu3 %v1731_v53  ;;  %v2204_v53 = vld [vmem:[#allocation5 + $0x8b0] sm:$0xff] }
 0x204   :  { %2052 = vmatpush.msrb.mxu1 %v1479_v2  ;;  %1991 = vmatpush.msra.mxu2 %v1494_v34  ;;  %v2212_v2 = vld [vmem:[#allocation5 + $0x8f0] sm:$0xff]  ;;  %v2202_v34 = vld [vmem:[#allocation5 + $0x8a0] sm:$0xff] }
 0x205   :  { %2030 = vmatpush.msrb.mxu0 %v1445_v44  ;;  %1918 = vmatpush.msrb.mxu3 %v1729_v25  ;;  %v1719_v44 = vld [vmem:[#allocation5 + $0x718] sm:$0xff]  ;;  %v2234_v25 = vld [vmem:[#allocation5 + $0x9a0] sm:$0xff] }
 0x206   :  { %2053 = vmatpush.msrb.mxu1 %v1477_v45  ;;  %1992 = vmatpush.msra.mxu2 %v1492_v41  ;;  %v2210_v45 = vld [vmem:[#allocation5 + $0x8e0] sm:$0xff] }
 0x207   :  { %2031 = vmatpush.msrb.mxu0 %v1443_v49  ;;  %1919 = vmatpush.msrb.mxu3 %v1727_v6  ;;  %v1717_v49 = vld [vmem:[#allocation5 + $0x708] sm:$0xff]  ;;  %v2232_v6 = vld [vmem:[#allocation5 + $0x990] sm:$0xff] }
 0x208   :  { %2054 = vmatpush.msrb.mxu1 %v1475_v20  ;;  %1993 = vmatpush.msra.mxu2 %v1490_v10  ;;  %v2208_v20 = vld [vmem:[#allocation5 + $0x8d0] sm:$0xff] }
 0x209   :  { %2032 = vmatpush.msrb.mxu0 %v1441_v40  ;;  %1920 = vmatpush.msrb.mxu3 %v1725_v11  ;;  %v1261_v40 = vadd.f32 %v1260_v22, %v1238_v43  ;;  %v1501_v11 = vld [vmem:[#allocation5 + $0x258] sm:$0xff]  ;;  %v2224_v22 = vld [vmem:[#allocation5 + $0x950] sm:$0xff] }
 0x20a   :  { %2055 = vmatpush.msrb.mxu1 %v1473_v55  ;;  %2070 = vmatpush.msrb.mxu2 %v1521_v16  ;;  %v2206_v55 = vld [vmem:[#allocation5 + $0x8c0] sm:$0xff]  ;;  %v2220_v43 = vld [vmem:[#allocation5 + $0x930] sm:$0xff] }
 0x20b   :  { %2033 = vmatpush.msrb.mxu0 %v1439_v23  ;;  %1921 = vmatpush.msrb.mxu3 %v1723_v17  ;;  %v2194_v17 = vld [vmem:[#allocation5 + $0x860] sm:$0xff] }
 0x20c   :  { %2056 = vmatpush.msrb.mxu1 %v1471_v59  ;;  %1994 = vmatmul.f32.vlgmr.msra.gmra.mxu2 %v3700_v27 }
 0x20d   :  { %2034 = vmatpush.msrb.mxu0 %v1437_v24  ;;  %2071 = vmatpush.msrb.mxu2 %v1519_v21  ;;  %v2236_v24 = vld [vmem:[#allocation5 + $0x9b0] sm:$0xff] }
 0x20e   :  { %2057 = vmatpush.msrb.mxu1 %v1469_v19  ;;  %1922 = vmatpush.msrb.mxu3 %v1721_v0 }
 0x20f   :  { %2035 = vmatpush.msrb.mxu0 %v1435_v4  ;;  %2072 = vmatpush.msrb.mxu2 %v1517_v38  ;;  %v1493_v38 = vld [vmem:[#allocation5 + $0x218] sm:$0xff] }
 0x210   :  { %2058 = vmatpush.msrb.mxu1 %v1467_v35  ;;  %1923 = vmatpush.msrb.mxu3 %v1719_v44  ;;  %v1505_v35 = vld [vmem:[#allocation5 + $0x278] sm:$0xff]  ;;  %v1491_v44 = vld [vmem:[#allocation5 + $0x208] sm:$0xff] }
 0x211   :  { %2036 = vmatpush.msrb.mxu0 %v1433_v26  ;;  %2073 = vmatpush.msrb.mxu2 %v1515_v52  ;;  %v2116_v52 = vld [vmem:[#allocation2] sm:$0xfc] }
 0x212   :  { %2059 = vmatpush.msrb.mxu1 %v1465_v14  ;;  %1924 = vmatpush.msrb.mxu3 %v1717_v49  ;;  %v1548_v49 = vld [vmem:[#allocation5 + $0x3d0] sm:$0xff] }
 0x213   :  { %2037 = vmatpush.msrb.mxu0 %v1431_v9  ;;  %2074 = vmatpush.msrb.mxu2 %v1513_v48  ;;  %v2228_v9 = vld [vmem:[#allocation5 + $0x970] sm:$0xff]  ;;  %v2218_v48 = vld [vmem:[#allocation5 + $0x920] sm:$0xff] }
 0x214   :  { %2060 = vmatpush.msrb.mxu1 %v1463_v3  ;;  %v1280_v32 = vpop.f32.mrf.mxu0  ;;  %1997 = vmatmul.f32.gmra.mxu2 %v3705_v1 }
 0x215   :  { %2038 = vmatpush.msrb.mxu0 %v1429_v57  ;;  %v1281_v37 = vadd.f32 %v1280_v32, %v1258_v18  ;;  %v2226_v57 = vld [vmem:[#allocation5 + $0x960] sm:$0xff]  ;;  %v1497_v18 = vld [vmem:[#allocation5 + $0x238] sm:$0xff]  ;;  %v1495_v32 = vld [vmem:[#allocation5 + $0x228] sm:$0xff] }
 0x216   :  { %2061 = vmatpush.msrb.mxu1 %v1461_v50  ;;  %v2192_v50 = vld [vmem:[#allocation5 + $0x850] sm:$0xff] }
 0x217   :  { %2039 = vmatpush.msrb.mxu0 %v1427_v31 }
 0x218   :  { %v1303_v39 = vpop.f32.mrf.mxu1  ;;  %2062 = vmatpush.msrb.mxu1 %v1459_v61  ;;  %2040 = vmatmul.f32.vlgmr.msrb.gmra.mxu0 %v3685_v12  ;;  %v2190_v61 = vld [vmem:[#allocation5 + $0x840] sm:$0xff] }
 0x219   :  { %2063 = vmatmul.f32.vlgmr.msrb.gmra.mxu1 %v3687_v15  ;;  %v1304_v46 = vadd.f32 %v1303_v39, %v1281_v37  ;;  %2310 = vmatpush.msra.mxu0 %v2212_v2  ;;  %v1511_v15 = vld [vmem:[#allocation5 + $0x2a8] sm:$0xff]  ;;  %v2222_v37 = vld [vmem:[#allocation5 + $0x940] sm:$0xff]  ;;  %v1552_v2 = vld [vmem:[#allocation5 + $0x3f0] sm:$0xff] }
 0x21a   :  { %2333 = vmatpush.msra.mxu1 %v2244_v42  ;;  %2075 = vmatpush.msrb.mxu2 %v1511_v15  ;;  %v2188_v42 = vld [vmem:[#allocation5 + $0x830] sm:$0xff] }
 0x21b   :  { %2311 = vmatpush.msra.mxu0 %v2210_v45  ;;  %v1550_v45 = vld [vmem:[#allocation5 + $0x3e0] sm:$0xff]  ;;  %v2216_v15 = vld [vmem:[#allocation5 + $0x910] sm:$0xff] }
 0x21c   :  { %v1326_v30 = vpop.f32.mrf.mxu2  ;;  %2334 = vmatpush.msra.mxu1 %v2242_v8  ;;  %2076 = vmatpush.msrb.mxu2 %v1509_v28  ;;  %v2120_v8 = vld [vmem:[#allocation2 + $0x20] sm:$0x3] }
 0x21d   :  { %v1327_v54 = vadd.f32 %v1326_v30, %v1304_v46  ;;  %v1283_v12 = vpop.f32.mrf.mxu0  ;;  %2312 = vmatpush.msra.mxu0 %v2208_v20  ;;  %v2186_v46 = vld [vmem:[#allocation5 + $0x820] sm:$0xff]  ;;  %v2117_v30 = vld [vmem:[#allocation2 + $0x8] sm:$0xfc]  ;;  %v2121_v20 = vld [vmem:[#allocation2 + $0x28] sm:$0x3] }
 0x21e   :  { %2335 = vmatpush.msra.mxu1 %v2240_v51  ;;  %v1284_v23 = vadd.f32 %v1283_v12, %v1261_v40  ;;  %2077 = vmatpush.msrb.mxu2 %v1507_v62  ;;  %v2184_v40 = vld [vmem:[#allocation5 + $0x810] sm:$0xff]  ;;  %v2152_v28 = vrot.slane %v2117_v30, 2 }
 0x21f   :  { %v1349_v56 = vpop.f32.mrf.mxu3  ;;  %2313 = vmatpush.msra.mxu0 %v2206_v55  ;;  %v2149_v55 = vrot.slane %v2116_v52, 2  ;;  %v2272_v62 = vld [vmem:[#allocation5 + $0xad0] sm:$0xff]  ;;  %v2201_v52 = vld [vmem:[#allocation5 + $0x898] sm:$0xff] }
 0x220   :  { %v1350_v59 = vadd.f32 %v1349_v56, %v1327_v54  ;;  %v1306_v29 = vpop.f32.mrf.mxu1  ;;  %2336 = vmatpush.msra.mxu1 %v2238_v58  ;;  %2043 = vmatmul.f32.gmra.mxu0 %v3691_v60  ;;  %v1503_v60 = vld [vmem:[#allocation5 + $0x268] sm:$0xff]  ;;  %v2276_v54 = vld [vmem:[#allocation5 + $0xaf0] sm:$0xff]  ;;  %v2150_v56 = vrot.slane %v2120_v8, 2  ;;  %v1546_v58 = vld [vmem:[#allocation5 + $0x3c0] sm:$0xff] }
 0x221   :  { %2066 = vmatmul.f32.gmra.mxu1 %v3694_v36  ;;  %v1307_v4 = vadd.f32 %v1306_v29, %v1284_v23  ;;  %2314 = vmatpush.msra.mxu0 %v2204_v53  ;;  %v2198_v36 = vld [vmem:[#allocation5 + $0x880] sm:$0xff]  ;;  %v2153_v29 = vrot.slane %v2121_v20, 2  ;;  %v1532_v30 = vld [vmem:[#allocation5 + $0x350] sm:$0xff]  ;;  %v2197_v20 = vld [vmem:[#allocation5 + $0x878] sm:$0xff] }
 0x222   :  { %v1358_v19 = vmax.f32 %v1350_v59, 0.0  ;;  %2337 = vmatpush.msra.mxu1 %v2236_v24  ;;  %2078 = vmatpush.msrb.mxu2 %v1505_v35  ;;  %v2274_v23 = vld [vmem:[#allocation5 + $0xae0] sm:$0xff] }
 0x223   :  { %2315 = vmatpush.msra.mxu0 %v2202_v34  ;;  %v2182_v59 = vld [vmem:[#allocation5 + $0x800] sm:$0xff]  ;;  %v2213_v34 = vld [vmem:[#allocation5 + $0x8f8] sm:$0xff] }
 0x224   :  { %v1389_v63 = vrot.slane %v1358_v19, 7  ;;  %v1329_v41 = vpop.f32.mrf.mxu2  ;;  %2338 = vmatpush.msra.mxu1 %v2234_v25  ;;  %2079 = vmatpush.msrb.mxu2 %v1503_v60  ;;  %v2214_v19 = vld [vmem:[#allocation5 + $0x900] sm:$0xff]  ;;  %v3720_v25 = vsel %vm2148_vm2, %v2152_v28, %v2153_v29  ;;  %v1544_v60 = vld [vmem:[#allocation5 + $0x3b0] sm:$0xff] }
 0x225   :  { %v1330_v26 = vadd.f32 %v1329_v41, %v1307_v4  ;;  %2316 = vmatpush.msra.mxu0 %v2200_v5  ;;  %v2270_v4 = vld [vmem:[#allocation5 + $0xac0] sm:$0xff]  ;;  %v2211_v5 = vld [vmem:[#allocation5 + $0x8e8] sm:$0xff] }
 0x226   :  { %1405 = vst [vmem:[#allocation2 + $0x18] sm:$0xfe] %v1389_v63  ;;  %2339 = vmatpush.msra.mxu1 %v2232_v6  ;;  %2080 = vmatpush.msrb.mxu2 %v1501_v11  ;;  %v2124_v41 = vld [vmem:[#allocation2 + $0x40] sm:$0xfc]  ;;  %v2243_v6 = vld [vmem:[#allocation5 + $0x9e8] sm:$0xff]  ;;  %v2241_v11 = vld [vmem:[#allocation5 + $0x9d8] sm:$0xff] }
 0x227   :  { %1409 = vst [vmem:[#allocation2 + $0x38] sm:$0x1] %v1389_v63  ;;  %v1352_v14 = vpop.f32.mrf.mxu3  ;;  %2317 = vmatpush.msra.mxu0 %v2198_v36  ;;  %v3716_v63 = vsel %vm2148_vm2, %v2149_v55, %v2150_v56  ;;  %v2129_v36 = vld [vmem:[#allocation2 + $0x68] sm:$0x3]  ;;  %v2258_v8 = vld [vmem:[#allocation5 + $0xa60] sm:$0xff]  ;;  %v2252_v56 = vld [vmem:[#allocation5 + $0xa30] sm:$0xff] }
 0x228   :  { %v1353_v10 = vadd.f32 %v1352_v14, %v1330_v26  ;;  %2340 = vmatpush.msra.mxu1 %v2230_v7  ;;  %2081 = vmatpush.msrb.mxu2 %v1499_v13  ;;  %v2128_v26 = vld [vmem:[#allocation2 + $0x60] sm:$0x3]  ;;  %v2125_v14 = vld [vmem:[#allocation2 + $0x48] sm:$0xfc]  ;;  %v2268_v7 = vld [vmem:[#allocation5 + $0xab0] sm:$0xff]  ;;  %v2161_v13 = vrot.slane %v2124_v41, 2 }
 0x229   :  { %2318 = vmatpush.msra.mxu0 %v2196_v33  ;;  %v1542_v33 = vld [vmem:[#allocation5 + $0x3a0] sm:$0xff]  ;;  %v2227_v55 = vld [vmem:[#allocation5 + $0x968] sm:$0xff]  ;;  %v2221_v41 = vld [vmem:[#allocation5 + $0x938] sm:$0xff] }
 0x22a   :  { %v1362_v3 = vmax.f32 %v1353_v10, 0.0  ;;  %2341 = vmatpush.msra.mxu1 %v2228_v9  ;;  %2082 = vmatpush.msrb.mxu2 %v1497_v18  ;;  %v2209_v10 = vld [vmem:[#allocation5 + $0x8d8] sm:$0xff]  ;;  %v2266_v9 = vld [vmem:[#allocation5 + $0xaa0] sm:$0xff]  ;;  %v2239_v18 = vld [vmem:[#allocation5 + $0x9c8] sm:$0xff] }
 0x22b   :  { %2319 = vmatpush.msra.mxu0 %v2194_v17  ;;  %v2164_v17 = vrot.slane %v2125_v14, 2  ;;  %v2250_v28 = vld [vmem:[#allocation5 + $0xa20] sm:$0xff] }
 0x22c   :  { %v1393_v16 = vrot.slane %v1362_v3, 7  ;;  %2342 = vmatpush.msra.mxu1 %v2226_v57  ;;  %2083 = vmatpush.msrb.mxu2 %v1495_v32  ;;  %v2207_v3 = vld [vmem:[#allocation5 + $0x8c8] sm:$0xff]  ;;  %v2165_v57 = vrot.slane %v2129_v36, 2  ;;  %v1526_v29 = vld [vmem:[#allocation5 + $0x320] sm:$0xff] }
 0x22d   :  { %v1557_v21 = vld [vmem:[#allocation2 + $0x18] sm:$0xfe]  ;;  %2320 = vmatpush.msra.mxu0 %v2192_v50  ;;  %v1540_v50 = vld [vmem:[#allocation5 + $0x390] sm:$0xff] }
 0x22e   :  { %1413 = vst [vmem:[#allocation2 + $0x58] sm:$0xfe] %v1393_v16  ;;  %v1561_v47 = vld [vmem:[#allocation2 + $0x38] sm:$0x1]  ;;  %v1596_v31 = vrot.slane %v1557_v21, 1  ;;  %2343 = vmatpush.msra.mxu1 %v2224_v22  ;;  %2084 = vmatpush.msrb.mxu2 %v1493_v38  ;;  %v2264_v21 = vld [vmem:[#allocation5 + $0xa90] sm:$0xff]  ;;  %v3736_v32 = vsel %vm2148_vm2, %v2164_v17, %v2165_v57 }
 0x22f   :  { %1417 = vst [vmem:[#allocation2 + $0x78] sm:$0x1] %v1393_v16  ;;  %v1597_v0 = vrot.slane %v1561_v47, 1  ;;  %2321 = vmatpush.msra.mxu0 %v2190_v61  ;;  %v2162_v16 = vrot.slane %v2128_v26, 2  ;;  %v2205_v22 = vld [vmem:[#allocation5 + $0x8b8] sm:$0xff]  ;;  %v1538_v61 = vld [vmem:[#allocation5 + $0x380] sm:$0xff] }
 0x230   :  { %2344 = vmatpush.msra.mxu1 %v2222_v37  ;;  %2085 = vmatpush.msrb.mxu2 %v1491_v44  ;;  %v2262_v37 = vld [vmem:[#allocation5 + $0xa80] sm:$0xff]  ;;  %v2203_v38 = vld [vmem:[#allocation5 + $0x8a8] sm:$0xff]  ;;  %v2233_v44 = vld [vmem:[#allocation5 + $0x998] sm:$0xff] }
 0x231   :  { %v3711_v39 = vsel %vm1586_vm1, %v1596_v31, %v1597_v0  ;;  %2322 = vmatpush.msra.mxu0 %v2188_v42  ;;  %2086 = vmatmul.f32.vlgmr.msrb.gmra.mxu2 %v3700_v27  ;;  %v2245_v27 = vld [vmem:[#allocation5 + $0x9f8] sm:$0xff]  ;;  %v1536_v42 = vld [vmem:[#allocation5 + $0x370] sm:$0xff]  ;;  %v1551_v17 = vld [vmem:[#allocation5 + $0x3e8] sm:$0xff] }
 0x232   :  { %1833 = vmatmul.f32.vlgmr.msra.gmra.mxu3 %v3711_v39  ;;  %2345 = vmatpush.msra.mxu1 %v2220_v43  ;;  %v2237_v0 = vld [vmem:[#allocation5 + $0x9b8] sm:$0xff]  ;;  %v2260_v43 = vld [vmem:[#allocation5 + $0xa70] sm:$0xff]  ;;  %v2275_v57 = vld [vmem:[#allocation5 + $0xae8] sm:$0xff] }
 0x233   :  { %2001 = vmatpush.msra.mxu3 %v1552_v2  ;;  %2323 = vmatpush.msra.mxu0 %v2186_v46  ;;  %v2235_v2 = vld [vmem:[#allocation5 + $0x9a8] sm:$0xff] }
 0x234   :  { %2346 = vmatpush.msra.mxu1 %v2218_v48  ;;  %2356 = vmatpush.msra.mxu2 %v2276_v54  ;;  %v2199_v46 = vld [vmem:[#allocation5 + $0x888] sm:$0xff]  ;;  %v1530_v54 = vld [vmem:[#allocation5 + $0x340] sm:$0xff] }
 0x235   :  { %v1565_v51 = vld [vmem:[#allocation2 + $0x58] sm:$0xfe]  ;;  %2002 = vmatpush.msra.mxu3 %v1550_v45  ;;  %2324 = vmatpush.msra.mxu0 %v2184_v40  ;;  %v3728_v47 = vpop.f32.mrf.mxu0  ;;  %v1534_v45 = vld [vmem:[#allocation5 + $0x360] sm:$0xff]  ;;  %v2231_v48 = vld [vmem:[#allocation5 + $0x988] sm:$0xff] }
 0x236   :  { %v1569_v12 = vld [vmem:[#allocation2 + $0x78] sm:$0x1]  ;;  %v1608_v53 = vrot.slane %v1565_v51, 1  ;;  %2347 = vmatpush.msra.mxu1 %v2216_v15  ;;  %2357 = vmatpush.msra.mxu2 %v2274_v23  ;;  %v3730_v31 = vpop.f32.mrf.mxu1  ;;  %v2254_v40 = vld [vmem:[#allocation5 + $0xa40] sm:$0xff]  ;;  %v2195_v15 = vld [vmem:[#allocation5 + $0x868] sm:$0xff] }
 0x237   :  { %2003 = vmatpush.msra.mxu3 %v1548_v49  ;;  %v1609_v24 = vrot.slane %v1569_v12, 1  ;;  %2325 = vmatpush.msra.mxu0 %v2182_v59  ;;  %v2256_v49 = vld [vmem:[#allocation5 + $0xa50] sm:$0xff]  ;;  %v2229_v51 = vld [vmem:[#allocation5 + $0x978] sm:$0xff] }
 0x238   :  { %2348 = vmatpush.msra.mxu1 %v2214_v19  ;;  %2326 = vmatmul.f32.vlgmr.msra.gmra.mxu0 %v3716_v63  ;;  %v2193_v23 = vld [vmem:[#allocation5 + $0x858] sm:$0xff]  ;;  %v2223_v19 = vld [vmem:[#allocation5 + $0x948] sm:$0xff] }
 0x239   :  { %2004 = vmatpush.msra.mxu3 %v1546_v58  ;;  %v3723_v35 = vsel %vm1586_vm1, %v1608_v53, %v1609_v24  ;;  %2349 = vmatmul.f32.vlgmr.msra.gmra.mxu1 %v3720_v25  ;;  %v1528_v58 = vld [vmem:[#allocation5 + $0x330] sm:$0xff]  ;;  %v2225_v59 = vld [vmem:[#allocation5 + $0x958] sm:$0xff]  ;;  %v2191_v53 = vld [vmem:[#allocation5 + $0x848] sm:$0xff] }
 0x23a   :  { %2358 = vmatpush.msra.mxu2 %v2272_v62  ;;  %2402 = vmatpush.msrb.mxu0 %v2213_v34  ;;  %v2118_v24 = vld [vmem:[#allocation2 + $0x10] sm:$0xfc]  ;;  %v2122_v34 = vld [vmem:[#allocation2 + $0x30] sm:$0x3] }
 0x23b   :  { %2425 = vmatpush.msrb.mxu1 %v2245_v27  ;;  %1836 = vmatmul.f32.gmra.mxu3 %v3723_v35  ;;  %v2248_v62 = vld [vmem:[#allocation5 + $0xa10] sm:$0xff]  ;;  %v2155_v26 = vrot.slane %v2118_v24, 2  ;;  %v1525_v24 = vld [vmem:[#allocation5 + $0x318] sm:$0xff] }
 0x23c   :  { %2359 = vmatpush.msra.mxu2 %v2270_v4  ;;  %2403 = vmatpush.msrb.mxu0 %v2211_v5  ;;  %v1524_v27 = vld [vmem:[#allocation5 + $0x310] sm:$0xff]  ;;  %v2189_v4 = vld [vmem:[#allocation5 + $0x838] sm:$0xff]  ;;  %v2246_v5 = vld [vmem:[#allocation5 + $0xa00] sm:$0xff] }
 0x23d   :  { %2426 = vmatpush.msrb.mxu1 %v2243_v6  ;;  %2005 = vmatpush.msra.mxu3 %v1544_v60  ;;  %v3741_v12 = vpop.f32.mrf.mxu0  ;;  %v2187_v6 = vld [vmem:[#allocation5 + $0x828] sm:$0xff]  ;;  %v2156_v60 = vrot.slane %v2122_v34, 2 }
 0x23e   :  { %2089 = vmatmul.f32.gmra.mxu2 %v3705_v1  ;;  %2404 = vmatpush.msrb.mxu0 %v2209_v10  ;;  %v3733_v1 = vsel %vm2148_vm2, %v2161_v13, %v2162_v16  ;;  %v1553_v10 = vld [vmem:[#allocation5 + $0x3f8] sm:$0xff]  ;;  %v2247_v34 = vld [vmem:[#allocation5 + $0xa08] sm:$0xff] }
 0x23f   :  { %2360 = vmatpush.msra.mxu2 %v2268_v7  ;;  %2427 = vmatpush.msrb.mxu1 %v2241_v11  ;;  %v2219_v7 = vld [vmem:[#allocation5 + $0x928] sm:$0xff]  ;;  %v3751_v13 = vld [vmem:[#allocation2 + $0x18] sm:$0xff] }
 0x240   :  { %2006 = vmatpush.msra.mxu3 %v1542_v33  ;;  %2405 = vmatpush.msrb.mxu0 %v2207_v3  ;;  %v2277_v33 = vld [vmem:[#allocation5 + $0xaf8] sm:$0xff]  ;;  %v3749_v3 = vsel %vm2148_vm2, %v2155_v26, %v2156_v60  ;;  %v2298_v26 = vld [vmem:[#allocation5 + $0xba0] sm:$0xff] }
 0x241   :  { %2361 = vmatpush.msra.mxu2 %v2266_v9  ;;  %2428 = vmatpush.msrb.mxu1 %v2239_v18  ;;  %v2185_v9 = vld [vmem:[#allocation5 + $0x818] sm:$0xff]  ;;  %v2183_v18 = vld [vmem:[#allocation5 + $0x808] sm:$0xff] }
 0x242   :  { %2007 = vmatpush.msra.mxu3 %v1540_v50  ;;  %2329 = vmatmul.f32.gmra.mxu0 %v3733_v1  ;;  %v2217_v16 = vld [vmem:[#allocation5 + $0x918] sm:$0xff]  ;;  %v2126_v50 = vld [vmem:[#allocation2 + $0x50] sm:$0xfc] }
 0x243   :  { %2352 = vmatmul.f32.gmra.mxu1 %v3736_v32  ;;  %2362 = vmatpush.msra.mxu2 %v2264_v21  ;;  %v2215_v21 = vld [vmem:[#allocation5 + $0x908] sm:$0xff] }
 0x244   :  { %2406 = vmatpush.msrb.mxu0 %v2205_v22  ;;  %2429 = vmatpush.msrb.mxu1 %v2237_v0  ;;  %v1549_v22 = vld [vmem:[#allocation5 + $0x3d8] sm:$0xff]  ;;  %v2130_v0 = vld [vmem:[#allocation2 + $0x70] sm:$0x3] }
 0x245   :  { %2008 = vmatpush.msra.mxu3 %v1538_v61  ;;  %2363 = vmatpush.msra.mxu2 %v2262_v37  ;;  %v2273_v61 = vld [vmem:[#allocation5 + $0xad8] sm:$0xff]  ;;  %v1547_v37 = vld [vmem:[#allocation5 + $0x3c8] sm:$0xff] }
 0x246   :  { %2407 = vmatpush.msrb.mxu0 %v2203_v38  ;;  %2430 = vmatpush.msrb.mxu1 %v2235_v2 }
 0x247   :  { %1925 = vmatmul.f32.vlgmr.msrb.gmra.mxu3 %v3711_v39  ;;  %2364 = vmatpush.msra.mxu2 %v2260_v43  ;;  %v3743_v39 = vpop.f32.mrf.mxu1  ;;  %v2168_v43 = vrot.slane %v2130_v0, 2  ;;  %v2278_v0 = vld [vmem:[#allocation5 + $0xb00] sm:$0xff] }
 0x248   :  { %2009 = vmatpush.msra.mxu3 %v1536_v42  ;;  %2408 = vmatpush.msrb.mxu0 %v2201_v52  ;;  %v2167_v42 = vrot.slane %v2126_v50, 2  ;;  %v2280_v50 = vld [vmem:[#allocation5 + $0xb10] sm:$0xff] }
 0x249   :  { %2431 = vmatpush.msrb.mxu1 %v2233_v44  ;;  %2365 = vmatpush.msra.mxu2 %v2258_v8  ;;  %v2271_v44 = vld [vmem:[#allocation5 + $0xac8] sm:$0xff]  ;;  %v2269_v8 = vld [vmem:[#allocation5 + $0xab8] sm:$0xff] }
 0x24a   :  { %2010 = vmatpush.msra.mxu3 %v1534_v45  ;;  %2409 = vmatpush.msrb.mxu0 %v2199_v46  ;;  %v1545_v45 = vld [vmem:[#allocation5 + $0x3b8] sm:$0xff]  ;;  %v1543_v46 = vld [vmem:[#allocation5 + $0x3a8] sm:$0xff] }
 0x24b   :  { %2432 = vmatpush.msrb.mxu1 %v2231_v48  ;;  %2366 = vmatpush.msra.mxu2 %v2256_v49  ;;  %v3760_v48 = vsel %vm2148_vm2, %v2167_v42, %v2168_v43  ;;  %v2267_v49 = vld [vmem:[#allocation5 + $0xaa8] sm:$0xff]  ;;  %v2131_v42 = vld [vmem:[#allocation2 + $0x78] sm:$0x3] }
 0x24c   :  { %2011 = vmatpush.msra.mxu3 %v1532_v30  ;;  %2410 = vmatpush.msrb.mxu0 %v2197_v20  ;;  %v1425_v30 = vld [vmem:[#allocation2 + $0x58] sm:$0xff] }
 0x24d   :  { %2433 = vmatpush.msrb.mxu1 %v2229_v51  ;;  %2367 = vmatpush.msra.mxu2 %v2254_v40  ;;  %v1541_v20 = vld [vmem:[#allocation5 + $0x398] sm:$0xff]  ;;  %v2263_v51 = vld [vmem:[#allocation5 + $0xa88] sm:$0xff] }
 0x24e   :  { %2012 = vmatpush.msra.mxu3 %v1530_v54  ;;  %2411 = vmatpush.msrb.mxu0 %v2195_v15  ;;  %v1537_v54 = vld [vmem:[#allocation5 + $0x378] sm:$0xff]  ;;  %v1535_v15 = vld [vmem:[#allocation5 + $0x368] sm:$0xff] }
 0x24f   :  { %2434 = vmatpush.msrb.mxu1 %v2227_v55  ;;  %1928 = vmatmul.f32.gmra.mxu3 %v3723_v35  ;;  %v1522_v35 = vld [vmem:[#allocation5 + $0x300] sm:$0xff]  ;;  %v2261_v40 = vld [vmem:[#allocation5 + $0xa78] sm:$0xff]  ;;  %v2259_v55 = vld [vmem:[#allocation5 + $0xa68] sm:$0xff] }
 0x250   :  { %2368 = vmatpush.msra.mxu2 %v2252_v56  ;;  %2013 = vmatpush.msra.mxu3 %v1528_v58  ;;  %v1533_v56 = vld [vmem:[#allocation5 + $0x358] sm:$0xff] }
 0x251   :  { %2412 = vmatpush.msrb.mxu0 %v2193_v23  ;;  %2435 = vmatpush.msrb.mxu1 %v2225_v59  ;;  %v2257_v58 = vld [vmem:[#allocation5 + $0xa58] sm:$0xff]  ;;  %v1531_v23 = vld [vmem:[#allocation5 + $0x348] sm:$0xff] }
 0x252   :  { %2369 = vmatpush.msra.mxu2 %v2250_v28  ;;  %2014 = vmatpush.msra.mxu3 %v1526_v29  ;;  %v2253_v28 = vld [vmem:[#allocation5 + $0xa38] sm:$0xff]  ;;  %v1527_v29 = vld [vmem:[#allocation5 + $0x328] sm:$0xff] }
 0x253   :  { %2413 = vmatpush.msrb.mxu0 %v2191_v53  ;;  %2436 = vmatpush.msrb.mxu1 %v2223_v19  ;;  %v2251_v53 = vld [vmem:[#allocation5 + $0xa28] sm:$0xff]  ;;  %v2249_v19 = vld [vmem:[#allocation5 + $0xa18] sm:$0xff] }
 0x254   :  { %2370 = vmatpush.msra.mxu2 %v2248_v62  ;;  %2015 = vmatpush.msra.mxu3 %v1524_v27  ;;  %v1523_v62 = vld [vmem:[#allocation5 + $0x308] sm:$0xff]  ;;  %v2308_v27 = vld [vmem:[#allocation5 + $0xbf0] sm:$0xff]  ;;  %v2305_v43 = vld [vmem:[#allocation5 + $0xbd8] sm:$0xff] }
 0x255   :  { %v1857_v14 = vpop.f32.mrf.mxu0  ;;  %2414 = vmatpush.msrb.mxu0 %v2189_v4  ;;  %2437 = vmatpush.msrb.mxu1 %v2221_v41  ;;  %v2306_v41 = vld [vmem:[#allocation5 + $0xbe0] sm:$0xff] }
 0x256   :  { %v1880_v36 = vpop.f32.mrf.mxu1  ;;  %2371 = vmatpush.msra.mxu2 %v2246_v5  ;;  %2016 = vmatpush.msra.mxu3 %v1522_v35  ;;  %v2304_v5 = vld [vmem:[#allocation5 + $0xbd0] sm:$0xff]  ;;  %v2302_v35 = vld [vmem:[#allocation5 + $0xbc0] sm:$0xff] }
 0x257   :  { %v3746_v11 = vadd.f32 %v1880_v36, %v1857_v14  ;;  %2415 = vmatpush.msrb.mxu0 %v2187_v6  ;;  %2438 = vmatpush.msrb.mxu1 %v2219_v7  ;;  %v2300_v6 = vld [vmem:[#allocation5 + $0xbb0] sm:$0xff]  ;;  %v2294_v7 = vld [vmem:[#allocation5 + $0xb80] sm:$0xff] }
 0x258   :  { %2093 = vmatpush.msrb.mxu3 %v1553_v10  ;;  %2372 = vmatmul.f32.vlgmr.msra.gmra.mxu2 %v3749_v3  ;;  %v2296_v36 = vld [vmem:[#allocation5 + $0xb90] sm:$0xff] }
 0x259   :  { %2017 = vmatmul.f32.vlgmr.msra.gmra.mxu3 %v3751_v13  ;;  %2448 = vmatpush.msrb.mxu2 %v2277_v33  ;;  %v2292_v10 = vld [vmem:[#allocation5 + $0xb70] sm:$0xff]  ;;  %v2290_v33 = vld [vmem:[#allocation5 + $0xb60] sm:$0xff] }
 0x25a   :  { %2416 = vmatpush.msrb.mxu0 %v2185_v9  ;;  %2439 = vmatpush.msrb.mxu1 %v2217_v16  ;;  %v2288_v9 = vld [vmem:[#allocation5 + $0xb50] sm:$0xff] }
 0x25b   :  { %2094 = vmatpush.msrb.mxu3 %v1551_v17  ;;  %2449 = vmatpush.msrb.mxu2 %v2275_v57  ;;  %v2282_v17 = vld [vmem:[#allocation5 + $0xb20] sm:$0xff]  ;;  %v2119_v57 = vld [vmem:[#allocation2 + $0x18] sm:$0xfc] }
 0x25c   :  { %2417 = vmatpush.msrb.mxu0 %v2183_v18  ;;  %2440 = vmatpush.msrb.mxu1 %v2215_v21  ;;  %v2123_v18 = vld [vmem:[#allocation2 + $0x38] sm:$0x3]  ;;  %v2158_v21 = vrot.slane %v2119_v57, 2  ;;  %v2564_v57 = vld [vmem:[#allocation7 + $0x108] sm:$0xff] }
 0x25d   :  { %v1860_v38 = vpop.f32.mrf.mxu0  ;;  %2095 = vmatpush.msrb.mxu3 %v1549_v22  ;;  %2418 = vmatmul.f32.vlgmr.msrb.gmra.mxu0 %v3716_v63  ;;  %v2265_v63 = vld [vmem:[#allocation5 + $0xa98] sm:$0xff]  ;;  %v2159_v22 = vrot.slane %v2123_v18, 2  ;;  %v2556_v18 = vld [vmem:[#allocation7 + $0xc8] sm:$0xff] }
 0x25e   :  { %v1883_v2 = vpop.f32.mrf.mxu1  ;;  %2441 = vmatmul.f32.vlgmr.msrb.gmra.mxu1 %v3720_v25  ;;  %2450 = vmatpush.msrb.mxu2 %v2273_v61  ;;  %v1539_v25 = vld [vmem:[#allocation5 + $0x388] sm:$0xff]  ;;  %v2309_v61 = vld [vmem:[#allocation5 + $0xbf8] sm:$0xff] }
 0x25f   :  { %v3755_v52 = vadd.f32 %v1883_v2, %v1860_v38  ;;  %2096 = vmatpush.msrb.mxu3 %v1547_v37  ;;  %v2160_v37 = vsel %vm2148_vm2, %v2158_v21, %v2159_v22  ;;  %v2307_v38 = vld [vmem:[#allocation5 + $0xbe8] sm:$0xff]  ;;  %v2127_v2 = vld [vmem:[#allocation2 + $0x58] sm:$0xfc]  ;;  %v2539_v22 = vld [vmem:[#allocation7 + $0x40] sm:$0xff] }
 0x260   :  { %2451 = vmatpush.msrb.mxu2 %v2271_v44  ;;  %v2171_v44 = vrot.slane %v2131_v42, 2  ;;  %v2548_v21 = vld [vmem:[#allocation7 + $0x88] sm:$0xff]  ;;  %v2653_v42 = vld [vmem:[#allocation7 + $0x3d0] sm:$0xff] }
 0x261   :  { %2097 = vmatpush.msrb.mxu3 %v1545_v45  ;;  %2375 = vmatmul.f32.gmra.mxu2 %v3760_v48  ;;  %v2303_v45 = vld [vmem:[#allocation5 + $0xbc8] sm:$0xff] }
 0x262   :  { %2020 = vmatmul.f32.gmra.mxu3 %v1425_v30  ;;  %2452 = vmatpush.msrb.mxu2 %v2269_v8  ;;  %v2301_v8 = vld [vmem:[#allocation5 + $0xbb8] sm:$0xff] }
 0x263   :  { %2098 = vmatpush.msrb.mxu3 %v1543_v46 }
 0x264   :  { %2453 = vmatpush.msrb.mxu2 %v2267_v49  ;;  %v2295_v49 = vld [vmem:[#allocation5 + $0xb88] sm:$0xff] }
 0x265   :  { %2099 = vmatpush.msrb.mxu3 %v1541_v20  ;;  %2421 = vmatmul.f32.gmra.mxu0 %v3733_v1  ;;  %v2255_v1 = vld [vmem:[#allocation5 + $0xa48] sm:$0xff]  ;;  %v2293_v20 = vld [vmem:[#allocation5 + $0xb78] sm:$0xff] }
 0x266   :  { %2444 = vmatmul.f32.gmra.mxu1 %v3736_v32  ;;  %2454 = vmatpush.msrb.mxu2 %v2265_v63  ;;  %v1529_v32 = vld [vmem:[#allocation5 + $0x338] sm:$0xff]  ;;  %v2291_v63 = vld [vmem:[#allocation5 + $0xb68] sm:$0xff] }
 0x267   :  { %2100 = vmatpush.msrb.mxu3 %v1539_v25  ;;  %v2289_v25 = vld [vmem:[#allocation5 + $0xb58] sm:$0xff] }
 0x268   :  { %2455 = vmatpush.msrb.mxu2 %v2263_v51  ;;  %v3765_v59 = vpop.f32.mrf.mxu2  ;;  %v2287_v51 = vld [vmem:[#allocation5 + $0xb48] sm:$0xff] }
 0x269   :  { %2101 = vmatpush.msrb.mxu3 %v1537_v54  ;;  %v2285_v54 = vld [vmem:[#allocation5 + $0xb38] sm:$0xff] }
 0x26a   :  { %2456 = vmatpush.msrb.mxu2 %v2261_v40  ;;  %v2283_v40 = vld [vmem:[#allocation5 + $0xb28] sm:$0xff] }
 0x26b   :  { %2102 = vmatpush.msrb.mxu3 %v1535_v15  ;;  %v2281_v15 = vld [vmem:[#allocation5 + $0xb18] sm:$0xff] }
 0x26c   :  { %2457 = vmatpush.msrb.mxu2 %v2259_v55  ;;  %v2279_v55 = vld [vmem:[#allocation5 + $0xb08] sm:$0xff] }
 0x26d   :  { %2103 = vmatpush.msrb.mxu3 %v1533_v56 }
 0x26e   :  { %2458 = vmatpush.msrb.mxu2 %v2257_v58 }
 0x26f   :  { %2104 = vmatpush.msrb.mxu3 %v1531_v23  ;;  %v2651_v23 = vld [vmem:[#allocation7 + $0x3c0] sm:$0xff] }
 0x270   :  { %2459 = vmatpush.msrb.mxu2 %v2255_v1  ;;  %v3767_v4 = vpop.f32.mrf.mxu2  ;;  %v2652_v1 = vld [vmem:[#allocation7 + $0x3c8] sm:$0xff]  ;;  %2804 = vmatpush.msra.mxu0 %v2651_v23  ;;  %v2739_v23 = vld [vmem:[#allocation7 + $0x680] sm:$0xff] }
 0x271   :  { %2105 = vmatpush.msrb.mxu3 %v1529_v32  ;;  %v2643_v32 = vld [vmem:[#allocation7 + $0x380] sm:$0xff] }
 0x272   :  { %2460 = vmatpush.msrb.mxu2 %v2253_v28  ;;  %v2644_v28 = vld [vmem:[#allocation7 + $0x388] sm:$0xff]  ;;  %2805 = vmatpush.msra.mxu0 %v2643_v32 }
 0x273   :  { %2106 = vmatpush.msrb.mxu3 %v1527_v29  ;;  %v2635_v29 = vld [vmem:[#allocation7 + $0x340] sm:$0xff] }
 0x274   :  { %2461 = vmatpush.msrb.mxu2 %v2251_v53  ;;  %v2636_v53 = vld [vmem:[#allocation7 + $0x348] sm:$0xff]  ;;  %2806 = vmatpush.msra.mxu0 %v2635_v29  ;;  %v2614_v29 = vld [vmem:[#allocation7 + $0x298] sm:$0xff] }
 0x275   :  { %2107 = vmatpush.msrb.mxu3 %v1525_v24  ;;  %v3790_v32 = vpop.f32.mrf.mxu0 }
 0x276   :  { %2462 = vmatpush.msrb.mxu2 %v2249_v19  ;;  %v2627_v19 = vld [vmem:[#allocation7 + $0x300] sm:$0xff] }
 0x277   :  { %2108 = vmatpush.msrb.mxu3 %v1523_v62  ;;  %v2628_v62 = vld [vmem:[#allocation7 + $0x308] sm:$0xff]  ;;  %2807 = vmatpush.msra.mxu0 %v2627_v19 }
 0x278   :  { %2109 = vmatmul.f32.vlgmr.msrb.gmra.mxu3 %v3751_v13  ;;  %2463 = vmatpush.msrb.mxu2 %v2247_v34  ;;  %v1903_v60 = vpop.f32.mrf.mxu2  ;;  %v2732_v19 = vld [vmem:[#allocation7 + $0x648] sm:$0xff] }
 0x279   :  { %2379 = vmatpush.msra.mxu3 %v2308_v27  ;;  %2464 = vmatmul.f32.vlgmr.msrb.gmra.mxu2 %v3749_v3  ;;  %v3772_v14 = vadd.f32 %v1903_v60, %v3746_v11  ;;  %v2286_v3 = vld [vmem:[#allocation5 + $0xb40] sm:$0xff]  ;;  %v2284_v11 = vld [vmem:[#allocation5 + $0xb30] sm:$0xff] }
 0x27a   :  { %2850 = vmatpush.msra.mxu2 %v2652_v1  ;;  %v2619_v27 = vld [vmem:[#allocation7 + $0x2c0] sm:$0xff]  ;;  %v2740_v1 = vld [vmem:[#allocation7 + $0x688] sm:$0xff] }
 0x27b   :  { %2380 = vmatpush.msra.mxu3 %v2306_v41  ;;  %v2620_v41 = vld [vmem:[#allocation7 + $0x2c8] sm:$0xff]  ;;  %2808 = vmatpush.msra.mxu0 %v2619_v27  ;;  %v2595_v60 = vld [vmem:[#allocation7 + $0x200] sm:$0xff]  ;;  %v2606_v27 = vld [vmem:[#allocation7 + $0x258] sm:$0xff] }
 0x27c   :  { %2851 = vmatpush.msra.mxu2 %v2644_v28  ;;  %v2613_v28 = vld [vmem:[#allocation7 + $0x290] sm:$0xff] }
 0x27d   :  { %2381 = vmatpush.msra.mxu3 %v2304_v5  ;;  %v2611_v5 = vld [vmem:[#allocation7 + $0x280] sm:$0xff] }
 0x27e   :  { %2852 = vmatpush.msra.mxu2 %v2636_v53  ;;  %2809 = vmatpush.msra.mxu0 %v2611_v5  ;;  %v3792_v53 = vpop.f32.mrf.mxu1  ;;  %v2723_v5 = vld [vmem:[#allocation7 + $0x600] sm:$0xff] }
 0x27f   :  { %2382 = vmatpush.msra.mxu3 %v2302_v35  ;;  %v2612_v35 = vld [vmem:[#allocation7 + $0x288] sm:$0xff] }
 0x280   :  { %2112 = vmatmul.f32.gmra.mxu3 %v1425_v30  ;;  %v1906_v13 = vpop.f32.mrf.mxu2  ;;  %v2297_v30 = vld [vmem:[#allocation5 + $0xb98] sm:$0xff]  ;;  %2853 = vmatpush.msra.mxu2 %v2628_v62  ;;  %v2605_v62 = vld [vmem:[#allocation7 + $0x250] sm:$0xff] }
 0x281   :  { %2383 = vmatpush.msra.mxu3 %v2300_v6  ;;  %2467 = vmatmul.f32.gmra.mxu2 %v3760_v48  ;;  %v3776_v16 = vadd.f32 %v1906_v13, %v3755_v52  ;;  %v2170_v52 = vrot.slane %v2127_v2, 2  ;;  %v2299_v48 = vld [vmem:[#allocation5 + $0xba8] sm:$0xff]  ;;  %v2603_v6 = vld [vmem:[#allocation7 + $0x240] sm:$0xff] }
 0x282   :  { %2854 = vmatpush.msra.mxu2 %v2620_v41  ;;  %2810 = vmatpush.msra.mxu0 %v2603_v6  ;;  %v2571_v13 = vld [vmem:[#allocation7 + $0x140] sm:$0xff]  ;;  %v2780_v2 = vld [vmem:[#allocation7 + $0x7c8] sm:$0xff]  ;;  %v2597_v6 = vld [vmem:[#allocation7 + $0x210] sm:$0xff] }
 0x283   :  { %2384 = vmatpush.msra.mxu3 %v2298_v26  ;;  %v2172_v46 = vsel %vm2148_vm2, %v2170_v52, %v2171_v44  ;;  %v2604_v26 = vld [vmem:[#allocation7 + $0x248] sm:$0xff]  ;;  %v2771_v52 = vld [vmem:[#allocation7 + $0x780] sm:$0xff] }
 0x284   :  { %2855 = vmatpush.msra.mxu2 %v2612_v35  ;;  %2811 = vmatpush.msra.mxu0 %v2595_v60  ;;  %v2772_v44 = vld [vmem:[#allocation7 + $0x788] sm:$0xff]  ;;  %v2715_v60 = vld [vmem:[#allocation7 + $0x5c0] sm:$0xff] }
 0x285   :  { %2385 = vmatpush.msra.mxu3 %v2296_v36  ;;  %v2596_v36 = vld [vmem:[#allocation7 + $0x208] sm:$0xff] }
 0x286   :  { %2856 = vmatpush.msra.mxu2 %v2604_v26  ;;  %v2724_v35 = vld [vmem:[#allocation7 + $0x608] sm:$0xff]  ;;  %v2598_v26 = vld [vmem:[#allocation7 + $0x218] sm:$0xff] }
 0x287   :  { %2386 = vmatpush.msra.mxu3 %v2294_v7 }
 0x288   :  { %2857 = vmatpush.msra.mxu2 %v2596_v36  ;;  %v2716_v36 = vld [vmem:[#allocation7 + $0x5c8] sm:$0xff] }
 0x289   :  { %2387 = vmatpush.msra.mxu3 %v2292_v10  ;;  %v2587_v10 = vld [vmem:[#allocation7 + $0x1c0] sm:$0xff] }
 0x28a   :  { %2812 = vmatpush.msra.mxu0 %v2587_v10  ;;  %v2590_v10 = vld [vmem:[#allocation7 + $0x1d8] sm:$0xff] }
 0x28b   :  { %2388 = vmatpush.msra.mxu3 %v2290_v33  ;;  %v2588_v33 = vld [vmem:[#allocation7 + $0x1c8] sm:$0xff] }
 0x28c   :  { %2858 = vmatpush.msra.mxu2 %v2588_v33  ;;  %v2707_v33 = vld [vmem:[#allocation7 + $0x580] sm:$0xff] }
 0x28d   :  { %2389 = vmatpush.msra.mxu3 %v2288_v9  ;;  %v2579_v9 = vld [vmem:[#allocation7 + $0x180] sm:$0xff] }
 0x28e   :  { %2813 = vmatpush.msra.mxu0 %v2579_v9  ;;  %v2708_v9 = vld [vmem:[#allocation7 + $0x588] sm:$0xff] }
 0x28f   :  { %2390 = vmatpush.msra.mxu3 %v2286_v3  ;;  %v2580_v3 = vld [vmem:[#allocation7 + $0x188] sm:$0xff]  ;;  %v3794_v41 = vpop.f32.mrf.mxu2 }
 0x290   :  { %2859 = vmatpush.msra.mxu2 %v2580_v3  ;;  %2814 = vmatpush.msra.mxu0 %v2571_v13  ;;  %v2581_v3 = vld [vmem:[#allocation7 + $0x190] sm:$0xff]  ;;  %v2582_v13 = vld [vmem:[#allocation7 + $0x198] sm:$0xff] }
 0x291   :  { %2391 = vmatpush.msra.mxu3 %v2284_v11  ;;  %v2572_v11 = vld [vmem:[#allocation7 + $0x148] sm:$0xff] }
 0x292   :  { %2860 = vmatpush.msra.mxu2 %v2572_v11 }
 0x293   :  { %2392 = vmatpush.msra.mxu3 %v2282_v17  ;;  %v2563_v17 = vld [vmem:[#allocation7 + $0x100] sm:$0xff] }
 0x294   :  { %2815 = vmatpush.msra.mxu0 %v2563_v17  ;;  %2861 = vmatpush.msra.mxu2 %v2564_v57  ;;  %v2699_v17 = vld [vmem:[#allocation7 + $0x540] sm:$0xff]  ;;  %v2700_v57 = vld [vmem:[#allocation7 + $0x548] sm:$0xff] }
 0x295   :  { %2393 = vmatpush.msra.mxu3 %v2280_v50  ;;  %v2547_v50 = vld [vmem:[#allocation7 + $0x80] sm:$0xff] }
 0x296   :  { %2862 = vmatpush.msra.mxu2 %v2556_v18  ;;  %v2573_v18 = vld [vmem:[#allocation7 + $0x150] sm:$0xff] }
 0x297   :  { %2394 = vmatpush.msra.mxu3 %v2278_v0  ;;  %v2540_v0 = vld [vmem:[#allocation7 + $0x48] sm:$0xff] }
 0x298   :  { %2395 = vmatmul.f32.vlgmr.msra.gmra.mxu3 %v2160_v37  ;;  %2863 = vmatpush.msra.mxu2 %v2548_v21  ;;  %v3800_v21 = vpop.f32.mrf.mxu1 }
 0x299   :  { %2471 = vmatpush.msrb.mxu3 %v2309_v61  ;;  %v2531_v61 = vld [vmem:[#allocation7] sm:$0xff] }
 0x29a   :  { %2864 = vmatpush.msra.mxu2 %v2540_v0  ;;  %v2691_v0 = vld [vmem:[#allocation7 + $0x500] sm:$0xff] }
 0x29b   :  { %2472 = vmatpush.msrb.mxu3 %v2307_v38  ;;  %v2779_v38 = vld [vmem:[#allocation7 + $0x7c0] sm:$0xff] }
 0x29c   :  { %2827 = vmatpush.msra.mxu1 %v2779_v38  ;;  %v2566_v38 = vld [vmem:[#allocation7 + $0x118] sm:$0xff] }
 0x29d   :  { %2473 = vmatpush.msrb.mxu3 %v2305_v43  ;;  %v2654_v43 = vld [vmem:[#allocation7 + $0x3d8] sm:$0xff] }
 0x29e   :  { %2828 = vmatpush.msra.mxu1 %v2771_v52  ;;  %v2558_v52 = vld [vmem:[#allocation7 + $0xd8] sm:$0xff] }
 0x29f   :  { %2474 = vmatpush.msrb.mxu3 %v2303_v45  ;;  %v2645_v45 = vld [vmem:[#allocation7 + $0x390] sm:$0xff] }
 0x2a0   :  { %2398 = vmatmul.f32.gmra.mxu3 %v2172_v46 }
 0x2a1   :  { %2475 = vmatpush.msrb.mxu3 %v2301_v8  ;;  %v2646_v8 = vld [vmem:[#allocation7 + $0x398] sm:$0xff] }
 0x2a3   :  { %2476 = vmatpush.msrb.mxu3 %v2299_v48  ;;  %v2764_v48 = vld [vmem:[#allocation7 + $0x748] sm:$0xff] }
 0x2a5   :  { %2477 = vmatpush.msrb.mxu3 %v2297_v30  ;;  %v2637_v30 = vld [vmem:[#allocation7 + $0x350] sm:$0xff] }
 0x2a7   :  { %2478 = vmatpush.msrb.mxu3 %v2295_v49  ;;  %v2638_v49 = vld [vmem:[#allocation7 + $0x358] sm:$0xff] }
 0x2a9   :  { %2479 = vmatpush.msrb.mxu3 %v2293_v20  ;;  %v2755_v20 = vld [vmem:[#allocation7 + $0x700] sm:$0xff] }
 0x2ab   :  { %2480 = vmatpush.msrb.mxu3 %v2291_v63  ;;  %v2756_v63 = vld [vmem:[#allocation7 + $0x708] sm:$0xff] }
 0x2ad   :  { %2481 = vmatpush.msrb.mxu3 %v2289_v25  ;;  %v2629_v25 = vld [vmem:[#allocation7 + $0x310] sm:$0xff] }
 0x2af   :  { %2482 = vmatpush.msrb.mxu3 %v2287_v51  ;;  %v2630_v51 = vld [vmem:[#allocation7 + $0x318] sm:$0xff] }
 0x2b1   :  { %2483 = vmatpush.msrb.mxu3 %v2285_v54  ;;  %v2747_v54 = vld [vmem:[#allocation7 + $0x6c0] sm:$0xff] }
 0x2b3   :  { %2484 = vmatpush.msrb.mxu3 %v2283_v40  ;;  %v2748_v40 = vld [vmem:[#allocation7 + $0x6c8] sm:$0xff] }
 0x2b5   :  { %2485 = vmatpush.msrb.mxu3 %v2281_v15  ;;  %v3780_v56 = vpop.f32.mrf.mxu3  ;;  %v2621_v15 = vld [vmem:[#allocation7 + $0x2d0] sm:$0xff] }
 0x2b7   :  { %2486 = vmatpush.msrb.mxu3 %v2279_v55  ;;  %v2622_v55 = vld [vmem:[#allocation7 + $0x2d8] sm:$0xff] }
 0x2b8   :  { %2487 = vmatmul.f32.vlgmr.msrb.gmra.mxu3 %v2160_v37  ;;  %v2532_v37 = vld [vmem:[#allocation7 + $0x8] sm:$0xff] }
 0x2b9   :  { %2865 = vmatpush.msra.mxu2 %v2532_v37  ;;  %2873 = vmatpush.msra.mxu3 %v2780_v2  ;;  %v2565_v37 = vld [vmem:[#allocation7 + $0x110] sm:$0xff]  ;;  %v2683_v2 = vld [vmem:[#allocation7 + $0x4c0] sm:$0xff] }
 0x2bb   :  { %2942 = vmatpush.msrb.mxu2 %v2654_v43  ;;  %2874 = vmatpush.msra.mxu3 %v2772_v44  ;;  %v2557_v43 = vld [vmem:[#allocation7 + $0xd0] sm:$0xff]  ;;  %v2675_v44 = vld [vmem:[#allocation7 + $0x480] sm:$0xff] }
 0x2bd   :  { %2943 = vmatpush.msrb.mxu2 %v2646_v8  ;;  %2875 = vmatpush.msra.mxu3 %v2764_v48  ;;  %v2549_v8 = vld [vmem:[#allocation7 + $0x90] sm:$0xff]  ;;  %v2550_v48 = vld [vmem:[#allocation7 + $0x98] sm:$0xff] }
 0x2be   :  { %v3782_v58 = vpop.f32.mrf.mxu3 }
 0x2bf   :  { %2944 = vmatpush.msrb.mxu2 %v2638_v49  ;;  %2876 = vmatpush.msra.mxu3 %v2756_v63  ;;  %v2668_v63 = vld [vmem:[#allocation7 + $0x448] sm:$0xff] }
 0x2c0   :  { %2490 = vmatmul.f32.gmra.mxu3 %v2172_v46  ;;  %v2763_v46 = vld [vmem:[#allocation7 + $0x740] sm:$0xff] }
 0x2c1   :  { %2829 = vmatpush.msra.mxu1 %v2763_v46  ;;  %2945 = vmatpush.msrb.mxu2 %v2630_v51  ;;  %v2542_v51 = vld [vmem:[#allocation7 + $0x58] sm:$0xff] }
 0x2c2   :  { %2877 = vmatpush.msra.mxu3 %v2748_v40  ;;  %v2659_v40 = vld [vmem:[#allocation7 + $0x400] sm:$0xff] }
 0x2c3   :  { %2830 = vmatpush.msra.mxu1 %v2755_v20  ;;  %2946 = vmatpush.msrb.mxu2 %v2622_v55  ;;  %v2667_v20 = vld [vmem:[#allocation7 + $0x440] sm:$0xff]  ;;  %v2533_v55 = vld [vmem:[#allocation7 + $0x10] sm:$0xff] }
 0x2c4   :  { %2878 = vmatpush.msra.mxu3 %v2740_v1  ;;  %v2781_v1 = vld [vmem:[#allocation7 + $0x7d0] sm:$0xff] }
 0x2c5   :  { %2831 = vmatpush.msra.mxu1 %v2747_v54  ;;  %2947 = vmatpush.msrb.mxu2 %v2614_v29  ;;  %v2773_v29 = vld [vmem:[#allocation7 + $0x790] sm:$0xff] }
 0x2c6   :  { %2879 = vmatpush.msra.mxu3 %v2732_v19  ;;  %v2765_v19 = vld [vmem:[#allocation7 + $0x750] sm:$0xff] }
 0x2c7   :  { %2832 = vmatpush.msra.mxu1 %v2739_v23  ;;  %2948 = vmatpush.msrb.mxu2 %v2606_v27  ;;  %v2534_v23 = vld [vmem:[#allocation7 + $0x18] sm:$0xff] }
 0x2c8   :  { %2880 = vmatpush.msra.mxu3 %v2724_v35 }
 0x2c9   :  { %2949 = vmatpush.msrb.mxu2 %v2598_v26  ;;  %v2758_v26 = vld [vmem:[#allocation7 + $0x718] sm:$0xff] }
 0x2ca   :  { %v1926_v24 = vpop.f32.mrf.mxu3  ;;  %2881 = vmatpush.msra.mxu3 %v2716_v36 }
 0x2cb   :  { %v3785_v34 = vadd.f32 %v1926_v24, %v3772_v14  ;;  %v2731_v24 = vld [vmem:[#allocation7 + $0x640] sm:$0xff]  ;;  %2950 = vmatpush.msrb.mxu2 %v2590_v10  ;;  %v2750_v10 = vld [vmem:[#allocation7 + $0x6d8] sm:$0xff] }
 0x2cc   :  { %2833 = vmatpush.msra.mxu1 %v2731_v24  ;;  %2882 = vmatpush.msra.mxu3 %v2708_v9  ;;  %v2774_v24 = vld [vmem:[#allocation7 + $0x798] sm:$0xff]  ;;  %v2741_v9 = vld [vmem:[#allocation7 + $0x690] sm:$0xff] }
 0x2cd   :  { %2951 = vmatpush.msrb.mxu2 %v2582_v13  ;;  %v2734_v13 = vld [vmem:[#allocation7 + $0x658] sm:$0xff] }
 0x2ce   :  { %2834 = vmatpush.msra.mxu1 %v2723_v5  ;;  %2883 = vmatpush.msra.mxu3 %v2700_v57  ;;  %v1789_v5 = vadd.f32 %v3730_v31, %v3728_v47  ;;  %v2733_v31 = vld [vmem:[#allocation7 + $0x650] sm:$0xff]  ;;  %v2726_v57 = vld [vmem:[#allocation7 + $0x618] sm:$0xff] }
 0x2d0   :  { %2835 = vmatpush.msra.mxu1 %v2715_v60  ;;  %v1812_v36 = vadd.f32 %v3765_v59, %v1789_v5  ;;  %v1792_v59 = vadd.f32 %v3743_v39, %v3741_v12  ;;  %v2701_v39 = vld [vmem:[#allocation7 + $0x550] sm:$0xff] }
 0x2d2   :  { %v1929_v7 = vpop.f32.mrf.mxu3  ;;  %2836 = vmatpush.msra.mxu1 %v2707_v33  ;;  %v1835_v47 = vadd.f32 %v3780_v56, %v1812_v36  ;;  %v1815_v56 = vadd.f32 %v3767_v4, %v1792_v59  ;;  %v2655_v36 = vld [vmem:[#allocation7 + $0x3e0] sm:$0xff] }
 0x2d3   :  { %v3788_v14 = vadd.f32 %v1929_v7, %v3776_v16  ;;  %v2555_v16 = vld [vmem:[#allocation7 + $0xc0] sm:$0xff]  ;;  %v2589_v7 = vld [vmem:[#allocation7 + $0x1d0] sm:$0xff] }
 0x2d4   :  { %2816 = vmatpush.msra.mxu0 %v2555_v16  ;;  %v3798_v16 = vpop.f32.mrf.mxu0  ;;  %2837 = vmatpush.msra.mxu1 %v2699_v17  ;;  %v2725_v17 = vld [vmem:[#allocation7 + $0x610] sm:$0xff] }
 0x2d6   :  { %2817 = vmatpush.msra.mxu0 %v2547_v50  ;;  %v2574_v50 = vld [vmem:[#allocation7 + $0x158] sm:$0xff]  ;;  %2838 = vmatpush.msra.mxu1 %v2691_v0 }
 0x2d7   :  { %2952 = vmatpush.msrb.mxu2 %v2574_v50  ;;  %v1950_v50 = vadd.f32 %v3790_v32, %v1835_v47  ;;  %v2702_v32 = vld [vmem:[#allocation7 + $0x558] sm:$0xff] }
 0x2d8   :  { %2818 = vmatpush.msra.mxu0 %v2539_v22  ;;  %v3802_v22 = vpop.f32.mrf.mxu2  ;;  %2839 = vmatpush.msra.mxu1 %v2683_v2 }
 0x2d9   :  { %2953 = vmatpush.msrb.mxu2 %v2566_v38  ;;  %v2718_v38 = vld [vmem:[#allocation7 + $0x5d8] sm:$0xff]  ;;  %v1973_v12 = vadd.f32 %v3792_v53, %v1950_v50  ;;  %v2632_v50 = vld [vmem:[#allocation7 + $0x328] sm:$0xff] }
 0x2da   :  { %2819 = vmatpush.msra.mxu0 %v2531_v61  ;;  %v2692_v61 = vld [vmem:[#allocation7 + $0x508] sm:$0xff]  ;;  %2840 = vmatpush.msra.mxu1 %v2675_v44 }
 0x2db   :  { %2884 = vmatpush.msra.mxu3 %v2692_v61  ;;  %2954 = vmatpush.msrb.mxu2 %v2558_v52  ;;  %v1838_v52 = vadd.f32 %v3782_v58, %v1815_v56  ;;  %v2694_v58 = vld [vmem:[#allocation7 + $0x518] sm:$0xff]  ;;  %v2624_v56 = vld [vmem:[#allocation7 + $0x2e8] sm:$0xff] }
 0x2dc   :  { %2896 = vmatpush.msrb.mxu0 %v2653_v42  ;;  %v3796_v11 = vpop.f32.mrf.mxu3  ;;  %v2684_v42 = vld [vmem:[#allocation7 + $0x4c8] sm:$0xff]  ;;  %v3804_v46 = vpop.f32.mrf.mxu0  ;;  %2841 = vmatpush.msra.mxu1 %v2667_v20  ;;  %v2693_v20 = vld [vmem:[#allocation7 + $0x510] sm:$0xff] }
 0x2dd   :  { %2885 = vmatpush.msra.mxu3 %v2684_v42  ;;  %2955 = vmatpush.msrb.mxu2 %v2550_v48  ;;  %v2709_v42 = vld [vmem:[#allocation7 + $0x590] sm:$0xff]  ;;  %v1953_v4 = vadd.f32 %v3798_v16, %v1838_v52  ;;  %v1996_v48 = vadd.f32 %v3794_v41, %v1973_v12  ;;  %v2600_v52 = vld [vmem:[#allocation7 + $0x228] sm:$0xff]  ;;  %v2042_v12 = vadd.f32 %v3804_v46, %v3785_v34  ;;  %v2567_v46 = vld [vmem:[#allocation7 + $0x120] sm:$0xff] }
 0x2de   :  { %2897 = vmatpush.msrb.mxu0 %v2645_v45  ;;  %v2676_v45 = vld [vmem:[#allocation7 + $0x488] sm:$0xff]  ;;  %2842 = vmatpush.msra.mxu1 %v2659_v40  ;;  %v2685_v40 = vld [vmem:[#allocation7 + $0x4d0] sm:$0xff] }
 0x2df   :  { %2886 = vmatpush.msra.mxu3 %v2676_v45  ;;  %2956 = vmatpush.msrb.mxu2 %v2542_v51  ;;  %v3832_v45 = vld [vmem:[#allocation8 + $0x1] ss:$4 sm:$0x3]  ;;  %v2019_v53 = vadd.f32 %v3796_v11, %v1996_v48  ;;  %v1976_v16 = vadd.f32 %v3800_v21, %v1953_v4  ;;  %v2677_v41 = vld [vmem:[#allocation7 + $0x490] sm:$0xff]  ;;  %v2584_v48 = vld [vmem:[#allocation7 + $0x1a8] sm:$0xff] }
 0x2e0   :  { %2898 = vmatpush.msrb.mxu0 %v2637_v30  ;;  %v3806_v30 = vpop.f32.mrf.mxu1  ;;  %v3810_v54 = vpop.f32.mrf.mxu2  ;;  %2919 = vmatpush.msrb.mxu1 %v2781_v1  ;;  %v2501_v51 = vperm.slane %v3832_v45, 0  ;;  %v2669_v11 = vld [vmem:[#allocation7 + $0x450] sm:$0xff] }
 0x2e1   :  { %2887 = vmatpush.msra.mxu3 %v2668_v63  ;;  %2957 = vmatpush.msrb.mxu2 %v2534_v23 }
 0x2e2   :  { %2899 = vmatpush.msrb.mxu0 %v2629_v25  ;;  %v2541_v25 = vld [vmem:[#allocation7 + $0x50] sm:$0xff]  ;;  %2920 = vmatpush.msrb.mxu1 %v2773_v29 }
 0x2e4   :  { %2900 = vmatpush.msrb.mxu0 %v2621_v15  ;;  %v2660_v15 = vld [vmem:[#allocation7 + $0x408] sm:$0xff]  ;;  %v3816_v35 = vpop.f32.mrf.mxu0  ;;  %2921 = vmatpush.msrb.mxu1 %v2765_v19 }
 0x2e5   :  { %v3808_v49 = vpop.f32.mrf.mxu3  ;;  %2888 = vmatpush.msra.mxu3 %v2660_v15  ;;  %v2686_v15 = vld [vmem:[#allocation7 + $0x4d8] sm:$0xff] }
 0x2e6   :  { %2901 = vmatpush.msrb.mxu0 %v2613_v28  ;;  %v2782_v28 = vld [vmem:[#allocation7 + $0x7d8] sm:$0xff] }
 0x2e7   :  { %2965 = vmatpush.msrb.mxu3 %v2782_v28  ;;  %v2678_v28 = vld [vmem:[#allocation7 + $0x498] sm:$0xff] }
 0x2e8   :  { %2902 = vmatpush.msrb.mxu0 %v2605_v62  ;;  %v2766_v62 = vld [vmem:[#allocation7 + $0x758] sm:$0xff]  ;;  %v3818_v60 = vpop.f32.mrf.mxu1  ;;  %v3821_v33 = vpop.f32.mrf.mxu2 }
 0x2e9   :  { %2966 = vmatpush.msrb.mxu3 %v2774_v24 }
 0x2ea   :  { %2903 = vmatpush.msrb.mxu0 %v2597_v6  ;;  %v2757_v6 = vld [vmem:[#allocation7 + $0x710] sm:$0xff] }
 0x2eb   :  { %2967 = vmatpush.msrb.mxu3 %v2766_v62  ;;  %2922 = vmatpush.msrb.mxu1 %v2757_v6  ;;  %v2670_v62 = vld [vmem:[#allocation7 + $0x458] sm:$0xff]  ;;  %v1999_v6 = vadd.f32 %v3802_v22, %v1976_v16 }
 0x2ec   :  { %2904 = vmatpush.msrb.mxu0 %v2589_v7  ;;  %v2749_v7 = vld [vmem:[#allocation7 + $0x6d0] sm:$0xff] }
 0x2ed   :  { %2968 = vmatpush.msrb.mxu3 %v2758_v26  ;;  %2923 = vmatpush.msrb.mxu1 %v2749_v7  ;;  %v2656_v7 = vld [vmem:[#allocation7 + $0x3e8] sm:$0xff] }
 0x2ee   :  { %2905 = vmatpush.msrb.mxu0 %v2581_v3  ;;  %v2742_v3 = vld [vmem:[#allocation7 + $0x698] sm:$0xff] }
 0x2ef   :  { %2969 = vmatpush.msrb.mxu3 %v2750_v10  ;;  %2924 = vmatpush.msrb.mxu1 %v2741_v9  ;;  %v2661_v10 = vld [vmem:[#allocation7 + $0x410] sm:$0xff]  ;;  %v2662_v9 = vld [vmem:[#allocation7 + $0x418] sm:$0xff] }
 0x2f0   :  { %2906 = vmatpush.msrb.mxu0 %v2573_v18  ;;  %v2327_v18 = vpop.f32.mrf.mxu0  ;;  %v2350_v0 = vpop.f32.mrf.mxu1 }
 0x2f1   :  { %2970 = vmatpush.msrb.mxu3 %v2742_v3  ;;  %2925 = vmatpush.msrb.mxu1 %v2733_v31  ;;  %v2373_v2 = vpop.f32.mrf.mxu2  ;;  %v2351_v44 = vadd.f32 %v2350_v0, %v2327_v18  ;;  %v2022_v3 = vadd.f32 %v3808_v49, %v1999_v6  ;;  %v2647_v31 = vld [vmem:[#allocation7 + $0x3a0] sm:$0xff]  ;;  %v2536_v6 = vld [vmem:[#allocation7 + $0x28] sm:$0xff] }
 0x2f2   :  { %2907 = vmatpush.msrb.mxu0 %v2565_v37  ;;  %v2717_v37 = vld [vmem:[#allocation7 + $0x5d0] sm:$0xff]  ;;  %v2631_v18 = vld [vmem:[#allocation7 + $0x320] sm:$0xff] }
 0x2f3   :  { %2971 = vmatpush.msrb.mxu3 %v2734_v13  ;;  %2926 = vmatpush.msrb.mxu1 %v2725_v17  ;;  %v2648_v13 = vld [vmem:[#allocation7 + $0x3a8] sm:$0xff]  ;;  %v2639_v17 = vld [vmem:[#allocation7 + $0x360] sm:$0xff] }
 0x2f4   :  { %2908 = vmatpush.msrb.mxu0 %v2557_v43  ;;  %v2710_v43 = vld [vmem:[#allocation7 + $0x598] sm:$0xff]  ;;  %v2623_v0 = vld [vmem:[#allocation7 + $0x2e0] sm:$0xff] }
 0x2f5   :  { %2972 = vmatpush.msrb.mxu3 %v2726_v57  ;;  %2927 = vmatpush.msrb.mxu1 %v2717_v37  ;;  %v2640_v57 = vld [vmem:[#allocation7 + $0x368] sm:$0xff]  ;;  %v2615_v37 = vld [vmem:[#allocation7 + $0x2a0] sm:$0xff] }
 0x2f6   :  { %2909 = vmatpush.msrb.mxu0 %v2549_v8  ;;  %v2374_v8 = vadd.f32 %v2373_v2, %v2351_v44  ;;  %v2607_v2 = vld [vmem:[#allocation7 + $0x260] sm:$0xff] }
 0x2f7   :  { %2973 = vmatpush.msrb.mxu3 %v2718_v38  ;;  %2928 = vmatpush.msrb.mxu1 %v2709_v42  ;;  %v2616_v38 = vld [vmem:[#allocation7 + $0x2a8] sm:$0xff] }
 0x2f8   :  { %2910 = vmatpush.msrb.mxu0 %v2541_v25  ;;  %v2353_v23 = vpop.f32.mrf.mxu1  ;;  %v2608_v42 = vld [vmem:[#allocation7 + $0x268] sm:$0xff] }
 0x2f9   :  { %2974 = vmatpush.msrb.mxu3 %v2710_v43  ;;  %2929 = vmatpush.msrb.mxu1 %v2701_v39  ;;  %v2376_v29 = vpop.f32.mrf.mxu2  ;;  %v2599_v43 = vld [vmem:[#allocation7 + $0x220] sm:$0xff] }
 0x2fa   :  { %2911 = vmatpush.msrb.mxu0 %v2533_v55  ;;  %v2330_v55 = vpop.f32.mrf.mxu0  ;;  %v2591_v39 = vld [vmem:[#allocation7 + $0x1e0] sm:$0xff] }
 0x2fb   :  { %v3812_v27 = vpop.f32.mrf.mxu3  ;;  %2975 = vmatpush.msrb.mxu3 %v2702_v32  ;;  %2930 = vmatpush.msrb.mxu1 %v2693_v20  ;;  %v2354_v24 = vadd.f32 %v2353_v23, %v2330_v55  ;;  %v2592_v32 = vld [vmem:[#allocation7 + $0x1e8] sm:$0xff]  ;;  %v2559_v55 = vld [vmem:[#allocation7 + $0xe0] sm:$0xff] }
 0x2fc   :  { %v2560_v23 = vld [vmem:[#allocation7 + $0xe8] sm:$0xff] }
 0x2fd   :  { %2976 = vmatpush.msrb.mxu3 %v2694_v58  ;;  %2931 = vmatpush.msrb.mxu1 %v2685_v40  ;;  %v2377_v5 = vadd.f32 %v2376_v29, %v2354_v24  ;;  %v2065_v58 = vadd.f32 %v3806_v30, %v2042_v12  ;;  %v2552_v29 = vld [vmem:[#allocation7 + $0xa8] sm:$0xff] }
 0x2fe   :  { %v2752_v12 = vld [vmem:[#allocation7 + $0x6e8] sm:$0xff] }
 0x2ff   :  { %2977 = vmatpush.msrb.mxu3 %v2686_v15  ;;  %2932 = vmatpush.msrb.mxu1 %v2677_v41  ;;  %v2088_v40 = vadd.f32 %v3810_v54, %v2065_v58  ;;  %v2502_v41 = vperm.slane %v3832_v45, 1  ;;  %v2736_v58 = vld [vmem:[#allocation7 + $0x668] sm:$0xff] }
 0x300   :  { %v2442_v4 = vpop.f32.mrf.mxu1 }
 0x301   :  { %2978 = vmatpush.msrb.mxu3 %v2678_v28  ;;  %2933 = vmatpush.msrb.mxu1 %v2669_v11  ;;  %v2465_v20 = vpop.f32.mrf.mxu2  ;;  %v2111_v30 = vadd.f32 %v3812_v27, %v2088_v40  ;;  %v2551_v28 = vld [vmem:[#allocation7 + $0xa0] sm:$0xff]  ;;  %v2544_v11 = vld [vmem:[#allocation7 + $0x68] sm:$0xff] }
 0x302   :  { %v2419_v44 = vpop.f32.mrf.mxu0  ;;  %v2719_v40 = vld [vmem:[#allocation7 + $0x5e0] sm:$0xff] }
 0x303   :  { %v3827_v61 = vpop.f32.mrf.mxu3  ;;  %2979 = vmatpush.msrb.mxu3 %v2670_v62  ;;  %2934 = vmatpush.msrb.mxu1 %v2661_v10  ;;  %v2443_v34 = vadd.f32 %v2442_v4, %v2419_v44  ;;  %v2783_v10 = vld [vmem:[#allocation7 + $0x7e0] sm:$0xff]  ;;  %v2744_v4 = vld [vmem:[#allocation7 + $0x6a8] sm:$0xff] }
 0x304   :  { %v2743_v44 = vld [vmem:[#allocation7 + $0x6a0] sm:$0xff] }
 0x305   :  { %2980 = vmatpush.msrb.mxu3 %v2662_v9  ;;  %v2466_v15 = vadd.f32 %v2465_v20, %v2443_v34  ;;  %v2784_v9 = vld [vmem:[#allocation7 + $0x7e8] sm:$0xff]  ;;  %v2735_v20 = vld [vmem:[#allocation7 + $0x660] sm:$0xff] }
 0x306   :  { %v2727_v34 = vld [vmem:[#allocation7 + $0x620] sm:$0xff] }
 0x309   :  { %v2468_v62 = vpop.f32.mrf.mxu2 }
 0x31b   :  { %v2396_v63 = vpop.f32.mrf.mxu3 }
 0x31c   :  { %v2397_v25 = vadd.f32 %v2396_v63, %v2374_v8  ;;  %v2583_v8 = vld [vmem:[#allocation7 + $0x1a0] sm:$0xff] }
 0x31d   :  { %v2575_v63 = vld [vmem:[#allocation7 + $0x160] sm:$0xff] }
 0x31e   :  { %v2494_v1 = vadd.f32 %v2397_v25, %v2019_v53  ;;  %v2576_v53 = vld [vmem:[#allocation7 + $0x168] sm:$0xff] }
 0x31f   :  { %v2568_v25 = vld [vmem:[#allocation7 + $0x128] sm:$0xff] }
 0x320   :  { %v2505_v19 = vadd.f32 %v2501_v51, %v2494_v1 }
 0x322   :  { %v3840_v26 = vmax.f32 %v2505_v19, 0.0  ;;  %v2543_v19 = vld [vmem:[#allocation7 + $0x60] sm:$0xff] }
 0x323   :  { %v2399_v21 = vpop.f32.mrf.mxu3 }
 0x324   :  { %v2400_v47 = vadd.f32 %v2399_v21, %v2377_v5  ;;  %2820 = vmatmul.f32.vlgmr.msra.gmra.mxu0 %v3840_v26  ;;  %2866 = vmatmul.f32.vlgmr.msra.gmra.mxu2 %v3840_v26  ;;  %v2535_v5 = vld [vmem:[#allocation7 + $0x20] sm:$0xff] }
 0x325   :  { %2988 = vmatpush.msra.mxu0 %v2655_v36  ;;  %3034 = vmatpush.msra.mxu2 %v2656_v7 }
 0x326   :  { %v2496_v22 = vadd.f32 %v2400_v47, %v2022_v3  ;;  %v2657_v3 = vld [vmem:[#allocation7 + $0x3f0] sm:$0xff]  ;;  %v2658_v47 = vld [vmem:[#allocation7 + $0x3f8] sm:$0xff] }
 0x327   :  { %2989 = vmatpush.msra.mxu0 %v2647_v31  ;;  %3035 = vmatpush.msra.mxu2 %v2648_v13 }
 0x328   :  { %v2507_v59 = vadd.f32 %v2501_v51, %v2496_v22  ;;  %v2045_v51 = vadd.f32 %v3816_v35, %v3788_v14  ;;  %v2422_v14 = vpop.f32.mrf.mxu0  ;;  %v2445_v35 = vpop.f32.mrf.mxu1  ;;  %v2776_v22 = vld [vmem:[#allocation7 + $0x7a8] sm:$0xff] }
 0x329   :  { %2990 = vmatpush.msra.mxu0 %v2639_v17  ;;  %3036 = vmatpush.msra.mxu2 %v2640_v57  ;;  %v2446_v27 = vadd.f32 %v2445_v35, %v2422_v14  ;;  %v2649_v57 = vld [vmem:[#allocation7 + $0x3b0] sm:$0xff]  ;;  %v2578_v35 = vld [vmem:[#allocation7 + $0x178] sm:$0xff] }
 0x32a   :  { %v3845_v49 = vmax.f32 %v2507_v59, 0.0  ;;  %v2068_v54 = vadd.f32 %v3818_v60, %v2045_v51  ;;  %v2650_v59 = vld [vmem:[#allocation7 + $0x3b8] sm:$0xff]  ;;  %v2577_v14 = vld [vmem:[#allocation7 + $0x170] sm:$0xff] }
 0x32b   :  { %2991 = vmatpush.msra.mxu0 %v2631_v18  ;;  %3037 = vmatpush.msra.mxu2 %v2632_v50  ;;  %v2469_v7 = vadd.f32 %v2468_v62, %v2446_v27  ;;  %v2767_v18 = vld [vmem:[#allocation7 + $0x760] sm:$0xff]  ;;  %v2602_v51 = vld [vmem:[#allocation7 + $0x238] sm:$0xff]  ;;  %v2688_v27 = vld [vmem:[#allocation7 + $0x4e8] sm:$0xff] }
 0x32c   :  { %2823 = vmatmul.f32.gmra.mxu0 %v3845_v49  ;;  %2869 = vmatmul.f32.gmra.mxu2 %v3845_v49  ;;  %v2091_v36 = vadd.f32 %v3821_v33, %v2068_v54  ;;  %v2775_v33 = vld [vmem:[#allocation7 + $0x7a0] sm:$0xff] }
 0x32d   :  { %2992 = vmatpush.msra.mxu0 %v2623_v0  ;;  %3038 = vmatpush.msra.mxu2 %v2624_v56  ;;  %v2641_v0 = vld [vmem:[#allocation7 + $0x370] sm:$0xff]  ;;  %v2642_v56 = vld [vmem:[#allocation7 + $0x378] sm:$0xff]  ;;  %v2695_v54 = vld [vmem:[#allocation7 + $0x520] sm:$0xff] }
 0x32e   :  { %v2114_v31 = vadd.f32 %v3827_v61, %v2091_v36  ;;  %v2768_v61 = vld [vmem:[#allocation7 + $0x768] sm:$0xff]  ;;  %v2687_v62 = vld [vmem:[#allocation7 + $0x4e0] sm:$0xff] }
 0x32f   :  { %2993 = vmatpush.msra.mxu0 %v2615_v37  ;;  %3039 = vmatpush.msra.mxu2 %v2616_v38  ;;  %v2759_v37 = vld [vmem:[#allocation7 + $0x720] sm:$0xff]  ;;  %v2760_v38 = vld [vmem:[#allocation7 + $0x728] sm:$0xff] }
 0x330   :  { %v2680_v36 = vld [vmem:[#allocation7 + $0x4a8] sm:$0xff] }
 0x331   :  { %2994 = vmatpush.msra.mxu0 %v2607_v2  ;;  %3040 = vmatpush.msra.mxu2 %v2608_v42  ;;  %v2633_v42 = vld [vmem:[#allocation7 + $0x330] sm:$0xff] }
 0x333   :  { %2995 = vmatpush.msra.mxu0 %v2599_v43  ;;  %3041 = vmatpush.msra.mxu2 %v2600_v52  ;;  %v2634_v43 = vld [vmem:[#allocation7 + $0x338] sm:$0xff]  ;;  %v2751_v52 = vld [vmem:[#allocation7 + $0x6e0] sm:$0xff] }
 0x334   :  { %2912 = vmatmul.f32.vlgmr.msrb.gmra.mxu0 %v3840_v26  ;;  %2958 = vmatmul.f32.vlgmr.msrb.gmra.mxu2 %v3840_v26 }
 0x335   :  { %2996 = vmatpush.msra.mxu0 %v2591_v39  ;;  %3042 = vmatpush.msra.mxu2 %v2592_v32  ;;  %v2625_v39 = vld [vmem:[#allocation7 + $0x2f0] sm:$0xff]  ;;  %v2626_v32 = vld [vmem:[#allocation7 + $0x2f8] sm:$0xff] }
 0x337   :  { %2997 = vmatpush.msra.mxu0 %v2583_v8  ;;  %3043 = vmatpush.msra.mxu2 %v2584_v48  ;;  %v2617_v8 = vld [vmem:[#allocation7 + $0x2b0] sm:$0xff]  ;;  %v2618_v48 = vld [vmem:[#allocation7 + $0x2b8] sm:$0xff] }
 0x339   :  { %2998 = vmatpush.msra.mxu0 %v2575_v63  ;;  %3044 = vmatpush.msra.mxu2 %v2576_v53  ;;  %v2609_v63 = vld [vmem:[#allocation7 + $0x270] sm:$0xff]  ;;  %v2610_v53 = vld [vmem:[#allocation7 + $0x278] sm:$0xff] }
 0x33b   :  { %v2488_v16 = vpop.f32.mrf.mxu3  ;;  %2999 = vmatpush.msra.mxu0 %v2567_v46  ;;  %3045 = vmatpush.msra.mxu2 %v2568_v25  ;;  %v2728_v46 = vld [vmem:[#allocation7 + $0x628] sm:$0xff]  ;;  %v2601_v25 = vld [vmem:[#allocation7 + $0x230] sm:$0xff] }
 0x33c   :  { %v2489_v1 = vadd.f32 %v2488_v16, %v2466_v15  ;;  %2915 = vmatmul.f32.gmra.mxu0 %v3845_v49  ;;  %2961 = vmatmul.f32.gmra.mxu2 %v3845_v49  ;;  %v2720_v15 = vld [vmem:[#allocation7 + $0x5e8] sm:$0xff]  ;;  %v2711_v16 = vld [vmem:[#allocation7 + $0x5a0] sm:$0xff] }
 0x33d   :  { %3000 = vmatpush.msra.mxu0 %v2559_v55  ;;  %3046 = vmatpush.msra.mxu2 %v2560_v23  ;;  %v2593_v55 = vld [vmem:[#allocation7 + $0x1f0] sm:$0xff]  ;;  %v2594_v23 = vld [vmem:[#allocation7 + $0x1f8] sm:$0xff] }
 0x33e   :  { %v2495_v24 = vadd.f32 %v2489_v1, %v2111_v30  ;;  %v2712_v30 = vld [vmem:[#allocation7 + $0x5a8] sm:$0xff]  ;;  %v2585_v1 = vld [vmem:[#allocation7 + $0x1b0] sm:$0xff] }
 0x33f   :  { %3001 = vmatpush.msra.mxu0 %v2551_v28  ;;  %3047 = vmatpush.msra.mxu2 %v2552_v29  ;;  %v2703_v28 = vld [vmem:[#allocation7 + $0x560] sm:$0xff]  ;;  %v2704_v29 = vld [vmem:[#allocation7 + $0x568] sm:$0xff] }
 0x340   :  { %v2506_v45 = vadd.f32 %v2502_v41, %v2495_v24  ;;  %v2696_v24 = vld [vmem:[#allocation7 + $0x528] sm:$0xff] }
 0x341   :  { %3002 = vmatpush.msra.mxu0 %v2543_v19  ;;  %3048 = vmatpush.msra.mxu2 %v2544_v11  ;;  %v2569_v19 = vld [vmem:[#allocation7 + $0x130] sm:$0xff]  ;;  %v2570_v11 = vld [vmem:[#allocation7 + $0x138] sm:$0xff] }
 0x342   :  { %v3863_v21 = vmax.f32 %v2506_v45, 0.0  ;;  %v2561_v45 = vld [vmem:[#allocation7 + $0xf0] sm:$0xff] }
 0x343   :  { %v2491_v60 = vpop.f32.mrf.mxu3  ;;  %3003 = vmatpush.msra.mxu0 %v2535_v5  ;;  %3049 = vmatpush.msra.mxu2 %v2536_v6  ;;  %v2562_v5 = vld [vmem:[#allocation7 + $0xf8] sm:$0xff]  ;;  %v2679_v6 = vld [vmem:[#allocation7 + $0x4a0] sm:$0xff] }
 0x344   :  { %v2492_v13 = vadd.f32 %v2491_v60, %v2469_v7  ;;  %2843 = vmatmul.f32.vlgmr.msra.gmra.mxu1 %v3863_v21  ;;  %2889 = vmatmul.f32.vlgmr.msra.gmra.mxu3 %v3863_v21  ;;  %v2553_v7 = vld [vmem:[#allocation7 + $0xb0] sm:$0xff]  ;;  %v2672_v60 = vld [vmem:[#allocation7 + $0x468] sm:$0xff] }
 0x345   :  { %3011 = vmatpush.msra.mxu1 %v2783_v10  ;;  %3057 = vmatpush.msra.mxu3 %v2784_v9  ;;  %v2554_v10 = vld [vmem:[#allocation7 + $0xb8] sm:$0xff]  ;;  %v2671_v9 = vld [vmem:[#allocation7 + $0x460] sm:$0xff] }
 0x346   :  { %v2497_v17 = vadd.f32 %v2492_v13, %v2114_v31  ;;  %3080 = vmatpush.msrb.mxu0 %v2657_v3  ;;  %3126 = vmatpush.msrb.mxu2 %v2658_v47  ;;  %v2545_v3 = vld [vmem:[#allocation7 + $0x70] sm:$0xff]  ;;  %v2546_v47 = vld [vmem:[#allocation7 + $0x78] sm:$0xff]  ;;  %v2663_v31 = vld [vmem:[#allocation7 + $0x420] sm:$0xff] }
 0x347   :  { %3004 = vmatmul.f32.vlgmr.msra.gmra.mxu0 %v3840_v26  ;;  %3050 = vmatmul.f32.vlgmr.msra.gmra.mxu2 %v3840_v26  ;;  %v2664_v13 = vld [vmem:[#allocation7 + $0x428] sm:$0xff] }
 0x348   :  { %v2508_v50 = vadd.f32 %v2502_v41, %v2497_v17  ;;  %3012 = vmatpush.msra.mxu1 %v2775_v33  ;;  %3058 = vmatpush.msra.mxu3 %v2776_v22  ;;  %v2586_v41 = vld [vmem:[#allocation7 + $0x1b8] sm:$0xff]  ;;  %v2537_v33 = vld [vmem:[#allocation7 + $0x30] sm:$0xff] }
 0x349   :  { %3081 = vmatpush.msrb.mxu0 %v2649_v57  ;;  %3127 = vmatpush.msrb.mxu2 %v2650_v59  ;;  %v2538_v22 = vld [vmem:[#allocation7 + $0x38] sm:$0xff]  ;;  %v2785_v17 = vld [vmem:[#allocation7 + $0x7f0] sm:$0xff] }
 0x34a   :  { %v3870_v2 = vmax.f32 %v2508_v50, 0.0  ;;  %3013 = vmatpush.msra.mxu1 %v2767_v18  ;;  %3059 = vmatpush.msra.mxu3 %v2768_v61  ;;  %v2786_v57 = vld [vmem:[#allocation7 + $0x7f8] sm:$0xff]  ;;  %v2777_v59 = vld [vmem:[#allocation7 + $0x7b0] sm:$0xff] }
 0x34b   :  { %3082 = vmatpush.msrb.mxu0 %v2641_v0  ;;  %3128 = vmatpush.msrb.mxu2 %v2642_v56  ;;  %v2778_v18 = vld [vmem:[#allocation7 + $0x7b8] sm:$0xff]  ;;  %v2769_v61 = vld [vmem:[#allocation7 + $0x770] sm:$0xff] }
 0x34c   :  { %3014 = vmatpush.msra.mxu1 %v2759_v37  ;;  %3060 = vmatpush.msra.mxu3 %v2760_v38  ;;  %v2770_v50 = vld [vmem:[#allocation7 + $0x778] sm:$0xff]  ;;  %v2761_v0 = vld [vmem:[#allocation7 + $0x730] sm:$0xff] }
 0x34d   :  { %3083 = vmatpush.msrb.mxu0 %v2633_v42  ;;  %3129 = vmatpush.msrb.mxu2 %v2634_v43  ;;  %v2762_v56 = vld [vmem:[#allocation7 + $0x738] sm:$0xff]  ;;  %v2753_v37 = vld [vmem:[#allocation7 + $0x6f0] sm:$0xff] }
 0x34e   :  { %2846 = vmatmul.f32.gmra.mxu1 %v3870_v2  ;;  %2892 = vmatmul.f32.gmra.mxu3 %v3870_v2  ;;  %v2754_v38 = vld [vmem:[#allocation7 + $0x6f8] sm:$0xff]  ;;  %v2737_v43 = vld [vmem:[#allocation7 + $0x670] sm:$0xff] }
 0x34f   :  { %3015 = vmatpush.msra.mxu1 %v2751_v52  ;;  %3061 = vmatpush.msra.mxu3 %v2752_v12  ;;  %v2746_v42 = vld [vmem:[#allocation7 + $0x6b8] sm:$0xff]  ;;  %v2729_v12 = vld [vmem:[#allocation7 + $0x630] sm:$0xff] }
 0x350   :  { %3084 = vmatpush.msrb.mxu0 %v2625_v39  ;;  %3130 = vmatpush.msrb.mxu2 %v2626_v32  ;;  %v2738_v52 = vld [vmem:[#allocation7 + $0x678] sm:$0xff]  ;;  %v2721_v32 = vld [vmem:[#allocation7 + $0x5f0] sm:$0xff] }
 0x351   :  { %3007 = vmatmul.f32.gmra.mxu0 %v3845_v49  ;;  %3053 = vmatmul.f32.gmra.mxu2 %v3845_v49  ;;  %v2730_v39 = vld [vmem:[#allocation7 + $0x638] sm:$0xff] }
 0x352   :  { %3016 = vmatpush.msra.mxu1 %v2743_v44  ;;  %3062 = vmatpush.msra.mxu3 %v2744_v4  ;;  %v2722_v44 = vld [vmem:[#allocation7 + $0x5f8] sm:$0xff]  ;;  %v2713_v4 = vld [vmem:[#allocation7 + $0x5b0] sm:$0xff] }
 0x353   :  { %3085 = vmatpush.msrb.mxu0 %v2617_v8  ;;  %3131 = vmatpush.msrb.mxu2 %v2618_v48  ;;  %v2705_v8 = vld [vmem:[#allocation7 + $0x570] sm:$0xff]  ;;  %v2706_v48 = vld [vmem:[#allocation7 + $0x578] sm:$0xff] }
 0x354   :  { %3017 = vmatpush.msra.mxu1 %v2735_v20  ;;  %3063 = vmatpush.msra.mxu3 %v2736_v58  ;;  %v2697_v20 = vld [vmem:[#allocation7 + $0x530] sm:$0xff]  ;;  %v2698_v58 = vld [vmem:[#allocation7 + $0x538] sm:$0xff] }
 0x355   :  { %3086 = vmatpush.msrb.mxu0 %v2609_v63  ;;  %3132 = vmatpush.msrb.mxu2 %v2610_v53  ;;  %v2689_v63 = vld [vmem:[#allocation7 + $0x4f0] sm:$0xff]  ;;  %v2690_v53 = vld [vmem:[#allocation7 + $0x4f8] sm:$0xff] }
 0x356   :  { %3018 = vmatpush.msra.mxu1 %v2727_v34  ;;  %3064 = vmatpush.msra.mxu3 %v2728_v46  ;;  %v2681_v34 = vld [vmem:[#allocation7 + $0x4b0] sm:$0xff]  ;;  %v2682_v46 = vld [vmem:[#allocation7 + $0x4b8] sm:$0xff] }
 0x357   :  { %3087 = vmatpush.msrb.mxu0 %v2601_v25  ;;  %3133 = vmatpush.msrb.mxu2 %v2602_v51  ;;  %v2673_v25 = vld [vmem:[#allocation7 + $0x470] sm:$0xff]  ;;  %v2674_v51 = vld [vmem:[#allocation7 + $0x478] sm:$0xff] }
 0x358   :  { %2935 = vmatmul.f32.vlgmr.msrb.gmra.mxu1 %v3863_v21  ;;  %2981 = vmatmul.f32.vlgmr.msrb.gmra.mxu3 %v3863_v21 }
 0x359   :  { %3019 = vmatpush.msra.mxu1 %v2719_v40  ;;  %3065 = vmatpush.msra.mxu3 %v2720_v15  ;;  %v2665_v40 = vld [vmem:[#allocation7 + $0x430] sm:$0xff]  ;;  %v2666_v15 = vld [vmem:[#allocation7 + $0x438] sm:$0xff] }
 0x35a   :  { %3088 = vmatpush.msrb.mxu0 %v2593_v55  ;;  %3134 = vmatpush.msrb.mxu2 %v2594_v23  ;;  %v3892_v55 = vld [vmem:[#allocation8 + $0x2] ss:$4 sm:$0xff] }
 0x35b   :  { %3020 = vmatpush.msra.mxu1 %v2711_v16  ;;  %3066 = vmatpush.msra.mxu3 %v2712_v30  ;;  %v2788_v16 = vperm.slane %v3892_v55, 0 }
 0x35c   :  { %3089 = vmatpush.msrb.mxu0 %v2585_v1  ;;  %3135 = vmatpush.msrb.mxu2 %v2586_v41  ;;  %v2515_v1 = vld [vmem:[%s3998_s0] sm:$0xff] }
 0x35d   :  { %3021 = vmatpush.msra.mxu1 %v2703_v28  ;;  %3067 = vmatpush.msra.mxu3 %v2704_v29  ;;  %v2789_v28 = vperm.slane %v3892_v55, 1 }
 0x35e   :  { %3090 = vmatpush.msrb.mxu0 %v2577_v14  ;;  %3136 = vmatpush.msrb.mxu2 %v2578_v35 }
 0x35f   :  { %3022 = vmatpush.msra.mxu1 %v2695_v54  ;;  %3068 = vmatpush.msra.mxu3 %v2696_v24 }
 0x360   :  { %3091 = vmatpush.msrb.mxu0 %v2569_v19  ;;  %3137 = vmatpush.msrb.mxu2 %v2570_v11 }
 0x361   :  { %2938 = vmatmul.f32.gmra.mxu1 %v3870_v2  ;;  %2984 = vmatmul.f32.gmra.mxu3 %v3870_v2 }
 0x362   :  { %3023 = vmatpush.msra.mxu1 %v2687_v62  ;;  %3069 = vmatpush.msra.mxu3 %v2688_v27 }
 0x363   :  { %3092 = vmatpush.msrb.mxu0 %v2561_v45  ;;  %3138 = vmatpush.msrb.mxu2 %v2562_v5  ;;  %v2523_v45 = vld [vmem:[%s3998_s0 + $0x40] sm:$0xff] }
 0x364   :  { %3024 = vmatpush.msra.mxu1 %v2679_v6  ;;  %3070 = vmatpush.msra.mxu3 %v2680_v36 }
 0x365   :  { %3093 = vmatpush.msrb.mxu0 %v2553_v7  ;;  %3139 = vmatpush.msrb.mxu2 %v2554_v10 }
 0x366   :  { %3025 = vmatpush.msra.mxu1 %v2671_v9  ;;  %3071 = vmatpush.msra.mxu3 %v2672_v60 }
 0x367   :  { %3094 = vmatpush.msrb.mxu0 %v2545_v3  ;;  %3140 = vmatpush.msrb.mxu2 %v2546_v47  ;;  %v2790_v3 = vperm.slane %v3892_v55, 2 }
 0x368   :  { %3026 = vmatpush.msra.mxu1 %v2663_v31  ;;  %3072 = vmatpush.msra.mxu3 %v2664_v13  ;;  %v2524_v31 = vld [vmem:[%s3998_s0 + $0x48] sm:$0xff] }
 0x369   :  { %3095 = vmatpush.msrb.mxu0 %v2537_v33  ;;  %3141 = vmatpush.msrb.mxu2 %v2538_v22 }
 0x36a   :  { %3096 = vmatmul.f32.vlgmr.msrb.gmra.mxu0 %v3840_v26  ;;  %3103 = vmatpush.msrb.mxu1 %v2785_v17 }
 0x36b   :  { %3142 = vmatmul.f32.vlgmr.msrb.gmra.mxu2 %v3840_v26  ;;  %3149 = vmatpush.msrb.mxu3 %v2786_v57  ;;  %v2745_v26 = vld [vmem:[#allocation7 + $0x6b0] sm:$0xff] }
 0x36c   :  { %3027 = vmatmul.f32.vlgmr.msra.gmra.mxu1 %v3863_v21  ;;  %3073 = vmatmul.f32.vlgmr.msra.gmra.mxu3 %v3863_v21  ;;  %v2517_v57 = vld [vmem:[%s3998_s0 + $0x10] sm:$0xff] }
 0x36d   :  { %3104 = vmatpush.msrb.mxu1 %v2777_v59  ;;  %3150 = vmatpush.msrb.mxu3 %v2778_v18  ;;  %v2791_v18 = vperm.slane %v3892_v55, 3 }
 0x36f   :  { %3105 = vmatpush.msrb.mxu1 %v2769_v61  ;;  %3151 = vmatpush.msrb.mxu3 %v2770_v50 }
 0x371   :  { %3106 = vmatpush.msrb.mxu1 %v2761_v0  ;;  %3152 = vmatpush.msrb.mxu3 %v2762_v56 }
 0x372   :  { %3099 = vmatmul.f32.gmra.mxu0 %v3845_v49 }
 0x373   :  { %3107 = vmatpush.msrb.mxu1 %v2753_v37  ;;  %3145 = vmatmul.f32.gmra.mxu2 %v3845_v49  ;;  %v2714_v49 = vld [vmem:[#allocation7 + $0x5b8] sm:$0xff] }
 0x374   :  { %3153 = vmatpush.msrb.mxu3 %v2754_v38  ;;  %3030 = vmatmul.f32.gmra.mxu1 %v3870_v2 }
 0x375   :  { %3076 = vmatmul.f32.gmra.mxu3 %v3870_v2  ;;  %3108 = vmatpush.msrb.mxu1 %v2745_v26 }
 0x376   :  { %3154 = vmatpush.msrb.mxu3 %v2746_v42  ;;  %v2518_v42 = vld [vmem:[%s3998_s0 + $0x18] sm:$0xff] }
 0x377   :  { %3109 = vmatpush.msrb.mxu1 %v2737_v43 }
 0x378   :  { %3155 = vmatpush.msrb.mxu3 %v2738_v52 }
 0x379   :  { %3110 = vmatpush.msrb.mxu1 %v2729_v12 }
 0x37a   :  { %3156 = vmatpush.msrb.mxu3 %v2730_v39 }
 0x37b   :  { %3111 = vmatpush.msrb.mxu1 %v2721_v32  ;;  %v2525_v32 = vld [vmem:[%s3998_s0 + $0x50] sm:$0xff] }
 0x37c   :  { %3157 = vmatpush.msrb.mxu3 %v2722_v44 }
 0x37d   :  { %3112 = vmatpush.msrb.mxu1 %v2713_v4 }
 0x37e   :  { %3158 = vmatpush.msrb.mxu3 %v2714_v49 }
 0x37f   :  { %3113 = vmatpush.msrb.mxu1 %v2705_v8 }
 0x380   :  { %3159 = vmatpush.msrb.mxu3 %v2706_v48 }
 0x381   :  { %3114 = vmatpush.msrb.mxu1 %v2697_v20 }
 0x382   :  { %3160 = vmatpush.msrb.mxu3 %v2698_v58 }
 0x383   :  { %3115 = vmatpush.msrb.mxu1 %v2689_v63 }
 0x384   :  { %3161 = vmatpush.msrb.mxu3 %v2690_v53  ;;  %v2792_v53 = vperm.slane %v3892_v55, 4 }
 0x385   :  { %3116 = vmatpush.msrb.mxu1 %v2681_v34  ;;  %v2526_v34 = vld [vmem:[%s3998_s0 + $0x58] sm:$0xff] }
 0x386   :  { %3162 = vmatpush.msrb.mxu3 %v2682_v46 }
 0x387   :  { %3117 = vmatpush.msrb.mxu1 %v2673_v25 }
 0x388   :  { %3163 = vmatpush.msrb.mxu3 %v2674_v51 }
 0x389   :  { %3118 = vmatpush.msrb.mxu1 %v2665_v40 }
 0x38a   :  { %3164 = vmatpush.msrb.mxu3 %v2666_v15  ;;  %3119 = vmatmul.f32.vlgmr.msrb.gmra.mxu1 %v3863_v21 }
 0x38b   :  { %3165 = vmatmul.f32.vlgmr.msrb.gmra.mxu3 %v3863_v21 }
 0x392   :  { %3122 = vmatmul.f32.gmra.mxu1 %v3870_v2 }
 0x393   :  { %3168 = vmatmul.f32.gmra.mxu3 %v3870_v2  ;;  %v2516_v2 = vld [vmem:[%s3998_s0 + $0x8] sm:$0xff] }
 0x3a1   :  { %v2821_v23 = vpop.f32.mrf.mxu0 }
 0x3a2   :  { %v2822_v30 = vadd.f32 %v2821_v23, %v2788_v16  ;;  %v2519_v23 = vld [vmem:[%s3998_s0 + $0x20] sm:$0xff] }
 0x3a7   :  { %v2867_v29 = vpop.f32.mrf.mxu2 }
 0x3a8   :  { %v2868_v54 = vadd.f32 %v2867_v29, %v2789_v28 }
 0x3a9   :  { %v2824_v35 = vpop.f32.mrf.mxu0 }
 0x3aa   :  { %v2825_v62 = vadd.f32 %v2824_v35, %v2788_v16  ;;  %v2520_v35 = vld [vmem:[%s3998_s0 + $0x28] sm:$0xff] }
 0x3af   :  { %v2870_v6 = vpop.f32.mrf.mxu2 }
 0x3b0   :  { %v2871_v60 = vadd.f32 %v2870_v6, %v2789_v28 }
 0x3b1   :  { %v2913_v9 = vpop.f32.mrf.mxu0 }
 0x3b2   :  { %v2914_v22 = vadd.f32 %v2913_v9, %v2790_v3 }
 0x3b7   :  { %v2959_v61 = vpop.f32.mrf.mxu2 }
 0x3b8   :  { %v2960_v38 = vadd.f32 %v2959_v61, %v2791_v18 }
 0x3b9   :  { %v2916_v37 = vpop.f32.mrf.mxu0 }
 0x3ba   :  { %v2917_v12 = vadd.f32 %v2916_v37, %v2790_v3 }
 0x3bf   :  { %v2962_v49 = vpop.f32.mrf.mxu2 }
 0x3c0   :  { %v2963_v20 = vadd.f32 %v2962_v49, %v2791_v18  ;;  %v2795_v18 = vperm.slane %v3892_v55, 7 }
 0x3c1   :  { %v2844_v41 = vpop.f32.mrf.mxu1 }
 0x3c2   :  { %v2845_v14 = vadd.f32 %v2844_v41, %v2822_v30  ;;  %v2793_v30 = vperm.slane %v3892_v55, 5 }
 0x3c4   :  { %v3172_v21 = vadd.f32 %v2845_v14, %v2515_v1  ;;  %v3005_v58 = vpop.f32.mrf.mxu0 }
 0x3c5   :  { %v3006_v40 = vadd.f32 %v3005_v58, %v2792_v53 }
 0x3c6   :  { %v3188_v24 = vmax.f32 %v3172_v21, 0.0 }
 0x3c7   :  { %v2890_v19 = vpop.f32.mrf.mxu3 }
 0x3c8   :  { %3204 = vst [vmem:[%s4003_s5] sm:$0xff] %v3188_v24  ;;  %v2891_v11 = vadd.f32 %v2890_v19, %v2868_v54  ;;  %v2527_v19 = vld [vmem:[%s3998_s0 + $0x60] sm:$0xff] }
 0x3ca   :  { %v3173_v27 = vadd.f32 %v2891_v11, %v2516_v2  ;;  %v3051_v1 = vpop.f32.mrf.mxu2 }
 0x3cb   :  { %v2847_v5 = vpop.f32.mrf.mxu1  ;;  %v3052_v14 = vadd.f32 %v3051_v1, %v2793_v30 }
 0x3cc   :  { %v3189_v36 = vmax.f32 %v3173_v27, 0.0  ;;  %v2848_v7 = vadd.f32 %v2847_v5, %v2825_v62 }
 0x3ce   :  { %3205 = vst [vmem:[%s4003_s5 + $0x8] sm:$0xff] %v3189_v36  ;;  %v3180_v10 = vadd.f32 %v2848_v7, %v2523_v45  ;;  %v3008_v29 = vpop.f32.mrf.mxu0 }
 0x3cf   :  { %v3009_v24 = vadd.f32 %v3008_v29, %v2792_v53 }
 0x3d0   :  { %v3196_v47 = vmax.f32 %v3180_v10, 0.0  ;;  %v2528_v10 = vld [vmem:[%s3998_s0 + $0x68] sm:$0xff] }
 0x3d1   :  { %v2893_v13 = vpop.f32.mrf.mxu3 }
 0x3d2   :  { %3212 = vst [vmem:[%s4003_s5 + $0x40] sm:$0xff] %v3196_v47  ;;  %v2894_v33 = vadd.f32 %v2893_v13, %v2871_v60  ;;  %v2794_v13 = vperm.slane %v3892_v55, 6 }
 0x3d4   :  { %v3181_v17 = vadd.f32 %v2894_v33, %v2524_v31  ;;  %v3054_v45 = vpop.f32.mrf.mxu2 }
 0x3d5   :  { %v2936_v59 = vpop.f32.mrf.mxu1  ;;  %v3055_v7 = vadd.f32 %v3054_v45, %v2793_v30 }
 0x3d6   :  { %v3197_v50 = vmax.f32 %v3181_v17, 0.0  ;;  %v2937_v0 = vadd.f32 %v2936_v59, %v2914_v22  ;;  %v2521_v22 = vld [vmem:[%s3998_s0 + $0x30] sm:$0xff] }
 0x3d8   :  { %3213 = vst [vmem:[%s4003_s5 + $0x48] sm:$0xff] %v3197_v50  ;;  %v3174_v56 = vadd.f32 %v2937_v0, %v2517_v57 }
 0x3da   :  { %v3190_v26 = vmax.f32 %v3174_v56, 0.0 }
 0x3db   :  { %v2982_v43 = vpop.f32.mrf.mxu3 }
 0x3dc   :  { %3206 = vst [vmem:[%s4003_s5 + $0x10] sm:$0xff] %v3190_v26  ;;  %v2983_v52 = vadd.f32 %v2982_v43, %v2960_v38  ;;  %v2522_v38 = vld [vmem:[%s3998_s0 + $0x38] sm:$0xff]  ;;  %v2529_v43 = vld [vmem:[%s3998_s0 + $0x70] sm:$0xff] }
 0x3de   :  { %v3175_v39 = vadd.f32 %v2983_v52, %v2518_v42  ;;  %v2939_v44 = vpop.f32.mrf.mxu1 }
 0x3df   :  { %v2940_v4 = vadd.f32 %v2939_v44, %v2917_v12 }
 0x3e0   :  { %v3191_v8 = vmax.f32 %v3175_v39, 0.0 }
 0x3e1   :  { %v3182_v48 = vadd.f32 %v2940_v4, %v2525_v32 }
 0x3e2   :  { %3207 = vst [vmem:[%s4003_s5 + $0x18] sm:$0xff] %v3191_v8  ;;  %v2530_v8 = vld [vmem:[%s3998_s0 + $0x78] sm:$0xff] }
 0x3e3   :  { %v3198_v63 = vmax.f32 %v3182_v48, 0.0 }
 0x3e4   :  { %v2985_v46 = vpop.f32.mrf.mxu3 }
 0x3e5   :  { %3214 = vst [vmem:[%s4003_s5 + $0x50] sm:$0xff] %v3198_v63  ;;  %v2986_v25 = vadd.f32 %v2985_v46, %v2963_v20 }
 0x3e7   :  { %v3183_v51 = vadd.f32 %v2986_v25, %v2526_v34  ;;  %v3097_v31 = vpop.f32.mrf.mxu0 }
 0x3e8   :  { %v3098_v33 = vadd.f32 %v3097_v31, %v2794_v13 }
 0x3e9   :  { %v3199_v15 = vmax.f32 %v3183_v51, 0.0  ;;  %v3028_v16 = vpop.f32.mrf.mxu1 }
 0x3ea   :  { %v3029_v41 = vadd.f32 %v3028_v16, %v3006_v40 }
 0x3eb   :  { %3215 = vst [vmem:[%s4003_s5 + $0x58] sm:$0xff] %v3199_v15 }
 0x3ec   :  { %v3176_v28 = vadd.f32 %v3029_v41, %v2519_v23 }
 0x3ee   :  { %v3192_v21 = vmax.f32 %v3176_v28, 0.0  ;;  %v3143_v57 = vpop.f32.mrf.mxu2 }
 0x3ef   :  { %v3074_v54 = vpop.f32.mrf.mxu3  ;;  %v3100_v50 = vpop.f32.mrf.mxu0  ;;  %v3144_v56 = vadd.f32 %v3143_v57, %v2795_v18 }
 0x3f0   :  { %3208 = vst [vmem:[%s4003_s5 + $0x20] sm:$0xff] %v3192_v21  ;;  %v3075_v2 = vadd.f32 %v3074_v54, %v3052_v14  ;;  %v3101_v37 = vadd.f32 %v3100_v50, %v2794_v13 }
 0x3f1   :  { %v3031_v11 = vpop.f32.mrf.mxu1 }
 0x3f2   :  { %v3177_v62 = vadd.f32 %v3075_v2, %v2520_v35  ;;  %v3032_v27 = vadd.f32 %v3031_v11, %v3009_v24 }
 0x3f4   :  { %v3193_v5 = vmax.f32 %v3177_v62, 0.0  ;;  %v3184_v6 = vadd.f32 %v3032_v27, %v2527_v19 }
 0x3f6   :  { %3209 = vst [vmem:[%s4003_s5 + $0x28] sm:$0xff] %v3193_v5  ;;  %v3200_v36 = vmax.f32 %v3184_v6, 0.0  ;;  %v3146_v39 = vpop.f32.mrf.mxu2 }
 0x3f7   :  { %v3147_v49 = vadd.f32 %v3146_v39, %v2795_v18 }
 0x3f8   :  { %3216 = vst [vmem:[%s4003_s5 + $0x60] sm:$0xff] %v3200_v36  ;;  %v3077_v9 = vpop.f32.mrf.mxu3 }
 0x3f9   :  { %v3078_v60 = vadd.f32 %v3077_v9, %v3055_v7 }
 0x3fb   :  { %v3185_v3 = vadd.f32 %v3078_v60, %v2528_v10 }
 0x3fd   :  { %v3201_v47 = vmax.f32 %v3185_v3, 0.0 }
 0x3ff   :  { %3217 = vst [vmem:[%s4003_s5 + $0x68] sm:$0xff] %v3201_v47 }
 0x407   :  { %v3120_v17 = vpop.f32.mrf.mxu1 }
 0x408   :  { %v3121_v59 = vadd.f32 %v3120_v17, %v3098_v33 }
 0x40a   :  { %v3178_v61 = vadd.f32 %v3121_v59, %v2521_v22 }
 0x40c   :  { %v3194_v0 = vmax.f32 %v3178_v61, 0.0 }
 0x40e   :  { %3210 = vst [vmem:[%s4003_s5 + $0x30] sm:$0xff] %v3194_v0  ;;  %v3166_v26 = vpop.f32.mrf.mxu3 }
 0x40f   :  { %v3167_v42 = vadd.f32 %v3166_v26, %v3144_v56  ;;  %v3123_v55 = vpop.f32.mrf.mxu1 }
 0x410   :  { %v3124_v52 = vadd.f32 %v3123_v55, %v3101_v37 }
 0x411   :  { %v3179_v12 = vadd.f32 %v3167_v42, %v2522_v38 }
 0x412   :  { %v3186_v32 = vadd.f32 %v3124_v52, %v2529_v43 }
 0x413   :  { %v3195_v44 = vmax.f32 %v3179_v12, 0.0 }
 0x414   :  { %v3202_v4 = vmax.f32 %v3186_v32, 0.0 }
 0x415   :  { %3211 = vst [vmem:[%s4003_s5 + $0x38] sm:$0xff] %v3195_v44 }
 0x416   :  { %3218 = vst [vmem:[%s4003_s5 + $0x70] sm:$0xff] %v3202_v4  ;;  %v3169_v48 = vpop.f32.mrf.mxu3 }
 0x417   :  { %v3170_v20 = vadd.f32 %v3169_v48, %v3147_v49 }
 0x419   :  { %v3187_v58 = vadd.f32 %v3170_v20, %v2530_v8 }
 0x41b   :  { %v3203_v63 = vmax.f32 %v3187_v58, 0.0 }
 0x41d   :  { %3219 = vst [vmem:[%s4003_s5 + $0x78] sm:$0xff] %v3203_v63 }
 0x41e   :  { %3224 = vsyncpa [#allocation4], 1 }
 0x41f   :  { %3225 = vsyncpa [#allocation6], 1 }
 0x420   :  { %3226 = vsyncpa [#allocation9], 1 }

</bundles_post_ra>
